<compile_context>
chip_gen: v5e
topology: v5e:2x2
jax: 0.10.0
libtpu: 0.0.40
codegen_flags: <defaults>
</compile_context>

<pallas_src>
import functools

import jax
import jax.numpy as jnp
from jax import lax
from jax.experimental import pallas as pl
from jax.experimental.pallas import tpu as pltpu

LANE = 128


def _round_up(n, m):
    return ((n + m - 1) // m) * m


def _block_kernel(xcol_ref, t_ref, w1_ref, b1_ref, w2_ref, b2_ref,
                  wt_ref, bt_ref, o_ref):
    """Fused Block forward for one batch tile.

    xcol_ref: (Bt, H1, W1, K1p)  im2col'd x patches, K1p = round_up(9*Cin, 128)
    t_ref   : (Bt, 1, 1)         time scalars for this tile
    w1_ref  : (K1p, Cp)          conv1 weight in im2col layout (Cout padded)
    b1_ref  : (1, Cp)
    w2_ref  : (9, Cp, Cp)        per-tap conv2 weight (in & out padded to Cp)
    b2_ref  : (1, Cp)
    wt_ref  : (1, Cp)            Linear(1, Cout) weight row (padded)
    bt_ref  : (1, Cp)
    o_ref   : (Bt, H2, W2, Cout) output (true Cout lane width)
    """
    Bt, H1, W1, K1p = xcol_ref.shape
    Cp = w1_ref.shape[-1]
    Co = o_ref.shape[-1]
    H2, W2 = H1 - 2, W1 - 2
    mdt = w2_ref.dtype                      # matmul operand dtype (bf16 or f32)

    # ---- conv1: one batched im2col matmul, M = Bt*H1*W1, K = K1p, N = Cp
    xcol = xcol_ref[...].reshape(Bt * H1, W1, K1p)
    acc1 = lax.dot_general(
        xcol, w1_ref[...],
        dimension_numbers=(((2,), (0,)), ((), ())),
        preferred_element_type=jnp.float32).reshape(Bt, H1, W1, Cp)

    # ---- time embedding: Linear(1, Cout) as one outer product over the tile
    t_emb = t_ref[...] * wt_ref[...] + bt_ref[...]          # (Bt, 1, Cp) f32

    # ---- relu(conv1 + b1) + t_emb   (VPU math in f32)
    h1 = jnp.maximum(acc1 + b1_ref[...], 0.0) + t_emb[:, :, None, :]

    # ---- conv2: 9 accumulating taps, each K = Cp, single f32 accumulator
    h1c = h1.astype(mdt)
    acc2 = None
    for ky in range(3):
        for kx in range(3):
            patch = h1c[:, ky:ky + H2, kx:kx + W2, :].reshape(Bt * H2, W2, Cp)
            d = lax.dot_general(
                patch, w2_ref[ky * 3 + kx],
                dimension_numbers=(((2,), (0,)), ((), ())),
                preferred_element_type=jnp.float32)
            acc2 = d if acc2 is None else acc2 + d

    h2 = jnp.maximum(acc2.reshape(Bt, H2, W2, Cp) + b2_ref[...], 0.0)
    o_ref[...] = h2[..., :Co].astype(o_ref.dtype)


def block_forward(x_nchw, t, params, *, batch_tile=None,
                  matmul_dtype=jnp.bfloat16):
    """x_nchw: (B, Cin, H, W) f32; t: (B, 1) f32.
    params use PyTorch layouts:
      w1 (Cout,Cin,3,3), b1 (Cout,), w2 (Cout,Cout,3,3), b2 (Cout,),
      wt (Cout,1), bt (Cout,).
    Returns (B, Cout, H-4, W-4) f32 — matches the PyTorch Block."""
    w1, b1, w2, b2, wt, bt = params
    B, Cin, H, W = x_nchw.shape
    Cout = w1.shape[0]
    H1, W1 = H - 2, W - 2
    H2, W2 = H1 - 2, W1 - 2
    Cp = _round_up(max(Cout, 1), LANE)
    K1 = 9 * Cin
    K1p = _round_up(K1, LANE)

    # >=2 grid steps by default: pipelines DMA/compute and feeds both v7x TCs.
    Bt = max(1, B // 2) if batch_tile is None else batch_tile
    assert B % Bt == 0, "batch_tile must divide the batch"

    # ---- wrapper-side weight packing / channel padding (tiny, outside kernel)
    # conv1: (Cout,Cin,3,3) -> (3,3,Cin,Cout) -> (9*Cin, Cout) -> (K1p, Cp)
    w1_p = jnp.transpose(w1, (2, 3, 1, 0)).reshape(K1, Cout)
    w1_p = jnp.pad(w1_p, ((0, K1p - K1), (0, Cp - Cout))).astype(matmul_dtype)
    # conv2: (Cout,Cout,3,3) -> (3,3,Cin,Cout) -> pad both channel axes -> (9,Cp,Cp)
    w2_p = jnp.pad(jnp.transpose(w2, (2, 3, 1, 0)),
                   ((0, 0), (0, 0), (0, Cp - Cout), (0, Cp - Cout)))
    w2_p = w2_p.reshape(9, Cp, Cp).astype(matmul_dtype)
    b1_p = jnp.pad(b1[None, :], ((0, 0), (0, Cp - Cout))).astype(jnp.float32)
    b2_p = jnp.pad(b2[None, :], ((0, 0), (0, Cp - Cout))).astype(jnp.float32)
    wt_p = jnp.pad(wt[:, 0][None, :], ((0, 0), (0, Cp - Cout))).astype(jnp.float32)
    bt_p = jnp.pad(bt[None, :], ((0, 0), (0, Cp - Cout))).astype(jnp.float32)

    # ---- conv1 im2col in the wrapper: (B, H1, W1, 9*Cin) padded to K1p lanes.
    # TODO(synk): in a full UNet keep activations NHWC end-to-end so the
    # NCHW<->NHWC transposes (extra HBM round trips) disappear; they are kept
    # here only to preserve the PyTorch-facing API.
    x_nhwc = jnp.transpose(x_nchw, (0, 2, 3, 1))            # (B, H, W, Cin)
    xcol = jnp.concatenate(
        [x_nhwc[:, ky:ky + H1, kx:kx + W1, :]
         for ky in range(3) for kx in range(3)], axis=-1)   # (B, H1, W1, 9*Cin)
    xcol = jnp.pad(xcol, ((0, 0), (0, 0), (0, 0),
                          (0, K1p - K1))).astype(matmul_dtype)

    t3 = t.astype(jnp.float32).reshape(B, 1, 1)

    out = pl.pallas_call(
        _block_kernel,
        out_shape=jax.ShapeDtypeStruct((B, H2, W2, Cout), jnp.float32),
        grid_spec=pltpu.PrefetchScalarGridSpec(
            num_scalar_prefetch=0,
            grid=(B // Bt,),
            in_specs=[
                pl.BlockSpec((Bt, H1, W1, K1p), lambda i: (i, 0, 0, 0)),
                pl.BlockSpec((Bt, 1, 1), lambda i: (i, 0, 0)),
                pl.BlockSpec((K1p, Cp), lambda i: (0, 0)),       # w1 (resident)
                pl.BlockSpec((1, Cp), lambda i: (0, 0)),          # b1
                pl.BlockSpec((9, Cp, Cp), lambda i: (0, 0, 0)),   # w2 (resident)
                pl.BlockSpec((1, Cp), lambda i: (0, 0)),          # b2
                pl.BlockSpec((1, Cp), lambda i: (0, 0)),          # wt
                pl.BlockSpec((1, Cp), lambda i: (0, 0)),          # bt
            ],
            out_specs=pl.BlockSpec((Bt, H2, W2, Cout), lambda i: (i, 0, 0, 0)),
        ),
        compiler_params=pltpu.CompilerParams(
            dimension_semantics=("parallel",),
            vmem_limit_bytes=32 * 1024 * 1024),
    )(xcol, t3, w1_p, b1_p, w2_p, b2_p, wt_p, bt_p)

    # NHWC -> NCHW for the PyTorch-compatible return (no channel slice needed).
    return jnp.transpose(out, (0, 3, 1, 2))


def init_params(key, in_ch, out_ch):
    """Deterministic synthetic parameters in PyTorch layouts."""
    ks = jax.random.split(key, 6)
    w1 = jax.random.normal(ks[0], (out_ch, in_ch, 3, 3), jnp.float32) * 0.1
    b1 = jax.random.normal(ks[1], (out_ch,), jnp.float32) * 0.1
    w2 = jax.random.normal(ks[2], (out_ch, out_ch, 3, 3), jnp.float32) * 0.1
    b2 = jax.random.normal(ks[3], (out_ch,), jnp.float32) * 0.1
    wt = jax.random.normal(ks[4], (out_ch, 1), jnp.float32) * 0.1   # Linear(1,out)
    bt = jax.random.normal(ks[5], (out_ch,), jnp.float32) * 0.1
    return (w1, b1, w2, b2, wt, bt)


def reference_forward(x_nchw, t, params):
    """Pure-JAX reference replicating the PyTorch module exactly (NCHW)."""
    w1, b1, w2, b2, wt, bt = params
    dn1 = lax.conv_dimension_numbers(x_nchw.shape, w1.shape,
                                     ("NCHW", "OIHW", "NCHW"))
    h = lax.conv_general_dilated(x_nchw, w1, (1, 1), "VALID",
                                 dimension_numbers=dn1)
    h = jnp.maximum(h + b1.reshape(1, -1, 1, 1), 0.0)
    t_emb = t @ wt.T + bt                      # (B, Cout)
    h = h + t_emb[:, :, None, None]
    dn2 = lax.conv_dimension_numbers(h.shape, w2.shape,
                                     ("NCHW", "OIHW", "NCHW"))
    h = lax.conv_general_dilated(h, w2, (1, 1), "VALID",
                                 dimension_numbers=dn2)
    return jnp.maximum(h + b2.reshape(1, -1, 1, 1), 0.0)


if __name__ == "__main__":
    B, in_ch, out_ch, H, W = 2, 4, 8, 16, 16
    key = jax.random.PRNGKey(0)
    kx, kt, kp = jax.random.split(key, 3)

    x = jax.random.normal(kx, (B, in_ch, H, W), jnp.float32)
    t = jax.random.normal(kt, (B, 1), jnp.float32)
    params = init_params(kp, in_ch, out_ch)

    y_ref = reference_forward(x, t, params)

    # Default path: bf16 MXU operands (v6e/v7x throughput), f32 accumulation.
    fwd_bf16 = jax.jit(functools.partial(block_forward,
                                         matmul_dtype=jnp.bfloat16))
    y = jax.block_until_ready(fwd_bf16(x, t, params))
    assert y.shape == (B, out_ch, H - 4, W - 4), y.shape
    err_bf16 = float(jnp.max(jnp.abs(y - y_ref)))
    assert jnp.allclose(y, y_ref, atol=3e-2, rtol=3e-2), err_bf16

    # Exactness path: f32 MXU operands, tight tolerance.
    fwd_f32 = jax.jit(functools.partial(block_forward,
                                        matmul_dtype=jnp.float32))
    y32 = jax.block_until_ready(fwd_f32(x, t, params))
    err_f32 = float(jnp.max(jnp.abs(y32 - y_ref)))
    assert jnp.allclose(y32, y_ref, atol=1e-4, rtol=1e-4), err_f32

    print("KERNEL_OK")
</pallas_src>

<mosaic_0001>
module attributes {stable_mosaic.version = 11 : i64} {
  func.func @_block_kernel(%arg0: i32, %arg1: memref<1x14x14x128xbf16, #tpu.memory_space<vmem>>, %arg2: memref<1x1x1xf32, #tpu.memory_space<vmem>>, %arg3: memref<128x128xbf16, #tpu.memory_space<vmem>>, %arg4: memref<1x128xf32, #tpu.memory_space<vmem>>, %arg5: memref<9x128x128xbf16, #tpu.memory_space<vmem>>, %arg6: memref<1x128xf32, #tpu.memory_space<vmem>>, %arg7: memref<1x128xf32, #tpu.memory_space<vmem>>, %arg8: memref<1x128xf32, #tpu.memory_space<vmem>>, %arg9: memref<1x12x12x8xf32, #tpu.memory_space<vmem>>) attributes {dimension_semantics = [#tpu.dimension_semantics<parallel>], iteration_bounds = array<i64: 2>, scalar_prefetch = 0 : i64, scratch_operands = 0 : i64, tpu.core_type = #tpu.core_type<tc>, window_params = [{transform_indices = @transform_0, window_bounds = array<i64: 1, 14, 14, 128>}, {transform_indices = @transform_1, window_bounds = array<i64: 1, 1, 1>}, {pipeline_mode = #tpu.pipeline_mode<synchronous>, transform_indices = @transform_2, window_bounds = array<i64: 128, 128>}, {pipeline_mode = #tpu.pipeline_mode<synchronous>, transform_indices = @transform_3, window_bounds = array<i64: 1, 128>}, {pipeline_mode = #tpu.pipeline_mode<synchronous>, transform_indices = @transform_4, window_bounds = array<i64: 9, 128, 128>}, {pipeline_mode = #tpu.pipeline_mode<synchronous>, transform_indices = @transform_5, window_bounds = array<i64: 1, 128>}, {pipeline_mode = #tpu.pipeline_mode<synchronous>, transform_indices = @transform_6, window_bounds = array<i64: 1, 128>}, {pipeline_mode = #tpu.pipeline_mode<synchronous>, transform_indices = @transform_7, window_bounds = array<i64: 1, 128>}, {transform_indices = @transform_8, window_bounds = array<i64: 1, 12, 12, 8>}]} {
    %c0 = arith.constant 0 : index
    %c0_0 = arith.constant 0 : index
    %c0_1 = arith.constant 0 : index
    %c0_2 = arith.constant 0 : index
    %0 = vector.load %arg1[%c0, %c0_0, %c0_1, %c0_2] : memref<1x14x14x128xbf16, #tpu.memory_space<vmem>>, vector<1x14x14x128xbf16>
    %1 = vector.shape_cast %0 : vector<1x14x14x128xbf16> to vector<14x14x128xbf16>
    %c0_3 = arith.constant 0 : index
    %c0_4 = arith.constant 0 : index
    %2 = vector.load %arg3[%c0_3, %c0_4] : memref<128x128xbf16, #tpu.memory_space<vmem>>, vector<128x128xbf16>
    %cst = arith.constant dense<0.000000e+00> : vector<14x14x128xf32>
    %3 = tpu.matmul %1, %2, %cst {dimension_numbers = #tpu.dot_dimension_numbers<[2], [0], [0, 1], [1], [0, 0, 0, 1, 1, 1], [], []>} : vector<14x14x128xbf16>, vector<128x128xbf16>, vector<14x14x128xf32> -> vector<14x14x128xf32>
    %4 = vector.shape_cast %3 : vector<14x14x128xf32> to vector<1x14x14x128xf32>
    %c0_5 = arith.constant 0 : index
    %c0_6 = arith.constant 0 : index
    %c0_7 = arith.constant 0 : index
    %5 = vector.load %arg2[%c0_5, %c0_6, %c0_7] : memref<1x1x1xf32, #tpu.memory_space<vmem>>, vector<1x1x1xf32>
    %c0_8 = arith.constant 0 : index
    %c0_9 = arith.constant 0 : index
    %6 = vector.load %arg7[%c0_8, %c0_9] : memref<1x128xf32, #tpu.memory_space<vmem>>, vector<1x128xf32>
    %7 = vector.shape_cast %6 : vector<1x128xf32> to vector<1x1x128xf32>
    %8 = vector.broadcast %5 : vector<1x1x1xf32> to vector<1x1x128xf32>
    %9 = arith.mulf %8, %7 : vector<1x1x128xf32>
    %c0_10 = arith.constant 0 : index
    %c0_11 = arith.constant 0 : index
    %10 = vector.load %arg8[%c0_10, %c0_11] : memref<1x128xf32, #tpu.memory_space<vmem>>, vector<1x128xf32>
    %11 = vector.shape_cast %10 : vector<1x128xf32> to vector<1x1x128xf32>
    %12 = arith.addf %9, %11 : vector<1x1x128xf32>
    %c0_12 = arith.constant 0 : index
    %c0_13 = arith.constant 0 : index
    %13 = vector.load %arg4[%c0_12, %c0_13] : memref<1x128xf32, #tpu.memory_space<vmem>>, vector<1x128xf32>
    %14 = vector.shape_cast %13 : vector<1x128xf32> to vector<1x1x1x128xf32>
    %15 = vector.broadcast %14 : vector<1x1x1x128xf32> to vector<1x14x14x128xf32>
    %16 = arith.addf %4, %15 : vector<1x14x14x128xf32>
    %cst_14 = arith.constant 0.000000e+00 : f32
    %17 = vector.broadcast %cst_14 : f32 to vector<1x14x14x128xf32>
    %18 = arith.maximumf %16, %17 : vector<1x14x14x128xf32>
    %19 = vector.shape_cast %12 : vector<1x1x128xf32> to vector<1x1x1x128xf32>
    %20 = vector.broadcast %19 : vector<1x1x1x128xf32> to vector<1x14x14x128xf32>
    %21 = arith.addf %18, %20 : vector<1x14x14x128xf32>
    %22 = arith.truncf %21 : vector<1x14x14x128xf32> to vector<1x14x14x128xbf16>
    %23 = vector.extract_strided_slice %22 {offsets = [0, 0, 0, 0], sizes = [1, 12, 12, 128], strides = [1, 1, 1, 1]} : vector<1x14x14x128xbf16> to vector<1x12x12x128xbf16>
    %24 = vector.shape_cast %23 : vector<1x12x12x128xbf16> to vector<12x12x128xbf16>
    %c0_15 = arith.constant 0 : index
    %c0_16 = arith.constant 0 : index
    %c0_17 = arith.constant 0 : index
    %25 = vector.load %arg5[%c0_15, %c0_16, %c0_17] : memref<9x128x128xbf16, #tpu.memory_space<vmem>>, vector<1x128x128xbf16>
    %26 = vector.shape_cast %25 : vector<1x128x128xbf16> to vector<128x128xbf16>
    %cst_18 = arith.constant dense<0.000000e+00> : vector<12x12x128xf32>
    %27 = tpu.matmul %24, %26, %cst_18 {dimension_numbers = #tpu.dot_dimension_numbers<[2], [0], [0, 1], [1], [0, 0, 0, 1, 1, 1], [], []>} : vector<12x12x128xbf16>, vector<128x128xbf16>, vector<12x12x128xf32> -> vector<12x12x128xf32>
    %28 = vector.extract_strided_slice %22 {offsets = [0, 0, 1, 0], sizes = [1, 12, 12, 128], strides = [1, 1, 1, 1]} : vector<1x14x14x128xbf16> to vector<1x12x12x128xbf16>
    %29 = vector.shape_cast %28 : vector<1x12x12x128xbf16> to vector<12x12x128xbf16>
    %c1 = arith.constant 1 : index
    %c0_19 = arith.constant 0 : index
    %c0_20 = arith.constant 0 : index
    %30 = vector.load %arg5[%c1, %c0_19, %c0_20] : memref<9x128x128xbf16, #tpu.memory_space<vmem>>, vector<1x128x128xbf16>
    %31 = vector.shape_cast %30 : vector<1x128x128xbf16> to vector<128x128xbf16>
    %cst_21 = arith.constant dense<0.000000e+00> : vector<12x12x128xf32>
    %32 = tpu.matmul %29, %31, %cst_21 {dimension_numbers = #tpu.dot_dimension_numbers<[2], [0], [0, 1], [1], [0, 0, 0, 1, 1, 1], [], []>} : vector<12x12x128xbf16>, vector<128x128xbf16>, vector<12x12x128xf32> -> vector<12x12x128xf32>
    %33 = arith.addf %27, %32 : vector<12x12x128xf32>
    %34 = vector.extract_strided_slice %22 {offsets = [0, 0, 2, 0], sizes = [1, 12, 12, 128], strides = [1, 1, 1, 1]} : vector<1x14x14x128xbf16> to vector<1x12x12x128xbf16>
    %35 = vector.shape_cast %34 : vector<1x12x12x128xbf16> to vector<12x12x128xbf16>
    %c2 = arith.constant 2 : index
    %c0_22 = arith.constant 0 : index
    %c0_23 = arith.constant 0 : index
    %36 = vector.load %arg5[%c2, %c0_22, %c0_23] : memref<9x128x128xbf16, #tpu.memory_space<vmem>>, vector<1x128x128xbf16>
    %37 = vector.shape_cast %36 : vector<1x128x128xbf16> to vector<128x128xbf16>
    %cst_24 = arith.constant dense<0.000000e+00> : vector<12x12x128xf32>
    %38 = tpu.matmul %35, %37, %cst_24 {dimension_numbers = #tpu.dot_dimension_numbers<[2], [0], [0, 1], [1], [0, 0, 0, 1, 1, 1], [], []>} : vector<12x12x128xbf16>, vector<128x128xbf16>, vector<12x12x128xf32> -> vector<12x12x128xf32>
    %39 = arith.addf %33, %38 : vector<12x12x128xf32>
    %40 = vector.extract_strided_slice %22 {offsets = [0, 1, 0, 0], sizes = [1, 12, 12, 128], strides = [1, 1, 1, 1]} : vector<1x14x14x128xbf16> to vector<1x12x12x128xbf16>
    %41 = vector.shape_cast %40 : vector<1x12x12x128xbf16> to vector<12x12x128xbf16>
    %c3 = arith.constant 3 : index
    %c0_25 = arith.constant 0 : index
    %c0_26 = arith.constant 0 : index
    %42 = vector.load %arg5[%c3, %c0_25, %c0_26] : memref<9x128x128xbf16, #tpu.memory_space<vmem>>, vector<1x128x128xbf16>
    %43 = vector.shape_cast %42 : vector<1x128x128xbf16> to vector<128x128xbf16>
    %cst_27 = arith.constant dense<0.000000e+00> : vector<12x12x128xf32>
    %44 = tpu.matmul %41, %43, %cst_27 {dimension_numbers = #tpu.dot_dimension_numbers<[2], [0], [0, 1], [1], [0, 0, 0, 1, 1, 1], [], []>} : vector<12x12x128xbf16>, vector<128x128xbf16>, vector<12x12x128xf32> -> vector<12x12x128xf32>
    %45 = arith.addf %39, %44 : vector<12x12x128xf32>
    %46 = vector.extract_strided_slice %22 {offsets = [0, 1, 1, 0], sizes = [1, 12, 12, 128], strides = [1, 1, 1, 1]} : vector<1x14x14x128xbf16> to vector<1x12x12x128xbf16>
    %47 = vector.shape_cast %46 : vector<1x12x12x128xbf16> to vector<12x12x128xbf16>
    %c4 = arith.constant 4 : index
    %c0_28 = arith.constant 0 : index
    %c0_29 = arith.constant 0 : index
    %48 = vector.load %arg5[%c4, %c0_28, %c0_29] : memref<9x128x128xbf16, #tpu.memory_space<vmem>>, vector<1x128x128xbf16>
    %49 = vector.shape_cast %48 : vector<1x128x128xbf16> to vector<128x128xbf16>
    %cst_30 = arith.constant dense<0.000000e+00> : vector<12x12x128xf32>
    %50 = tpu.matmul %47, %49, %cst_30 {dimension_numbers = #tpu.dot_dimension_numbers<[2], [0], [0, 1], [1], [0, 0, 0, 1, 1, 1], [], []>} : vector<12x12x128xbf16>, vector<128x128xbf16>, vector<12x12x128xf32> -> vector<12x12x128xf32>
    %51 = arith.addf %45, %50 : vector<12x12x128xf32>
    %52 = vector.extract_strided_slice %22 {offsets = [0, 1, 2, 0], sizes = [1, 12, 12, 128], strides = [1, 1, 1, 1]} : vector<1x14x14x128xbf16> to vector<1x12x12x128xbf16>
    %53 = vector.shape_cast %52 : vector<1x12x12x128xbf16> to vector<12x12x128xbf16>
    %c5 = arith.constant 5 : index
    %c0_31 = arith.constant 0 : index
    %c0_32 = arith.constant 0 : index
    %54 = vector.load %arg5[%c5, %c0_31, %c0_32] : memref<9x128x128xbf16, #tpu.memory_space<vmem>>, vector<1x128x128xbf16>
    %55 = vector.shape_cast %54 : vector<1x128x128xbf16> to vector<128x128xbf16>
    %cst_33 = arith.constant dense<0.000000e+00> : vector<12x12x128xf32>
    %56 = tpu.matmul %53, %55, %cst_33 {dimension_numbers = #tpu.dot_dimension_numbers<[2], [0], [0, 1], [1], [0, 0, 0, 1, 1, 1], [], []>} : vector<12x12x128xbf16>, vector<128x128xbf16>, vector<12x12x128xf32> -> vector<12x12x128xf32>
    %57 = arith.addf %51, %56 : vector<12x12x128xf32>
    %58 = vector.extract_strided_slice %22 {offsets = [0, 2, 0, 0], sizes = [1, 12, 12, 128], strides = [1, 1, 1, 1]} : vector<1x14x14x128xbf16> to vector<1x12x12x128xbf16>
    %59 = vector.shape_cast %58 : vector<1x12x12x128xbf16> to vector<12x12x128xbf16>
    %c6 = arith.constant 6 : index
    %c0_34 = arith.constant 0 : index
    %c0_35 = arith.constant 0 : index
    %60 = vector.load %arg5[%c6, %c0_34, %c0_35] : memref<9x128x128xbf16, #tpu.memory_space<vmem>>, vector<1x128x128xbf16>
    %61 = vector.shape_cast %60 : vector<1x128x128xbf16> to vector<128x128xbf16>
    %cst_36 = arith.constant dense<0.000000e+00> : vector<12x12x128xf32>
    %62 = tpu.matmul %59, %61, %cst_36 {dimension_numbers = #tpu.dot_dimension_numbers<[2], [0], [0, 1], [1], [0, 0, 0, 1, 1, 1], [], []>} : vector<12x12x128xbf16>, vector<128x128xbf16>, vector<12x12x128xf32> -> vector<12x12x128xf32>
    %63 = arith.addf %57, %62 : vector<12x12x128xf32>
    %64 = vector.extract_strided_slice %22 {offsets = [0, 2, 1, 0], sizes = [1, 12, 12, 128], strides = [1, 1, 1, 1]} : vector<1x14x14x128xbf16> to vector<1x12x12x128xbf16>
    %65 = vector.shape_cast %64 : vector<1x12x12x128xbf16> to vector<12x12x128xbf16>
    %c7 = arith.constant 7 : index
    %c0_37 = arith.constant 0 : index
    %c0_38 = arith.constant 0 : index
    %66 = vector.load %arg5[%c7, %c0_37, %c0_38] : memref<9x128x128xbf16, #tpu.memory_space<vmem>>, vector<1x128x128xbf16>
    %67 = vector.shape_cast %66 : vector<1x128x128xbf16> to vector<128x128xbf16>
    %cst_39 = arith.constant dense<0.000000e+00> : vector<12x12x128xf32>
    %68 = tpu.matmul %65, %67, %cst_39 {dimension_numbers = #tpu.dot_dimension_numbers<[2], [0], [0, 1], [1], [0, 0, 0, 1, 1, 1], [], []>} : vector<12x12x128xbf16>, vector<128x128xbf16>, vector<12x12x128xf32> -> vector<12x12x128xf32>
    %69 = arith.addf %63, %68 : vector<12x12x128xf32>
    %70 = vector.extract_strided_slice %22 {offsets = [0, 2, 2, 0], sizes = [1, 12, 12, 128], strides = [1, 1, 1, 1]} : vector<1x14x14x128xbf16> to vector<1x12x12x128xbf16>
    %71 = vector.shape_cast %70 : vector<1x12x12x128xbf16> to vector<12x12x128xbf16>
    %c8 = arith.constant 8 : index
    %c0_40 = arith.constant 0 : index
    %c0_41 = arith.constant 0 : index
    %72 = vector.load %arg5[%c8, %c0_40, %c0_41] : memref<9x128x128xbf16, #tpu.memory_space<vmem>>, vector<1x128x128xbf16>
    %73 = vector.shape_cast %72 : vector<1x128x128xbf16> to vector<128x128xbf16>
    %cst_42 = arith.constant dense<0.000000e+00> : vector<12x12x128xf32>
    %74 = tpu.matmul %71, %73, %cst_42 {dimension_numbers = #tpu.dot_dimension_numbers<[2], [0], [0, 1], [1], [0, 0, 0, 1, 1, 1], [], []>} : vector<12x12x128xbf16>, vector<128x128xbf16>, vector<12x12x128xf32> -> vector<12x12x128xf32>
    %75 = arith.addf %69, %74 : vector<12x12x128xf32>
    %76 = vector.shape_cast %75 : vector<12x12x128xf32> to vector<1x12x12x128xf32>
    %c0_43 = arith.constant 0 : index
    %c0_44 = arith.constant 0 : index
    %77 = vector.load %arg6[%c0_43, %c0_44] : memref<1x128xf32, #tpu.memory_space<vmem>>, vector<1x128xf32>
    %78 = vector.shape_cast %77 : vector<1x128xf32> to vector<1x1x1x128xf32>
    %79 = vector.broadcast %78 : vector<1x1x1x128xf32> to vector<1x12x12x128xf32>
    %80 = arith.addf %76, %79 : vector<1x12x12x128xf32>
    %cst_45 = arith.constant 0.000000e+00 : f32
    %81 = vector.broadcast %cst_45 : f32 to vector<1x12x12x128xf32>
    %82 = arith.maximumf %80, %81 : vector<1x12x12x128xf32>
    %83 = vector.extract_strided_slice %82 {offsets = [0, 0, 0, 0], sizes = [1, 12, 12, 8], strides = [1, 1, 1, 1]} : vector<1x12x12x128xf32> to vector<1x12x12x8xf32>
    %c0_46 = arith.constant 0 : index
    %c0_47 = arith.constant 0 : index
    %c0_48 = arith.constant 0 : index
    %c0_49 = arith.constant 0 : index
    %84 = vector.load %arg9[%c0_46, %c0_47, %c0_48, %c0_49] : memref<1x12x12x8xf32, #tpu.memory_space<vmem>>, vector<1x12x12x8xf32>
    tpu.vector_store %arg9[%c0_46, %c0_47, %c0_48, %c0_49], %83 {strides = array<i32>} : memref<1x12x12x8xf32, #tpu.memory_space<vmem>>, vector<1x12x12x8xf32>,
    return
  }
  func.func @transform_0(%arg0: i32) -> (i32, i32, i32, i32) {
    %c0_i32 = arith.constant 0 : i32
    %c0_i32_0 = arith.constant 0 : i32
    %c0_i32_1 = arith.constant 0 : i32
    %c0_i32_2 = arith.constant 0 : i32
    return %arg0, %c0_i32, %c0_i32_0, %c0_i32_1 : i32, i32, i32, i32
  }
  func.func @transform_1(%arg0: i32) -> (i32, i32, i32) {
    %c0_i32 = arith.constant 0 : i32
    %c0_i32_0 = arith.constant 0 : i32
    %c0_i32_1 = arith.constant 0 : i32
    return %arg0, %c0_i32, %c0_i32_0 : i32, i32, i32
  }
  func.func @transform_2(%arg0: i32) -> (i32, i32) {
    %c0_i32 = arith.constant 0 : i32
    %c0_i32_0 = arith.constant 0 : i32
    %c0_i32_1 = arith.constant 0 : i32
    return %c0_i32, %c0_i32_0 : i32, i32
  }
  func.func @transform_3(%arg0: i32) -> (i32, i32) {
    %c0_i32 = arith.constant 0 : i32
    %c0_i32_0 = arith.constant 0 : i32
    %c0_i32_1 = arith.constant 0 : i32
    return %c0_i32, %c0_i32_0 : i32, i32
  }
  func.func @transform_4(%arg0: i32) -> (i32, i32, i32) {
    %c0_i32 = arith.constant 0 : i32
    %c0_i32_0 = arith.constant 0 : i32
    %c0_i32_1 = arith.constant 0 : i32
    %c0_i32_2 = arith.constant 0 : i32
    return %c0_i32, %c0_i32_0, %c0_i32_1 : i32, i32, i32
  }
  func.func @transform_5(%arg0: i32) -> (i32, i32) {
    %c0_i32 = arith.constant 0 : i32
    %c0_i32_0 = arith.constant 0 : i32
    %c0_i32_1 = arith.constant 0 : i32
    return %c0_i32, %c0_i32_0 : i32, i32
  }
  func.func @transform_6(%arg0: i32) -> (i32, i32) {
    %c0_i32 = arith.constant 0 : i32
    %c0_i32_0 = arith.constant 0 : i32
    %c0_i32_1 = arith.constant 0 : i32
    return %c0_i32, %c0_i32_0 : i32, i32
  }
  func.func @transform_7(%arg0: i32) -> (i32, i32) {
    %c0_i32 = arith.constant 0 : i32
    %c0_i32_0 = arith.constant 0 : i32
    %c0_i32_1 = arith.constant 0 : i32
    return %c0_i32, %c0_i32_0 : i32, i32
  }
  func.func @transform_8(%arg0: i32) -> (i32, i32, i32, i32) {
    %c0_i32 = arith.constant 0 : i32
    %c0_i32_0 = arith.constant 0 : i32
    %c0_i32_1 = arith.constant 0 : i32
    %c0_i32_2 = arith.constant 0 : i32
    return %arg0, %c0_i32, %c0_i32_0, %c0_i32_1 : i32, i32, i32, i32
  }
}

</mosaic_0001>

<bundles_post_ra>
// kernel: block_forward.1
= control target key start
LH: loop header
LB: loop body
LE: loop exit
PB: predicated region body
PF: predicated region fallthrough
CT: control target
= control target key end

     0   :  { %s5993_s27 = smov 0   ;;  %s8606_s0 = inlined_call_operand.vmem [shape: bf16[2,14,14,128], index: 0, kind: input, shape index: {}]   ;;  %s8607_s1 = inlined_call_operand.vmem [shape: f32[2,1,1], index: 1, kind: input, shape index: {}]   ;;  %s8608_s2 = inlined_call_operand.vmem [shape: bf16[128,128], index: 2, kind: input, shape index: {}]   ;;  %s8609_s3 = inlined_call_operand.vmem [shape: f32[1,128], index: 3, kind: input, shape index: {}]   ;;  %s8610_s4 = inlined_call_operand.vmem [shape: bf16[9,128,128], index: 4, kind: input, shape index: {}]   ;;  %s8611_s5 = inlined_call_operand.vmem [shape: f32[1,128], index: 5, kind: input, shape index: {}]   ;;  %s8612_s6 = inlined_call_operand.vmem [shape: f32[1,128], index: 6, kind: input, shape index: {}]   ;;  %s8613_s7 = inlined_call_operand.vmem [shape: f32[1,128], index: 7, kind: input, shape index: {}]   ;;  %s8614_s8 = inlined_call_operand.vmem [shape: f32[2,12,12,8], index: 8, kind: output, shape index: {}]  }
   0x1 LB: > { %s5357_s28 = sadd.s32 4294967295, %s5945_s27   ;;  %p5361_p0 = scmp.ge.s32.totalorder %s5945_s27, 1  ;;  %s5945_s27 = sphi %s5993_s27, %s18_s27  }
   0x2   : > { %p270_p1 = scmp.lt.s32.totalorder %s5945_s27, 3 }
   0x4   : > { %p271_p2 = pnand %p5361_p0, %p270_p1 }
   0x6   : > { %274 = sbr.rel (%p271_p2) target bundleno = 1241 (0x4d9), region = 52 }
   0xb   : > { %v5835_v0 = vld [vmem:[%s8608_s2 + $0x38] sm:$0xff]  ;;  %p307_p3 = scmp.lt.s32.totalorder %s5357_s28, 1  ;;  %v5834_v1 = vld [vmem:[%s8608_s2 + $0x30] sm:$0xff]  ;;  %v5947_v2 = vmov 0   ;;  %v5833_v4 = vld [vmem:[%s8608_s2 + $0x28] sm:$0xff]  ;;  %vm420_vm0 = vcmask 1040384  }
   0xc   : > { %967 = vmatpush.bf16.msra.mxu0 %v5835_v0  ;;  %5935 = vset.pattern.permute.xlu0 %v5947_v2  ;;  %vm424_vm1 = vcmask 1041409   ;;  %vm428_vm2 = vcmask 1042434   ;;  %vm432_vm3 = vcmask 1043459   ;;  %v5832_v11 = vld [vmem:[%s8608_s2 + $0x20] sm:$0xff]  ;;  %v5831_v24 = vld [vmem:[%s8608_s2 + $0x18] sm:$0xff]  ;;  %v5830_v27 = vld [vmem:[%s8608_s2 + $0x10] sm:$0xff] }
   0xd   : > { %s9140_s28 = smov (!%p307_p3, %s5357_s28), 1  ;;  %v5829_v33 = vld [vmem:[%s8608_s2 + $0x8] sm:$0xff]  ;;  %v5828_v41 = vld [vmem:[%s8608_s2] sm:$0xff]  ;;  %vm1902_vm4 = vcmask 1041408   ;;  %vm1906_vm5 = vcmask 1043458   ;;  %vm2898_vm13 = vmor %vm420_vm0, %vm428_vm2  ;;  %vm2899_vm14 = vcmask 1044484  }
   0xe   : > { %s5924_s11 = smul.u32 112, %s9140_s28  ;;  %s314_s14 = scalar_lea.vmem %s8607_s1, %s9140_s28  ;;  %vm2048_vm6 = vsmask.f32 1280  ;;  %vm2049_vm7 = vsmask.f32 3336  ;;  %vm2900_vm15 = vmor %vm2898_vm13, %vm2899_vm14 }
   0xf   : > { %v1211_v3 = vld [vmem:[%s314_s14] sm:$0x1]  ;;  %vm2051_vm8 = vsmask.f32 5392  ;;  %vm2053_vm9 = vsmask.f32 7448  ;;  %vm6541_vm10 = vmor %vm2048_vm6, %vm2049_vm7 }
  0x10   : > { %968 = vmatpush.bf16.msra.mxu0 %v5834_v1  ;;  %s6020_s19 = scalar_lea.vmem %s8606_s0, %s5924_s11  ;;  %1215 = vperm.xlu0 %5935, %v1211_v3   ;;  %vm2052_vm11 = vmor %vm6541_vm10, %vm2051_vm8  ;;  %s5925_s24 = smul.u32 192, %s9140_s28 }
  0x11   : > { %v320_v5 = vld [vmem:[%s6020_s19] sm:$0xf]  ;;  %v321_v6 = vld [vmem:[%s6020_s19 + $0x4] sm:$0x7]  ;;  %v322_v7 = vld [vmem:[%s6020_s19 + $0x8] sm:$0xf] }
  0x12   : > { %v392_v8 = vrot.slane %v320_v5, 3  ;;  %v393_v9 = vrot.slane %v321_v6, 3  ;;  %v394_v10 = vrot.slane %v322_v7, 3  ;;  %v323_v26 = vld [vmem:[%s6020_s19 + $0xc] sm:$0x7]  ;;  %vm6569_vm12 = vmor %vm2052_vm11, %vm2053_vm9  ;;  %s8382_s26 = scalar_lea.vmem %s8614_s8, %s5925_s24 }
  0x13   : > { %v324_v28 = vld [vmem:[%s6020_s19 + $0x10] sm:$0xf]  ;;  %v395_v29 = vrot.slane %v323_v26, 3  ;;  %v325_v48 = vld [vmem:[%s6020_s19 + $0x14] sm:$0x7] }
  0x14   : > { %969 = vmatpush.bf16.msra.mxu0 %v5833_v4  ;;  %v423_v12 = vsel %vm420_vm0, %v320_v5, %v392_v8  ;;  %v425_v13 = vsel %vm424_vm1, %v320_v5, %v392_v8  ;;  %v429_v14 = vsel %vm428_vm2, %v320_v5, %v392_v8  ;;  %v433_v15 = vsel %vm432_vm3, %v320_v5, %v392_v8  ;;  %v326_v49 = vld [vmem:[%s6020_s19 + $0x18] sm:$0xf]  ;;  %v327_v3 = vld [vmem:[%s6020_s19 + $0x1c] sm:$0x7]  ;;  %v328_v4 = vld [vmem:[%s6020_s19 + $0x20] sm:$0xf] }
  0x15   : > { %v427_v16 = vrot.slane %v425_v13, 1  ;;  %v431_v17 = vrot.slane %v429_v14, 2  ;;  %v435_v18 = vrot.slane %v433_v15, 3  ;;  %v438_v19 = vsel %vm420_vm0, %v321_v6, %v393_v9  ;;  %718 = vst [vmem:[#allocation1] ss:$9 sm:$0xff] %v423_v12 }
  0x16   : > { %v439_v20 = vsel %vm424_vm1, %v321_v6, %v393_v9  ;;  %v442_v21 = vsel %vm428_vm2, %v321_v6, %v393_v9  ;;  %729 = vst [vmem:[#allocation1 + $0x4] ss:$9 sm:$0xff] %v438_v19  ;;  %v447_v25 = vsel %vm420_vm0, %v322_v7, %v394_v10  ;;  %v448_v30 = vsel %vm424_vm1, %v322_v7, %v394_v10 }
  0x17   : > { %v441_v22 = vrot.slane %v439_v20, 1  ;;  %v444_v23 = vrot.slane %v442_v21, 2  ;;  %721 = vst [vmem:[#allocation1 + $0x1] ss:$9 sm:$0xff] %v427_v16  ;;  %v451_v31 = vsel %vm428_vm2, %v322_v7, %v394_v10  ;;  %v454_v32 = vsel %vm432_vm3, %v322_v7, %v394_v10  ;;  %v329_v21 = vld [vmem:[%s6020_s19 + $0x24] sm:$0x7] }
  0x18   : > { %970 = vmatpush.bf16.msra.mxu0 %v5832_v11  ;;  %724 = vst [vmem:[#allocation1 + $0x2] ss:$9 sm:$0xff] %v431_v17  ;;  %v396_v34 = vrot.slane %v324_v28, 3  ;;  %v450_v35 = vrot.slane %v448_v30, 1  ;;  %v453_v36 = vrot.slane %v451_v31, 2  ;;  %v460_v37 = vsel %vm424_vm1, %v323_v26, %v395_v29 }
  0x19   : > { %727 = vst [vmem:[#allocation1 + $0x3] ss:$9 sm:$0xff] %v435_v18  ;;  %v456_v38 = vrot.slane %v454_v32, 3  ;;  %v463_v39 = vsel %vm428_vm2, %v323_v26, %v395_v29  ;;  %v459_v42 = vsel %vm420_vm0, %v323_v26, %v395_v29  ;;  %v462_v43 = vrot.slane %v460_v37, 1 }
  0x1a   : > { %732 = vst [vmem:[#allocation1 + $0x5] ss:$9 sm:$0xff] %v441_v22  ;;  %v469_v44 = vsel %vm424_vm1, %v324_v28, %v396_v34  ;;  %v465_v45 = vrot.slane %v463_v39, 2  ;;  %v468_v46 = vsel %vm420_vm0, %v324_v28, %v396_v34  ;;  %v397_v50 = vrot.slane %v325_v48, 3 }
  0x1b   : > { %735 = vst [vmem:[#allocation1 + $0x6] ss:$9 sm:$0xff] %v444_v23  ;;  %v471_v47 = vrot.slane %v469_v44, 1  ;;  %v472_v51 = vsel %vm428_vm2, %v324_v28, %v396_v34  ;;  %v475_v52 = vsel %vm432_vm3, %v324_v28, %v396_v34  ;;  %v398_v53 = vrot.slane %v326_v49, 3  ;;  %v330_v23 = vld [vmem:[%s6020_s19 + $0x28] sm:$0xf] }
  0x1c   : > { %971 = vmatpush.bf16.msra.mxu0 %v5831_v24  ;;  %737 = vst [vmem:[#allocation1 + $0x7] ss:$9 sm:$0xff] %v447_v25  ;;  %v474_v54 = vrot.slane %v472_v51, 2  ;;  %v481_v55 = vsel %vm424_vm1, %v325_v48, %v397_v50  ;;  %v477_v56 = vrot.slane %v475_v52, 3  ;;  %v484_v57 = vsel %vm428_vm2, %v325_v48, %v397_v50  ;;  %v331_v28 = vld [vmem:[%s6020_s19 + $0x2c] sm:$0x7] }
  0x1d   : > { %v480_v59 = vsel %vm420_vm0, %v325_v48, %v397_v50  ;;  %v483_v60 = vrot.slane %v481_v55, 1  ;;  %v490_v61 = vsel %vm424_vm1, %v326_v49, %v398_v53  ;;  %v486_v62 = vrot.slane %v484_v57, 2  ;;  %v333_v44 = vld [vmem:[%s6020_s19 + $0x34] sm:$0x7] }
  0x1e   : > { %v493_v63 = vsel %vm428_vm2, %v326_v49, %v398_v53  ;;  %v489_v0 = vsel %vm420_vm0, %v326_v49, %v398_v53  ;;  %v492_v1 = vrot.slane %v490_v61, 1  ;;  %v399_v5 = vrot.slane %v327_v3, 3  ;;  %v334_v61 = vld [vmem:[%s6020_s19 + $0x38] sm:$0xf] }
  0x1f   : > { %v495_v2 = vrot.slane %v493_v63, 2  ;;  %v496_v6 = vsel %vm432_vm3, %v326_v49, %v398_v53  ;;  %v400_v7 = vrot.slane %v328_v4, 3  ;;  %v401_v24 = vrot.slane %v329_v21, 3  ;;  %v335_v63 = vld [vmem:[%s6020_s19 + $0x3c] sm:$0x7] }
  0x20   : > { %972 = vmatpush.bf16.msra.mxu0 %v5830_v27  ;;  %v502_v8 = vsel %vm424_vm1, %v327_v3, %v399_v5  ;;  %v498_v9 = vrot.slane %v496_v6, 3  ;;  %v505_v10 = vsel %vm428_vm2, %v327_v3, %v399_v5  ;;  %v501_v11 = vsel %vm420_vm0, %v327_v3, %v399_v5 }
  0x21   : > { %v504_v12 = vrot.slane %v502_v8, 1  ;;  %v511_v13 = vsel %vm424_vm1, %v328_v4, %v400_v7  ;;  %v507_v15 = vrot.slane %v505_v10, 2  ;;  %v514_v16 = vsel %vm428_vm2, %v328_v4, %v400_v7 }
  0x22   : > { %v517_v17 = vsel %vm432_vm3, %v328_v4, %v400_v7  ;;  %v510_v18 = vsel %vm420_vm0, %v328_v4, %v400_v7  ;;  %v513_v19 = vrot.slane %v511_v13, 1  ;;  %v516_v20 = vrot.slane %v514_v16, 2 }
  0x23   : > { %v738_v40 = vld [vmem:[#allocation1] sm:$0xff]  ;;  %v519_v22 = vrot.slane %v517_v17, 3  ;;  %v402_v25 = vrot.slane %v330_v23, 3  ;;  %v523_v26 = vsel %vm424_vm1, %v329_v21, %v401_v24  ;;  %v526_v27 = vsel %vm428_vm2, %v329_v21, %v401_v24 }
  0x24   : > { %973 = vmatpush.bf16.msra.mxu0 %v5829_v33  ;;  %740 = vst [vmem:[#allocation1] ss:$9 sm:$0xff] %v450_v35  ;;  %v522_v29 = vsel %vm420_vm0, %v329_v21, %v401_v24  ;;  %v525_v30 = vrot.slane %v523_v26, 1  ;;  %v528_v32 = vrot.slane %v526_v27, 2 }
  0x25   : > { %742 = vst [vmem:[#allocation1 + $0x1] ss:$9 sm:$0xff] %v453_v36  ;;  %v532_v31 = vsel %vm424_vm1, %v330_v23, %v402_v25  ;;  %v535_v33 = vsel %vm428_vm2, %v330_v23, %v402_v25  ;;  %v538_v35 = vsel %vm432_vm3, %v330_v23, %v402_v25  ;;  %v403_v36 = vrot.slane %v331_v28, 3 }
  0x26   : > { %744 = vst [vmem:[#allocation1 + $0x2] ss:$9 sm:$0xff] %v456_v38  ;;  %v531_v37 = vsel %vm420_vm0, %v330_v23, %v402_v25  ;;  %v534_v38 = vrot.slane %v532_v31, 1  ;;  %v537_v39 = vrot.slane %v535_v33, 2  ;;  %v338_v23 = vld [vmem:[%s6020_s19 + $0x48] sm:$0xf] }
  0x27   : > { %745 = vst [vmem:[#allocation1 + $0x3] ss:$9 sm:$0xff] %v459_v42  ;;  %v332_v42 = vld [vmem:[%s6020_s19 + $0x30] sm:$0xf]  ;;  %v410_v31 = vrot.slane %v338_v23, 3 }
  0x28   : > { %974 = vmatpush.bf16.msra.mxu0 %v5828_v41  ;;  %747 = vst [vmem:[#allocation1 + $0x4] ss:$9 sm:$0xff] %v462_v43  ;;  %v543_v41 = vsel %vm420_vm0, %v331_v28, %v403_v36  ;;  %v404_v43 = vrot.slane %v332_v42, 3 }
  0x29   : > { %749 = vst [vmem:[#allocation1 + $0x5] ss:$9 sm:$0xff] %v465_v45  ;;  %v544_v45 = vsel %vm424_vm1, %v331_v28, %v403_v36 }
  0x2a   : > { %750 = vst [vmem:[#allocation1 + $0x6] ss:$9 sm:$0xff] %v468_v46  ;;  %v547_v46 = vsel %vm428_vm2, %v331_v28, %v403_v36  ;;  %v546_v48 = vrot.slane %v544_v45, 1  ;;  %v553_v49 = vsel %vm424_vm1, %v332_v42, %v404_v43  ;;  %v556_v51 = vsel %vm428_vm2, %v332_v42, %v404_v43  ;;  %v339_v36 = vld [vmem:[%s6020_s19 + $0x4c] sm:$0x7] }
  0x2b   : > { %975 = vmatmul.bf16.vlgmr.msra.gmra.mxu0 %v738_v40  ;;  %752 = vst [vmem:[#allocation1 + $0x7] ss:$9 sm:$0xff] %v471_v47  ;;  %v540_v40 = vrot.slane %v538_v35, 3  ;;  %v405_v47 = vrot.slane %v333_v44, 3  ;;  %v549_v50 = vrot.slane %v547_v46, 2  ;;  %v559_v52 = vsel %vm432_vm3, %v332_v42, %v404_v43 }
  0x2c   : > { %v555_v55 = vrot.slane %v553_v49, 1  ;;  %v615_v35 = vsel %vm420_vm0, %v338_v23, %v410_v31 }
  0x2d   : > { %v565_v57 = vsel %vm424_vm1, %v333_v44, %v405_v47 }
  0x32   : > { %v753_v58 = vld [vmem:[#allocation1] sm:$0xff] }
  0x33   : > { %755 = vst [vmem:[#allocation1] ss:$9 sm:$0xff] %v474_v54  ;;  %v552_v54 = vsel %vm420_vm0, %v332_v42, %v404_v43 }
  0x34   : > { %757 = vst [vmem:[#allocation1 + $0x1] ss:$9 sm:$0xff] %v477_v56  ;;  %v558_v56 = vrot.slane %v556_v51, 2 }
  0x35   : > { %758 = vst [vmem:[#allocation1 + $0x2] ss:$9 sm:$0xff] %v480_v59  ;;  %v564_v59 = vsel %vm420_vm0, %v333_v44, %v405_v47 }
  0x36   : > { %760 = vst [vmem:[#allocation1 + $0x3] ss:$9 sm:$0xff] %v483_v60  ;;  %v567_v60 = vrot.slane %v565_v57, 1 }
  0x37   : > { %762 = vst [vmem:[#allocation1 + $0x4] ss:$9 sm:$0xff] %v486_v62  ;;  %v406_v62 = vrot.slane %v334_v61, 3 }
  0x38   : > { %763 = vst [vmem:[#allocation1 + $0x5] ss:$9 sm:$0xff] %v489_v0  ;;  %v568_v0 = vsel %vm428_vm2, %v333_v44, %v405_v47 }
  0x39   : > { %765 = vst [vmem:[#allocation1 + $0x6] ss:$9 sm:$0xff] %v492_v1  ;;  %v407_v1 = vrot.slane %v335_v63, 3  ;;  %v570_v3 = vrot.slane %v568_v0, 2  ;;  %v577_v4 = vsel %vm428_vm2, %v334_v61, %v406_v62  ;;  %v580_v5 = vsel %vm432_vm3, %v334_v61, %v406_v62 }
  0x3a   : > { %767 = vst [vmem:[#allocation1 + $0x7] ss:$9 sm:$0xff] %v495_v2  ;;  %v574_v2 = vsel %vm424_vm1, %v334_v61, %v406_v62  ;;  %v573_v6 = vsel %vm420_vm0, %v334_v61, %v406_v62 }
  0x3b   : > { %980 = vmatmul.bf16.gmra.mxu0 %v753_v58  ;;  %v561_v58 = vrot.slane %v559_v52, 3  ;;  %v576_v7 = vrot.slane %v574_v2, 1  ;;  %v586_v10 = vsel %vm424_vm1, %v335_v63, %v407_v1  ;;  %v585_v13 = vsel %vm420_vm0, %v335_v63, %v407_v1 }
  0x41   : > { %v768_v14 = vld [vmem:[#allocation1] sm:$0xff] }
  0x42   : > { %770 = vst [vmem:[#allocation1] ss:$9 sm:$0xff] %v498_v9  ;;  %v579_v9 = vrot.slane %v577_v4, 2 }
  0x43   : > { %771 = vst [vmem:[#allocation1 + $0x1] ss:$9 sm:$0xff] %v501_v11  ;;  %v582_v11 = vrot.slane %v580_v5, 3 }
  0x44   : > { %773 = vst [vmem:[#allocation1 + $0x2] ss:$9 sm:$0xff] %v504_v12  ;;  %v589_v12 = vsel %vm428_vm2, %v335_v63, %v407_v1 }
  0x45   : > { %775 = vst [vmem:[#allocation1 + $0x3] ss:$9 sm:$0xff] %v507_v15  ;;  %v336_v15 = vld [vmem:[%s6020_s19 + $0x40] sm:$0xf]  ;;  %v591_v16 = vrot.slane %v589_v12, 2 }
  0x46   : > { %776 = vst [vmem:[#allocation1 + $0x4] ss:$9 sm:$0xff] %v510_v18  ;;  %v408_v17 = vrot.slane %v336_v15, 3  ;;  %v337_v18 = vld [vmem:[%s6020_s19 + $0x44] sm:$0x7] }
  0x47   : > { %778 = vst [vmem:[#allocation1 + $0x5] ss:$9 sm:$0xff] %v513_v19  ;;  %v409_v19 = vrot.slane %v337_v18, 3 }
  0x48   : > { %780 = vst [vmem:[#allocation1 + $0x6] ss:$9 sm:$0xff] %v516_v20  ;;  %v595_v20 = vsel %vm424_vm1, %v336_v15, %v408_v17  ;;  %v598_v21 = vsel %vm428_vm2, %v336_v15, %v408_v17  ;;  %v594_v24 = vsel %vm420_vm0, %v336_v15, %v408_v17 }
  0x49   : > { %782 = vst [vmem:[#allocation1 + $0x7] ss:$9 sm:$0xff] %v519_v22  ;;  %v601_v22 = vsel %vm432_vm3, %v336_v15, %v408_v17  ;;  %v597_v25 = vrot.slane %v595_v20, 1  ;;  %v600_v26 = vrot.slane %v598_v21, 2  ;;  %v607_v27 = vsel %vm424_vm1, %v337_v18, %v409_v19 }
  0x4a   : > { %v609_v33 = vrot.slane %v607_v27, 1 }
  0x4b   : > { %985 = vmatmul.bf16.gmra.mxu0 %v768_v14  ;;  %v588_v14 = vrot.slane %v586_v10, 1 }
  0x50   : > { %v783_v34 = vld [vmem:[#allocation1] sm:$0xff] }
  0x51   : > { %784 = vst [vmem:[#allocation1] ss:$9 sm:$0xff] %v522_v29  ;;  %v603_v29 = vrot.slane %v601_v22, 3 }
  0x52   : > { %786 = vst [vmem:[#allocation1 + $0x1] ss:$9 sm:$0xff] %v525_v30  ;;  %v610_v30 = vsel %vm428_vm2, %v337_v18, %v409_v19 }
  0x53   : > { %788 = vst [vmem:[#allocation1 + $0x2] ss:$9 sm:$0xff] %v528_v32  ;;  %v606_v32 = vsel %vm420_vm0, %v337_v18, %v409_v19 }
  0x54   : > { %789 = vst [vmem:[#allocation1 + $0x3] ss:$9 sm:$0xff] %v531_v37  ;;  %v340_v37 = vld [vmem:[%s6020_s19 + $0x50] sm:$0xf] }
  0x55   : > { %791 = vst [vmem:[#allocation1 + $0x4] ss:$9 sm:$0xff] %v534_v38  ;;  %v411_v38 = vrot.slane %v339_v36, 3  ;;  %v412_v42 = vrot.slane %v340_v37, 3 }
  0x56   : > { %793 = vst [vmem:[#allocation1 + $0x5] ss:$9 sm:$0xff] %v537_v39  ;;  %v616_v39 = vsel %vm424_vm1, %v338_v23, %v410_v31 }
  0x57   : > { %795 = vst [vmem:[#allocation1 + $0x6] ss:$9 sm:$0xff] %v540_v40  ;;  %v619_v40 = vsel %vm428_vm2, %v338_v23, %v410_v31  ;;  %v618_v43 = vrot.slane %v616_v39, 1  ;;  %v628_v45 = vsel %vm424_vm1, %v339_v36, %v411_v38  ;;  %v631_v47 = vsel %vm428_vm2, %v339_v36, %v411_v38  ;;  %v1212_v39 = vld [vmem:[%s8612_s6] sm:$0x1] }
  0x58   : > { %796 = vst [vmem:[#allocation1 + $0x7] ss:$9 sm:$0xff] %v543_v41  ;;  %v622_v41 = vsel %vm432_vm3, %v338_v23, %v410_v31  ;;  %v621_v44 = vrot.slane %v619_v40, 2  ;;  %v627_v49 = vsel %vm420_vm0, %v339_v36, %v411_v38  ;;  %v637_v51 = vsel %vm424_vm1, %v340_v37, %v412_v42  ;;  %v347_v40 = vld [vmem:[%s6020_s19 + $0x6c] sm:$0x7] }
  0x59   : > { %v624_v46 = vrot.slane %v622_v41, 3  ;;  %v633_v52 = vrot.slane %v631_v47, 2 }
  0x5b   : > { %990 = vmatmul.bf16.gmra.mxu0 %v783_v34  ;;  %v612_v34 = vrot.slane %v610_v30, 2 }
  0x5f   : > { %v797_v53 = vld [vmem:[#allocation1] sm:$0xff] }
  0x60   : > { %799 = vst [vmem:[#allocation1] ss:$9 sm:$0xff] %v546_v48 }
  0x61   : > { %801 = vst [vmem:[#allocation1 + $0x1] ss:$9 sm:$0xff] %v549_v50  ;;  %v630_v50 = vrot.slane %v628_v45, 1 }
  0x62   : > { %802 = vst [vmem:[#allocation1 + $0x2] ss:$9 sm:$0xff] %v552_v54  ;;  %v639_v54 = vrot.slane %v637_v51, 1  ;;  %v419_v51 = vrot.slane %v347_v40, 3 }
  0x63   : > { %804 = vst [vmem:[#allocation1 + $0x3] ss:$9 sm:$0xff] %v555_v55  ;;  %v341_v55 = vld [vmem:[%s6020_s19 + $0x54] sm:$0x7] }
  0x64   : > { %806 = vst [vmem:[#allocation1 + $0x4] ss:$9 sm:$0xff] %v558_v56  ;;  %v342_v56 = vld [vmem:[%s6020_s19 + $0x58] sm:$0xf]  ;;  %v413_v57 = vrot.slane %v341_v55, 3 }
  0x65   : > { %808 = vst [vmem:[#allocation1 + $0x5] ss:$9 sm:$0xff] %v561_v58  ;;  %v640_v58 = vsel %vm428_vm2, %v340_v37, %v412_v42 }
  0x66   : > { %809 = vst [vmem:[#allocation1 + $0x6] ss:$9 sm:$0xff] %v564_v59  ;;  %v643_v59 = vsel %vm432_vm3, %v340_v37, %v412_v42  ;;  %v642_v61 = vrot.slane %v640_v58, 2  ;;  %v649_v62 = vsel %vm424_vm1, %v341_v55, %v413_v57  ;;  %v652_v0 = vsel %vm428_vm2, %v341_v55, %v413_v57 }
  0x67   : > { %811 = vst [vmem:[#allocation1 + $0x7] ss:$9 sm:$0xff] %v567_v60  ;;  %v414_v60 = vrot.slane %v342_v56, 3  ;;  %v645_v63 = vrot.slane %v643_v59, 3  ;;  %v648_v2 = vsel %vm420_vm0, %v341_v55, %v413_v57  ;;  %v654_v5 = vrot.slane %v652_v0, 2 }
  0x69   : > { %v658_v4 = vsel %vm424_vm1, %v342_v56, %v414_v60 }
  0x6b   : > { %995 = vmatmul.bf16.gmra.mxu0 %v797_v53  ;;  %v636_v53 = vsel %vm420_vm0, %v340_v37, %v412_v42 }
  0x6e   : > { %v812_v8 = vld [vmem:[#allocation1] sm:$0xff] }
  0x6f   : > { %814 = vst [vmem:[#allocation1] ss:$9 sm:$0xff] %v570_v3  ;;  %v651_v3 = vrot.slane %v649_v62, 1 }
  0x70   : > { %815 = vst [vmem:[#allocation1 + $0x1] ss:$9 sm:$0xff] %v573_v6  ;;  %v661_v6 = vsel %vm428_vm2, %v342_v56, %v414_v60 }
  0x71   : > { %817 = vst [vmem:[#allocation1 + $0x2] ss:$9 sm:$0xff] %v576_v7  ;;  %v657_v7 = vsel %vm420_vm0, %v342_v56, %v414_v60  ;;  %v663_v10 = vrot.slane %v661_v6, 2 }
  0x72   : > { %819 = vst [vmem:[#allocation1 + $0x3] ss:$9 sm:$0xff] %v579_v9  ;;  %v343_v9 = vld [vmem:[%s6020_s19 + $0x5c] sm:$0x7] }
  0x73   : > { %821 = vst [vmem:[#allocation1 + $0x4] ss:$9 sm:$0xff] %v582_v11  ;;  %v344_v11 = vld [vmem:[%s6020_s19 + $0x60] sm:$0xf]  ;;  %v415_v12 = vrot.slane %v343_v9, 3 }
  0x74   : > { %822 = vst [vmem:[#allocation1 + $0x5] ss:$9 sm:$0xff] %v585_v13  ;;  %v664_v13 = vsel %vm432_vm3, %v342_v56, %v414_v60 }
  0x75   : > { %824 = vst [vmem:[#allocation1 + $0x6] ss:$9 sm:$0xff] %v588_v14  ;;  %v416_v14 = vrot.slane %v344_v11, 3  ;;  %v670_v15 = vsel %vm424_vm1, %v343_v9, %v415_v12  ;;  %v673_v17 = vsel %vm428_vm2, %v343_v9, %v415_v12  ;;  %v669_v19 = vsel %vm420_vm0, %v343_v9, %v415_v12 }
  0x76   : > { %826 = vst [vmem:[#allocation1 + $0x7] ss:$9 sm:$0xff] %v591_v16  ;;  %v666_v16 = vrot.slane %v664_v13, 3  ;;  %v672_v20 = vrot.slane %v670_v15, 1  ;;  %v675_v22 = vrot.slane %v673_v17, 2 }
  0x77   : > { %v679_v21 = vsel %vm424_vm1, %v344_v11, %v416_v14  ;;  %v682_v23 = vsel %vm428_vm2, %v344_v11, %v416_v14 }
  0x78   : > { %v681_v27 = vrot.slane %v679_v21, 1 }
  0x7b   : > { %1000 = vmatmul.bf16.gmra.mxu0 %v812_v8  ;;  %v660_v8 = vrot.slane %v658_v4, 1  ;;  %v712_v4 = vsel %vm424_vm1, %v347_v40, %v419_v51 }
  0x7c   : > { %v714_v12 = vrot.slane %v712_v4, 1 }
  0x7d   : > { %v827_v28 = vld [vmem:[#allocation1] sm:$0xff] }
  0x7e   : > { %828 = vst [vmem:[#allocation1] ss:$9 sm:$0xff] %v594_v24 }
  0x7f   : > { %830 = vst [vmem:[#allocation1 + $0x1] ss:$9 sm:$0xff] %v597_v25  ;;  %v685_v25 = vsel %vm432_vm3, %v344_v11, %v416_v14 }
  0x80   : > { %832 = vst [vmem:[#allocation1 + $0x2] ss:$9 sm:$0xff] %v600_v26  ;;  %v678_v26 = vsel %vm420_vm0, %v344_v11, %v416_v14  ;;  %v687_v30 = vrot.slane %v685_v25, 3 }
  0x81   : > { %834 = vst [vmem:[#allocation1 + $0x3] ss:$9 sm:$0xff] %v603_v29  ;;  %v684_v29 = vrot.slane %v682_v23, 2 }
  0x82   : > { %835 = vst [vmem:[#allocation1 + $0x4] ss:$9 sm:$0xff] %v606_v32  ;;  %v346_v32 = vld [vmem:[%s6020_s19 + $0x68] sm:$0xf] }
  0x83   : > { %837 = vst [vmem:[#allocation1 + $0x5] ss:$9 sm:$0xff] %v609_v33 }
  0x84   : > { %839 = vst [vmem:[#allocation1 + $0x6] ss:$9 sm:$0xff] %v612_v34  ;;  %v1216_v34 = vpop.permute.xlu0 %1215 }
  0x85   : > { %840 = vst [vmem:[#allocation1 + $0x7] ss:$9 sm:$0xff] %v615_v35  ;;  %v418_v35 = vrot.slane %v346_v32, 3  ;;  %v1218_v38 = vperm.slane %v1216_v34, 0 }
  0x87   : > { %v703_v45 = vsel %vm428_vm2, %v346_v32, %v418_v35  ;;  %v706_v47 = vsel %vm432_vm3, %v346_v32, %v418_v35 }
  0x88   : > { %v705_v55 = vrot.slane %v703_v45, 2  ;;  %v708_v57 = vrot.slane %v706_v47, 3 }
  0x8b   : > { %1005 = vmatmul.bf16.gmra.mxu0 %v827_v28  ;;  %v345_v28 = vld [vmem:[%s6020_s19 + $0x64] sm:$0x7] }
  0x8c   : > { %v841_v48 = vld [vmem:[#allocation1] sm:$0xff]  ;;  %v417_v33 = vrot.slane %v345_v28, 3 }
  0x8d   : > { %843 = vst [vmem:[#allocation1] ss:$9 sm:$0xff] %v618_v43  ;;  %v700_v43 = vsel %vm424_vm1, %v346_v32, %v418_v35 }
  0x8e   : > { %845 = vst [vmem:[#allocation1 + $0x1] ss:$9 sm:$0xff] %v621_v44  ;;  %v691_v36 = vsel %vm424_vm1, %v345_v28, %v417_v33  ;;  %v694_v37 = vsel %vm428_vm2, %v345_v28, %v417_v33  ;;  %v690_v41 = vsel %vm420_vm0, %v345_v28, %v417_v33  ;;  %vm2901_vm1 = vcmask 1046534  }
  0x8f   : > { %847 = vst [vmem:[#allocation1 + $0x2] ss:$9 sm:$0xff] %v624_v46  ;;  %v693_v42 = vrot.slane %v691_v36, 1  ;;  %v696_v44 = vrot.slane %v694_v37, 2  ;;  %vm6882_vm3 = vmor %vm2900_vm15, %vm2901_vm1 }
  0x90   : > { %848 = vst [vmem:[#allocation1 + $0x3] ss:$9 sm:$0xff] %v627_v49  ;;  %v1219_v49 = vmul.f32 %v1218_v38, %v1212_v39 }
  0x91   : > { %850 = vst [vmem:[#allocation1 + $0x4] ss:$9 sm:$0xff] %v630_v50  ;;  %v6171_v50 = vld [vmem:[%s8609_s3] ss:$0 sm:$0xff] }
  0x92   : > { %852 = vst [vmem:[#allocation1 + $0x5] ss:$9 sm:$0xff] %v633_v52  ;;  %v699_v52 = vsel %vm420_vm0, %v346_v32, %v418_v35  ;;  %v6180_v60 = vrot.slane %v6171_v50, 2  ;;  %v6184_v62 = vrot.slane %v6171_v50, 4 }
  0x93   : > { %853 = vst [vmem:[#allocation1 + $0x6] ss:$9 sm:$0xff] %v636_v53  ;;  %v702_v53 = vrot.slane %v700_v43, 1 }
  0x94   : > { %855 = vst [vmem:[#allocation1 + $0x7] ss:$9 sm:$0xff] %v639_v54  ;;  %v1220_v54 = vld [vmem:[%s8613_s7] sm:$0x1] }
  0x95   : > { %v1221_v59 = vadd.f32 %v1220_v54, %v1219_v49 }
  0x9b   : > { %1010 = vmatmul.bf16.gmra.mxu0 %v841_v48  ;;  %v856_v1 = vld [vmem:[#allocation1] sm:$0xff] }
  0x9c   : > { %858 = vst [vmem:[#allocation1] ss:$9 sm:$0xff] %v642_v61  ;;  %v711_v61 = vsel %vm420_vm0, %v347_v40, %v419_v51  ;;  %vm5267_vm0 = vcmask 64512  }
  0x9d   : > { %860 = vst [vmem:[#allocation1 + $0x1] ss:$9 sm:$0xff] %v645_v63 }
  0x9e   : > { %861 = vst [vmem:[#allocation1 + $0x2] ss:$9 sm:$0xff] %v648_v2 }
  0x9f   : > { %863 = vst [vmem:[#allocation1 + $0x3] ss:$9 sm:$0xff] %v651_v3  ;;  %v6192_v3 = vperm.slane %v1221_v59, 0 }
  0xa0   : > { %865 = vst [vmem:[#allocation1 + $0x4] ss:$9 sm:$0xff] %v654_v5 }
  0xa1   : > { %866 = vst [vmem:[#allocation1 + $0x5] ss:$9 sm:$0xff] %v657_v7  ;;  %v715_v7 = vsel %vm428_vm2, %v347_v40, %v419_v51  ;;  %v6225_v37 = vrot.slane %v6192_v3, 6  ;;  %vm5269_vm2 = vcmask 60416  }
  0xa2   : > { %868 = vst [vmem:[#allocation1 + $0x6] ss:$9 sm:$0xff] %v660_v8  ;;  %v717_v17 = vrot.slane %v715_v7, 2 }
  0xa3   : > { %870 = vst [vmem:[#allocation1 + $0x7] ss:$9 sm:$0xff] %v663_v10  ;;  %v6199_v10 = vrot.slane %v6171_v50, 6 }
  0xa8   : > { %v6145_v18 = vpop.f32.mrf.mxu0 }
  0xa9   : > { %v1065_v5 = vrot.slane %v6145_v18, 2  ;;  %v1066_v8 = vrot.slane %v6145_v18, 4  ;;  %v1067_v14 = vrot.slane %v6145_v18, 6  ;;  %v1232_v15 = vadd.f32 %v6171_v50, %v6145_v18 }
  0xaa   : > { %v871_v24 = vld [vmem:[#allocation1] sm:$0xff] }
  0xab   : > { %1015 = vmatmul.bf16.gmra.mxu0 %v856_v1  ;;  %873 = vst [vmem:[#allocation1] ss:$9 sm:$0xff] %v666_v16  ;;  %v6206_v16 = vrot.slane %v6192_v3, 2  ;;  %v1330_v28 = vmax.f32 %v1232_v15, 0.0 }
  0xac   : > { %874 = vst [vmem:[#allocation1 + $0x1] ss:$9 sm:$0xff] %v669_v19  ;;  %v1233_v19 = vadd.f32 %v6180_v60, %v1065_v5 }
  0xad   : > { %876 = vst [vmem:[#allocation1 + $0x2] ss:$9 sm:$0xff] %v672_v20  ;;  %v6210_v20 = vrot.slane %v6192_v3, 4  ;;  %v1437_v38 = vadd.f32 %v6192_v3, %v1330_v28 }
  0xae   : > { %878 = vst [vmem:[#allocation1 + $0x3] ss:$9 sm:$0xff] %v675_v22  ;;  %v1234_v22 = vadd.f32 %v6184_v62, %v1066_v8 }
  0xaf   : > { %879 = vst [vmem:[#allocation1 + $0x4] ss:$9 sm:$0xff] %v678_v26 }
  0xb0   : > { %v6153_v31 = vpop.f32.mrf.mxu0  ;;  %881 = vst [vmem:[#allocation1 + $0x5] ss:$9 sm:$0xff] %v681_v27  ;;  %v1235_v27 = vadd.f32 %v6199_v10, %v1067_v14  ;;  %v1332_v33 = vmax.f32 %v1234_v22, 0.0 }
  0xb1   : > { %883 = vst [vmem:[#allocation1 + $0x6] ss:$9 sm:$0xff] %v684_v29  ;;  %v1068_v56 = vrot.slane %v6153_v31, 2  ;;  %v1069_v58 = vrot.slane %v6153_v31, 4  ;;  %v1236_v63 = vadd.f32 %v6171_v50, %v6153_v31  ;;  %v1331_v29 = vmax.f32 %v1233_v19, 0.0 }
  0xb2   : > { %885 = vst [vmem:[#allocation1 + $0x7] ss:$9 sm:$0xff] %v687_v30  ;;  %v1333_v36 = vmax.f32 %v1235_v27, 0.0  ;;  %v1070_v39 = vrot.slane %v6153_v31, 6 }
  0xb3   : > { %v1237_v0 = vadd.f32 %v6180_v60, %v1068_v56  ;;  %v1238_v1 = vadd.f32 %v6184_v62, %v1069_v58  ;;  %v1334_v6 = vmax.f32 %v1236_v63, 0.0  ;;  %8786 = vst [vmem:[#allocation2_spill] sm:$0xff] %v6206_v16  ;;  %v1438_v40 = vadd.f32 %v6206_v16, %v1331_v29 }
  0xb4   : > { %8787 = vst [vmem:[#allocation3_spill] sm:$0xff] %v6210_v20  ;;  %v1440_v49 = vadd.f32 %v6225_v37, %v1333_v36  ;;  %v1239_v51 = vadd.f32 %v6171_v50, %v1070_v39 }
  0xb5   : > { %v1335_v9 = vmax.f32 %v1237_v0, 0.0  ;;  %v1336_v11 = vmax.f32 %v1238_v1, 0.0  ;;  %v1441_v21 = vadd.f32 %v6192_v3, %v1334_v6 }
  0xb7   : > { %v1442_v23 = vadd.f32 %v6206_v16, %v1335_v9  ;;  %v1443_v18 = vadd.f32 %v6210_v20, %v1336_v11 }
  0xb8   : > { %v6165_v46 = vpop.f32.mrf.mxu0 }
  0xb9   : > { %v886_v48 = vld [vmem:[#allocation1] sm:$0xff]  ;;  %v1073_v13 = vrot.slane %v6165_v46, 6  ;;  %v1071_v43 = vrot.slane %v6165_v46, 2  ;;  %v1072_v45 = vrot.slane %v6165_v46, 4 }
  0xba   : > { %887 = vst [vmem:[#allocation1] ss:$9 sm:$0xff] %v690_v41 }
  0xbb   : > { %889 = vst [vmem:[#allocation1 + $0x1] ss:$9 sm:$0xff] %v693_v42  ;;  %1020 = vmatmul.bf16.gmra.mxu0 %v871_v24  ;;  %v1243_v26 = vadd.f32 %v6171_v50, %v1073_v13  ;;  %v1439_v42 = vadd.f32 %v6210_v20, %v1332_v33  ;;  %v1242_v58 = vadd.f32 %v6199_v10, %v1072_v45 }
  0xbc   : > { %891 = vst [vmem:[#allocation1 + $0x2] ss:$9 sm:$0xff] %v696_v44 }
  0xbd   : > { %892 = vst [vmem:[#allocation1 + $0x3] ss:$9 sm:$0xff] %v699_v52  ;;  %v1341_v35 = vmax.f32 %v1243_v26, 0.0  ;;  %v1240_v52 = vadd.f32 %v6180_v60, %v6165_v46  ;;  %v1340_v5 = vmax.f32 %v1242_v58, 0.0 }
  0xbe   : > { %894 = vst [vmem:[#allocation1 + $0x4] ss:$9 sm:$0xff] %v702_v53 }
  0xbf   : > { %896 = vst [vmem:[#allocation1 + $0x5] ss:$9 sm:$0xff] %v705_v55  ;;  %v1448_v47 = vadd.f32 %v6192_v3, %v1341_v35  ;;  %v1241_v55 = vadd.f32 %v6184_v62, %v1071_v43  ;;  %v1338_v63 = vmax.f32 %v1240_v52, 0.0 }
  0xc0   : > { %898 = vst [vmem:[#allocation1 + $0x6] ss:$9 sm:$0xff] %v708_v57  ;;  %v6190_v2 = vpop.f32.mrf.mxu0 }
  0xc1   : > { %899 = vst [vmem:[#allocation1 + $0x7] ss:$9 sm:$0xff] %v711_v61  ;;  %v1074_v25 = vrot.slane %v6190_v2, 2  ;;  %v1244_v30 = vadd.f32 %v6180_v60, %v6190_v2  ;;  %v1337_v61 = vmax.f32 %v1239_v51, 0.0  ;;  %v1339_v1 = vmax.f32 %v1241_v55, 0.0 }
  0xc2   : > { %v1075_v6 = vrot.slane %v6190_v2, 4  ;;  %v1076_v8 = vrot.slane %v6190_v2, 6  ;;  %v1445_v11 = vadd.f32 %v6206_v16, %v1338_v63 }
  0xc3   : > { %v1245_v34 = vadd.f32 %v6184_v62, %v1074_v25  ;;  %v1342_v41 = vmax.f32 %v1244_v30, 0.0  ;;  %v1444_v7 = vadd.f32 %v6192_v3, %v1337_v61  ;;  %v1446_v13 = vadd.f32 %v6210_v20, %v1339_v1 }
  0xc4   : > { %v1246_v19 = vadd.f32 %v6171_v50, %v1075_v6 }
  0xc5   : > { %v1343_v44 = vmax.f32 %v1245_v34, 0.0  ;;  %v1449_v53 = vadd.f32 %v6206_v16, %v1342_v41 }
  0xc6   : > { %v1344_v33 = vmax.f32 %v1246_v19, 0.0 }
  0xc7   : > { %v1450_v57 = vadd.f32 %v6210_v20, %v1343_v44 }
  0xc8   : > { %v900_v24 = vld [vmem:[#allocation1] sm:$0xff]  ;;  %v6221_v32 = vpop.f32.mrf.mxu0  ;;  %v1451_v41 = vadd.f32 %v6192_v3, %v1344_v33 }
  0xc9   : > { %902 = vst [vmem:[#allocation1] ss:$9 sm:$0xff] %v714_v12  ;;  %v1078_v31 = vrot.slane %v6221_v32, 4  ;;  %v1079_v54 = vrot.slane %v6221_v32, 6  ;;  %v1077_v14 = vrot.slane %v6221_v32, 2  ;;  %v1248_v26 = vadd.f32 %v6184_v62, %v6221_v32 }
  0xca   : > { %904 = vst [vmem:[#allocation1 + $0x1] ss:$9 sm:$0xff] %v717_v17  ;;  %v1447_v17 = vadd.f32 %v6225_v37, %v1340_v5 }
  0xcb   : > { %1641 = vst [vmem:[#allocation1 + $0x20] ss:$4 sm:$0xff] %v1441_v21  ;;  %1025 = vmatmul.bf16.gmra.mxu0 %v886_v48  ;;  %v1250_v46 = vadd.f32 %v6171_v50, %v1078_v31  ;;  %v1251_v0 = vadd.f32 %v6180_v60, %v1079_v54  ;;  %v1249_v29 = vadd.f32 %v6199_v10, %v1077_v14 }
  0xcc   : > { %1643 = vst [vmem:[#allocation1 + $0x21] ss:$4 sm:$0xff] %v1442_v23  ;;  %v1247_v23 = vadd.f32 %v6180_v60, %v1076_v8 }
  0xcd   : > { %1645 = vst [vmem:[#allocation1 + $0x22] ss:$4 sm:$0xff] %v1443_v18  ;;  %v1348_v9 = vmax.f32 %v1250_v46, 0.0  ;;  %v1349_v12 = vmax.f32 %v1251_v0, 0.0  ;;  %v1347_v39 = vmax.f32 %v1249_v29, 0.0 }
  0xce   : > { %v1345_v35 = vmax.f32 %v1247_v23, 0.0 }
  0xcf   : > { %v1455_v2 = vadd.f32 %v6192_v3, %v1348_v9  ;;  %v1456_v27 = vadd.f32 %v6206_v16, %v1349_v12 }
  0xd0   : > { %v6248_v59 = vpop.f32.mrf.mxu0 }
  0xd1   : > { %v6234_v48 = vld [vmem:[#allocation1] sm:$0xff]  ;;  %v1252_v4 = vadd.f32 %v6184_v62, %v6248_v59  ;;  %v1082_v43 = vrot.slane %v6248_v59, 6 }
  0xd2   : > { %1633 = vst [vmem:[#allocation1] ss:$4 sm:$0xff] %v1437_v38  ;;  %v1346_v38 = vmax.f32 %v1248_v26, 0.0 }
  0xd3   : > { %1635 = vst [vmem:[#allocation1 + $0x1] ss:$4 sm:$0xff] %v1438_v40  ;;  %v1350_v15 = vmax.f32 %v1252_v4, 0.0  ;;  %v1080_v40 = vrot.slane %v6248_v59, 2 }
  0xd4   : > { %v6244_v56 = vld.sshfl [vmem:[#allocation1 + $0x20] sm:$0xff pattern:$0x73625140]  ;;  %1637 = vst [vmem:[#allocation1 + $0x2] ss:$4 sm:$0xff] %v1439_v42  ;;  %v1081_v42 = vrot.slane %v6248_v59, 4  ;;  %v1453_v51 = vadd.f32 %v6210_v20, %v1346_v38 }
  0xd5   : > { %1652 = vst [vmem:[#allocation1 + $0x20] ss:$4 sm:$0xff] %v1448_v47  ;;  %v1457_v30 = vadd.f32 %v6210_v20, %v1350_v15  ;;  %v1452_v47 = vadd.f32 %v6206_v16, %v1345_v35  ;;  %v1253_v54 = vadd.f32 %v6171_v50, %v1080_v40 }
  0xd6   : > { %1639 = vst [vmem:[#allocation1 + $0x3] ss:$4 sm:$0xff] %v1440_v49  ;;  %v1254_v55 = vadd.f32 %v6180_v60, %v1081_v42 }
  0xd7   : > { %1653 = vst [vmem:[#allocation1 + $0x21] ss:$4 sm:$0xff] %v1449_v53  ;;  %v1454_v53 = vadd.f32 %v6225_v37, %v1347_v39  ;;  %v1351_v63 = vmax.f32 %v1253_v54, 0.0 }
  0xd8   : > { %1654 = vst [vmem:[#allocation1 + $0x22] ss:$4 sm:$0xff] %v1450_v57  ;;  %v991_v22 = vpop.f32.mrf.mxu0  ;;  %v1255_v57 = vadd.f32 %v6184_v62, %v1082_v43  ;;  %v1352_v1 = vmax.f32 %v1254_v55, 0.0 }
  0xd9   : > { %v1083_v25 = vrot.slane %v991_v22, 2  ;;  %v1084_v18 = vrot.slane %v991_v22, 4  ;;  %v1085_v28 = vrot.slane %v991_v22, 6  ;;  %v1256_v61 = vadd.f32 %v6199_v10, %v991_v22 }
  0xda   : > { %v1353_v4 = vmax.f32 %v1255_v57, 0.0  ;;  %v1459_v14 = vadd.f32 %v6206_v16, %v1352_v1 }
  0xdb   : > { %1030 = vmatmul.bf16.gmra.mxu0 %v900_v24  ;;  %v1257_v34 = vadd.f32 %v6171_v50, %v1083_v25  ;;  %v1258_v36 = vadd.f32 %v6180_v60, %v1084_v18  ;;  %v1259_v32 = vadd.f32 %v6184_v62, %v1085_v28  ;;  %v1354_v8 = vmax.f32 %v1256_v61, 0.0 }
  0xdc   : > { %v1460_v15 = vadd.f32 %v6210_v20, %v1353_v4 }
  0xdd   : > { %v6262_v21 = vld.sshfl [vmem:[#allocation1] sm:$0xff pattern:$0x73625140]  ;;  %v1355_v44 = vmax.f32 %v1257_v34, 0.0  ;;  %v1356_v49 = vmax.f32 %v1258_v36, 0.0  ;;  %v1357_v31 = vmax.f32 %v1259_v32, 0.0  ;;  %v1461_v26 = vadd.f32 %v6225_v37, %v1354_v8 }
  0xde   : > { %1648 = vst [vmem:[#allocation1] ss:$4 sm:$0xff] %v1444_v7 }
  0xdf   : > { %1649 = vst [vmem:[#allocation1 + $0x1] ss:$4 sm:$0xff] %v1445_v11  ;;  %v6266_v24 = vld.sshfl [vmem:[#allocation1 + $0x20] sm:$0xff pattern:$0x73625140]  ;;  %v1462_v58 = vadd.f32 %v6192_v3, %v1355_v44  ;;  %v1463_v59 = vadd.f32 %v6206_v16, %v1356_v49  ;;  %v1464_v46 = vadd.f32 %v6210_v20, %v1357_v31  ;;  %v1458_v11 = vadd.f32 %v6192_v3, %v1351_v63 }
  0xe0   : > { %1650 = vst [vmem:[#allocation1 + $0x2] ss:$4 sm:$0xff] %v1446_v13  ;;  %v993_v45 = vpop.f32.mrf.mxu0 }
  0xe1   : > { %1651 = vst [vmem:[#allocation1 + $0x3] ss:$4 sm:$0xff] %v1447_v17  ;;  %v1086_v12 = vrot.slane %v993_v45, 2  ;;  %v1087_v17 = vrot.slane %v993_v45, 4  ;;  %v1088_v19 = vrot.slane %v993_v45, 6  ;;  %v1260_v22 = vadd.f32 %v6171_v50, %v993_v45 }
  0xe2   : > { %1661 = vst [vmem:[#allocation1 + $0x20] ss:$4 sm:$0xff] %v1455_v2 }
  0xe3   : > { %1662 = vst [vmem:[#allocation1 + $0x21] ss:$4 sm:$0xff] %v1456_v27  ;;  %v1261_v27 = vadd.f32 %v6180_v60, %v1086_v12  ;;  %v1262_v29 = vadd.f32 %v6184_v62, %v1087_v17  ;;  %v1263_v34 = vadd.f32 %v6199_v10, %v1088_v19  ;;  %v1358_v35 = vmax.f32 %v1260_v22, 0.0 }
  0xe4   : > { %1663 = vst [vmem:[#allocation1 + $0x22] ss:$4 sm:$0xff] %v1457_v30 }
  0xe5   : > { %v1359_v39 = vmax.f32 %v1261_v27, 0.0  ;;  %v1360_v40 = vmax.f32 %v1262_v29, 0.0  ;;  %v1361_v42 = vmax.f32 %v1263_v34, 0.0  ;;  %v1465_v44 = vadd.f32 %v6192_v3, %v1358_v35 }
  0xe7   : > { %v1466_v45 = vadd.f32 %v6206_v16, %v1359_v39  ;;  %v1468_v55 = vadd.f32 %v6225_v37, %v1361_v42 }
  0xe8   : > { %v6282_v52 = vld.sshfl [vmem:[#allocation1] sm:$0xff pattern:$0x73625140]  ;;  %v996_v5 = vpop.f32.mrf.mxu0 }
  0xe9   : > { %1657 = vst [vmem:[#allocation1] ss:$4 sm:$0xff] %v1451_v41  ;;  %v1089_v6 = vrot.slane %v996_v5, 2  ;;  %v1090_v7 = vrot.slane %v996_v5, 4  ;;  %v1264_v9 = vadd.f32 %v6171_v50, %v996_v5  ;;  %v1091_v43 = vrot.slane %v996_v5, 6 }
  0xea   : > { %1658 = vst [vmem:[#allocation1 + $0x1] ss:$4 sm:$0xff] %v1452_v47 }
  0xeb   : > { %1659 = vst [vmem:[#allocation1 + $0x2] ss:$4 sm:$0xff] %v1453_v51  ;;  %1035 = vmatmul.bf16.gmra.mxu0 %v6234_v48  ;;  %v6293_v0 = vld.sshfl [vmem:[#allocation1 + $0x20] sm:$0xff pattern:$0x73625140]  ;;  %v1265_v48 = vadd.f32 %v6180_v60, %v1089_v6  ;;  %v1266_v13 = vadd.f32 %v6184_v62, %v1090_v7  ;;  %v1362_v23 = vmax.f32 %v1264_v9, 0.0  ;;  %v1467_v51 = vadd.f32 %v6210_v20, %v1360_v40 }
  0xec   : > { %1660 = vst [vmem:[#allocation1 + $0x3] ss:$4 sm:$0xff] %v1454_v53  ;;  %v1267_v57 = vadd.f32 %v6171_v50, %v1091_v43 }
  0xed   : > { %1670 = vst [vmem:[#allocation1 + $0x20] ss:$4 sm:$0xff] %v1462_v58  ;;  %v1363_v2 = vmax.f32 %v1265_v48, 0.0  ;;  %v1364_v25 = vmax.f32 %v1266_v13, 0.0  ;;  %v1469_v28 = vadd.f32 %v6192_v3, %v1362_v23 }
  0xee   : > { %1671 = vst [vmem:[#allocation1 + $0x21] ss:$4 sm:$0xff] %v1463_v59  ;;  %v1365_v6 = vmax.f32 %v1267_v57, 0.0 }
  0xef   : > { %1672 = vst [vmem:[#allocation1 + $0x22] ss:$4 sm:$0xff] %v1464_v46  ;;  %v1470_v30 = vadd.f32 %v6206_v16, %v1363_v2  ;;  %v1471_v36 = vadd.f32 %v6210_v20, %v1364_v25 }
  0xf0   : > { %v998_v33 = vpop.f32.mrf.mxu0  ;;  %v1472_v17 = vadd.f32 %v6192_v3, %v1365_v6 }
  0xf1   : > { %v1094_v32 = vrot.slane %v998_v33, 6  ;;  %v1092_v47 = vrot.slane %v998_v33, 2  ;;  %v1093_v31 = vrot.slane %v998_v33, 4  ;;  %v1268_v59 = vadd.f32 %v6180_v60, %v998_v33 }
  0xf3   : > { %v6302_v18 = vld.sshfl [vmem:[#allocation1] sm:$0xff pattern:$0x73625140]  ;;  %v1271_v41 = vadd.f32 %v6171_v50, %v1094_v32  ;;  %v1269_v63 = vadd.f32 %v6184_v62, %v1092_v47  ;;  %v1270_v5 = vadd.f32 %v6199_v10, %v1093_v31  ;;  %v1366_v9 = vmax.f32 %v1268_v59, 0.0 }
  0xf4   : > { %1666 = vst [vmem:[#allocation1] ss:$4 sm:$0xff] %v1458_v11 }
  0xf5   : > { %1667 = vst [vmem:[#allocation1 + $0x1] ss:$4 sm:$0xff] %v1459_v14  ;;  %v1369_v49 = vmax.f32 %v1271_v41, 0.0  ;;  %v1367_v11 = vmax.f32 %v1269_v63, 0.0  ;;  %v1368_v13 = vmax.f32 %v1270_v5, 0.0  ;;  %v1473_v2 = vadd.f32 %v6206_v16, %v1366_v9 }
  0xf6   : > { %1668 = vst [vmem:[#allocation1 + $0x2] ss:$4 sm:$0xff] %v1460_v15  ;;  %v6311_v38 = vld.sshfl [vmem:[#allocation1 + $0x20] sm:$0xff pattern:$0x73625140] }
  0xf7   : > { %1669 = vst [vmem:[#allocation1 + $0x3] ss:$4 sm:$0xff] %v1461_v26  ;;  %v1476_v61 = vadd.f32 %v6192_v3, %v1369_v49  ;;  %v1474_v25 = vadd.f32 %v6210_v20, %v1367_v11 }
  0xf8   : > { %1679 = vst [vmem:[#allocation1 + $0x20] ss:$4 sm:$0xff] %v1469_v28  ;;  %v1001_v53 = vpop.f32.mrf.mxu0 }
  0xf9   : > { %1680 = vst [vmem:[#allocation1 + $0x21] ss:$4 sm:$0xff] %v1470_v30  ;;  %v1095_v58 = vrot.slane %v1001_v53, 2  ;;  %v1272_v46 = vadd.f32 %v6180_v60, %v1001_v53  ;;  %v1096_v14 = vrot.slane %v1001_v53, 4  ;;  %v1097_v19 = vrot.slane %v1001_v53, 6 }
  0xfa   : > { %1681 = vst [vmem:[#allocation1 + $0x22] ss:$4 sm:$0xff] %v1471_v36  ;;  %v1475_v30 = vadd.f32 %v6225_v37, %v1368_v13 }
  0xfb   : > { %v1273_v1 = vadd.f32 %v6184_v62, %v1095_v58  ;;  %v1370_v7 = vmax.f32 %v1272_v46, 0.0  ;;  %v1274_v33 = vadd.f32 %v6171_v50, %v1096_v14  ;;  %v1275_v34 = vadd.f32 %v6180_v60, %v1097_v19 }
  0xfd   : > { %v1371_v8 = vmax.f32 %v1273_v1, 0.0  ;;  %v1477_v12 = vadd.f32 %v6206_v16, %v1370_v7  ;;  %v1372_v42 = vmax.f32 %v1274_v33, 0.0 }
  0xfe   : > { %v6317_v54 = vld.sshfl [vmem:[#allocation1] sm:$0xff pattern:$0x73625140] }
  0xff   : > { %1675 = vst [vmem:[#allocation1] ss:$4 sm:$0xff] %v1465_v44  ;;  %v1478_v48 = vadd.f32 %v6210_v20, %v1371_v8  ;;  %v1373_v44 = vmax.f32 %v1275_v34, 0.0 }
 0x100   : > { %1676 = vst [vmem:[#allocation1 + $0x1] ss:$4 sm:$0xff] %v1466_v45  ;;  %v1003_v15 = vpop.f32.mrf.mxu0 }
 0x101   : > { %1677 = vst [vmem:[#allocation1 + $0x2] ss:$4 sm:$0xff] %v1467_v51  ;;  %v6326_v4 = vld.sshfl [vmem:[#allocation1 + $0x20] sm:$0xff pattern:$0x73625140]  ;;  %v1099_v22 = vrot.slane %v1003_v15, 4  ;;  %v1276_v32 = vadd.f32 %v6184_v62, %v1003_v15  ;;  %v1480_v58 = vadd.f32 %v6206_v16, %v1373_v44 }
 0x102   : > { %8788 = vst [vmem:[#allocation4_spill] sm:$0xff] %v6326_v4  ;;  %v1100_v23 = vrot.slane %v1003_v15, 6  ;;  %v1098_v26 = vrot.slane %v1003_v15, 2 }
 0x103   : > { %1678 = vst [vmem:[#allocation1 + $0x3] ss:$4 sm:$0xff] %v1468_v55  ;;  %v1278_v27 = vadd.f32 %v6171_v50, %v1099_v22  ;;  %v1374_v49 = vmax.f32 %v1276_v32, 0.0  ;;  %v1479_v55 = vadd.f32 %v6192_v3, %v1372_v42 }
 0x104   : > { %1688 = vst [vmem:[#allocation1 + $0x20] ss:$4 sm:$0xff] %v1476_v61  ;;  %v1279_v28 = vadd.f32 %v6180_v60, %v1100_v23  ;;  %v1277_v39 = vadd.f32 %v6199_v10, %v1098_v26 }
 0x105   : > { %1689 = vst [vmem:[#allocation1 + $0x21] ss:$4 sm:$0xff] %v1477_v12  ;;  %v1376_v35 = vmax.f32 %v1278_v27, 0.0  ;;  %v1481_v46 = vadd.f32 %v6210_v20, %v1374_v49 }
 0x106   : > { %1690 = vst [vmem:[#allocation1 + $0x22] ss:$4 sm:$0xff] %v1478_v48  ;;  %v1377_v36 = vmax.f32 %v1279_v28, 0.0  ;;  %v1375_v51 = vmax.f32 %v1277_v39, 0.0 }
 0x107   : > { %v1483_v40 = vadd.f32 %v6192_v3, %v1376_v35 }
 0x108   : > { %v1484_v41 = vadd.f32 %v6206_v16, %v1377_v36  ;;  %v1006_v43 = vpop.f32.mrf.mxu0  ;;  %v1482_v1 = vadd.f32 %v6225_v37, %v1375_v51 }
 0x109   : > { %v1280_v47 = vadd.f32 %v6184_v62, %v1006_v43  ;;  %v1101_v31 = vrot.slane %v1006_v43, 2  ;;  %v1102_v57 = vrot.slane %v1006_v43, 4  ;;  %v1103_v59 = vrot.slane %v1006_v43, 6 }
 0x10a   : > { %v6336_v29 = vld.sshfl [vmem:[#allocation1] sm:$0xff pattern:$0x73625140] }
 0x10b   : > { %1684 = vst [vmem:[#allocation1] ss:$4 sm:$0xff] %v1472_v17  ;;  %v1378_v53 = vmax.f32 %v1280_v47, 0.0  ;;  %v1281_v5 = vadd.f32 %v6171_v50, %v1101_v31  ;;  %v1282_v7 = vadd.f32 %v6180_v60, %v1102_v57  ;;  %v1283_v9 = vadd.f32 %v6184_v62, %v1103_v59 }
 0x10c   : > { %1685 = vst [vmem:[#allocation1 + $0x1] ss:$4 sm:$0xff] %v1473_v2 }
 0x10d   : > { %1686 = vst [vmem:[#allocation1 + $0x2] ss:$4 sm:$0xff] %v1474_v25  ;;  %v6345_v45 = vld.sshfl [vmem:[#allocation1 + $0x20] sm:$0xff pattern:$0x73625140]  ;;  %v1485_v61 = vadd.f32 %v6210_v20, %v1378_v53  ;;  %v1379_v15 = vmax.f32 %v1281_v5, 0.0 }
 0x10e   : > { %1687 = vst [vmem:[#allocation1 + $0x3] ss:$4 sm:$0xff] %v1475_v30  ;;  %v1380_v23 = vmax.f32 %v1282_v7, 0.0  ;;  %v1381_v25 = vmax.f32 %v1283_v9, 0.0 }
 0x10f   : > { %1697 = vst [vmem:[#allocation1 + $0x20] ss:$4 sm:$0xff] %v1483_v40  ;;  %v1486_v28 = vadd.f32 %v6192_v3, %v1379_v15 }
 0x110   : > { %1698 = vst [vmem:[#allocation1 + $0x21] ss:$4 sm:$0xff] %v1484_v41  ;;  %v1008_v8 = vpop.f32.mrf.mxu0  ;;  %v1487_v33 = vadd.f32 %v6206_v16, %v1380_v23  ;;  %v1488_v32 = vadd.f32 %v6210_v20, %v1381_v25 }
 0x111   : > { %1699 = vst [vmem:[#allocation1 + $0x22] ss:$4 sm:$0xff] %v1485_v61  ;;  %v1104_v11 = vrot.slane %v1008_v8, 2  ;;  %v1105_v12 = vrot.slane %v1008_v8, 4  ;;  %v1106_v48 = vrot.slane %v1008_v8, 6  ;;  %v1284_v14 = vadd.f32 %v6199_v10, %v1008_v8 }
 0x113   : > { %v1285_v17 = vadd.f32 %v6171_v50, %v1104_v11  ;;  %v1286_v19 = vadd.f32 %v6180_v60, %v1105_v12  ;;  %v1287_v2 = vadd.f32 %v6184_v62, %v1106_v48  ;;  %v1382_v26 = vmax.f32 %v1284_v14, 0.0 }
 0x115   : > { %v1691_v63 = vld.sshfl [vmem:[#allocation1] sm:$0xff pattern:$0x73625140]  ;;  %v1383_v27 = vmax.f32 %v1285_v17, 0.0  ;;  %v1384_v30 = vmax.f32 %v1286_v19, 0.0  ;;  %v1385_v34 = vmax.f32 %v1287_v2, 0.0  ;;  %v1489_v44 = vadd.f32 %v6225_v37, %v1382_v26 }
 0x116   : > { %v6354_v6 = vpack.c.bf16 %v1691_v63, %v1691_v63  ;;  %1693 = vst [vmem:[#allocation1] ss:$4 sm:$0xff] %v1479_v55 }
 0x117   : > { %1694 = vst [vmem:[#allocation1 + $0x1] ss:$4 sm:$0xff] %v1480_v58  ;;  %v1490_v35 = vadd.f32 %v6192_v3, %v1383_v27  ;;  %v1491_v49 = vadd.f32 %v6206_v16, %v1384_v30  ;;  %v1492_v31 = vadd.f32 %v6210_v20, %v1385_v34 }
 0x118   : > { %v8617_v13 = vrot.slane %v6354_v6, 2  ;;  %1695 = vst [vmem:[#allocation1 + $0x2] ss:$4 sm:$0xff] %v1481_v46  ;;  %v1011_v36 = vpop.f32.mrf.mxu0  ;;  %v1701_v39 = vld.sshfl [vmem:[#allocation1 + $0x20] sm:$0xff pattern:$0x73625140] }
 0x119   : > { %1696 = vst [vmem:[#allocation1 + $0x3] ss:$4 sm:$0xff] %v1482_v1  ;;  %v1107_v40 = vrot.slane %v1011_v36, 2  ;;  %v1108_v41 = vrot.slane %v1011_v36, 4  ;;  %v1109_v42 = vrot.slane %v1011_v36, 6  ;;  %v1288_v47 = vadd.f32 %v6171_v50, %v1011_v36 }
 0x11a   : > { %v6366_v22 = vsel %vm1902_vm4, %v6354_v6, %v8617_v13  ;;  %1706 = vst [vmem:[#allocation1 + $0x20] ss:$4 sm:$0xff] %v1490_v35  ;;  %v6382_v63 = vpack.c.bf16 %v1701_v39, %v1701_v39 }
 0x11b   : > { %8789 = vst [vmem:[#allocation5_spill] sm:$0xff] %v6366_v22  ;;  %v1289_v51 = vadd.f32 %v6180_v60, %v1107_v40  ;;  %v1290_v53 = vadd.f32 %v6184_v62, %v1108_v41  ;;  %v1291_v55 = vadd.f32 %v6199_v10, %v1109_v42  ;;  %v1386_v57 = vmax.f32 %v1288_v47, 0.0 }
 0x11c   : > { %1707 = vst [vmem:[#allocation1 + $0x21] ss:$4 sm:$0xff] %v1491_v49  ;;  %v8616_v11 = vrot.slane %v6382_v63, 2 }
 0x11d   : > { %v1387_v58 = vmax.f32 %v1289_v51, 0.0  ;;  %1708 = vst [vmem:[#allocation1 + $0x22] ss:$4 sm:$0xff] %v1492_v31  ;;  %v1388_v59 = vmax.f32 %v1290_v53, 0.0  ;;  %v1389_v61 = vmax.f32 %v1291_v55, 0.0  ;;  %v1493_v9 = vadd.f32 %v6192_v3, %v1386_v57 }
 0x11e   : > { %v6396_v23 = vsel %vm1906_vm5, %v6382_v63, %v8616_v11 }
 0x11f   : > { %v1494_v12 = vadd.f32 %v6206_v16, %v1387_v58  ;;  %v1495_v17 = vadd.f32 %v6210_v20, %v1388_v59  ;;  %8790 = vst [vmem:[#allocation6_spill] sm:$0xff] %v6396_v23  ;;  %v1496_v25 = vadd.f32 %v6225_v37, %v1389_v61 }
 0x120   : > { %v6373_v43 = vld.sshfl [vmem:[#allocation1] sm:$0xff pattern:$0x73625140]  ;;  %v1013_v46 = vpop.f32.mrf.mxu0 }
 0x121   : > { %1702 = vst [vmem:[#allocation1] ss:$4 sm:$0xff] %v1486_v28  ;;  %v1110_v1 = vrot.slane %v1013_v46, 2  ;;  %v1111_v5 = vrot.slane %v1013_v46, 4  ;;  %v1112_v7 = vrot.slane %v1013_v46, 6  ;;  %v1292_v8 = vadd.f32 %v6171_v50, %v1013_v46 }
 0x122   : > { %1703 = vst [vmem:[#allocation1 + $0x1] ss:$4 sm:$0xff] %v1487_v33 }
 0x123   : > { %1704 = vst [vmem:[#allocation1 + $0x2] ss:$4 sm:$0xff] %v1488_v32  ;;  %v1293_v48 = vadd.f32 %v6180_v60, %v1110_v1  ;;  %v1294_v14 = vadd.f32 %v6184_v62, %v1111_v5  ;;  %v1390_v15 = vmax.f32 %v1292_v8, 0.0  ;;  %v1295_v19 = vadd.f32 %v6171_v50, %v1112_v7 }
 0x124   : > { %1705 = vst [vmem:[#allocation1 + $0x3] ss:$4 sm:$0xff] %v1489_v44  ;;  %v6403_v33 = vld.sshfl [vmem:[#allocation1 + $0x20] sm:$0xff pattern:$0x73625140] }
 0x125   : > { %v1391_v26 = vmax.f32 %v1293_v48, 0.0  ;;  %v1392_v27 = vmax.f32 %v1294_v14, 0.0  ;;  %v1497_v28 = vadd.f32 %v6192_v3, %v1390_v15  ;;  %8792 = vst [vmem:[#allocation8_spill] sm:$0xff] %v6403_v33  ;;  %v1393_v34 = vmax.f32 %v1295_v19, 0.0 }
 0x127   : > { %v1498_v30 = vadd.f32 %v6206_v16, %v1391_v26  ;;  %v1499_v35 = vadd.f32 %v6210_v20, %v1392_v27  ;;  %1715 = vst [vmem:[#allocation1 + $0x20] ss:$4 sm:$0xff] %v1497_v28  ;;  %v1500_v51 = vadd.f32 %v6192_v3, %v1393_v34 }
 0x128   : > { %v1016_v36 = vpop.f32.mrf.mxu0 }
 0x129   : > { %v1113_v32 = vrot.slane %v1016_v36, 2  ;;  %v1114_v39 = vrot.slane %v1016_v36, 4  ;;  %v1115_v40 = vrot.slane %v1016_v36, 6  ;;  %v1296_v41 = vadd.f32 %v6180_v60, %v1016_v36  ;;  %1716 = vst [vmem:[#allocation1 + $0x21] ss:$4 sm:$0xff] %v1498_v30 }
 0x12a   : > { %1717 = vst [vmem:[#allocation1 + $0x22] ss:$4 sm:$0xff] %v1499_v35 }
 0x12b   : > { %v6398_v2 = vld.sshfl [vmem:[#allocation1] sm:$0xff pattern:$0x73625140]  ;;  %v1297_v42 = vadd.f32 %v6184_v62, %v1113_v32  ;;  %v1298_v44 = vadd.f32 %v6199_v10, %v1114_v39  ;;  %v1299_v47 = vadd.f32 %v6171_v50, %v1115_v40  ;;  %v1394_v49 = vmax.f32 %v1296_v41, 0.0 }
 0x12c   : > { %8791 = vst [vmem:[#allocation7_spill] sm:$0xff] %v6398_v2 }
 0x12d   : > { %1711 = vst [vmem:[#allocation1] ss:$4 sm:$0xff] %v1493_v9  ;;  %v1395_v31 = vmax.f32 %v1297_v42, 0.0  ;;  %v1396_v53 = vmax.f32 %v1298_v44, 0.0  ;;  %v1397_v55 = vmax.f32 %v1299_v47, 0.0  ;;  %v1501_v57 = vadd.f32 %v6206_v16, %v1394_v49 }
 0x12e   : > { %1712 = vst [vmem:[#allocation1 + $0x1] ss:$4 sm:$0xff] %v1494_v12 }
 0x12f   : > { %1713 = vst [vmem:[#allocation1 + $0x2] ss:$4 sm:$0xff] %v1495_v17  ;;  %v1502_v58 = vadd.f32 %v6210_v20, %v1395_v31  ;;  %v1503_v61 = vadd.f32 %v6225_v37, %v1396_v53  ;;  %v1504_v46 = vadd.f32 %v6192_v3, %v1397_v55 }
 0x130   : > { %1714 = vst [vmem:[#allocation1 + $0x3] ss:$4 sm:$0xff] %v1496_v25  ;;  %v1018_v1 = vpop.f32.mrf.mxu0 }
 0x131   : > { %v1116_v5 = vrot.slane %v1018_v1, 2  ;;  %v1117_v7 = vrot.slane %v1018_v1, 4  ;;  %v1118_v8 = vrot.slane %v1018_v1, 6  ;;  %v1300_v9 = vadd.f32 %v6180_v60, %v1018_v1  ;;  %v6418_v12 = vld.sshfl [vmem:[#allocation1 + $0x20] sm:$0xff pattern:$0x73625140] }
 0x132   : > { %1724 = vst [vmem:[#allocation1 + $0x20] ss:$4 sm:$0xff] %v1504_v46 }
 0x133   : > { %v1301_v48 = vadd.f32 %v6184_v62, %v1116_v5  ;;  %v1302_v14 = vadd.f32 %v6171_v50, %v1117_v7  ;;  %v1303_v15 = vadd.f32 %v6180_v60, %v1118_v8  ;;  %v1398_v17 = vmax.f32 %v1300_v9, 0.0 }
 0x135   : > { %v1399_v19 = vmax.f32 %v1301_v48, 0.0  ;;  %v1400_v25 = vmax.f32 %v1302_v14, 0.0  ;;  %v1401_v26 = vmax.f32 %v1303_v15, 0.0  ;;  %v1505_v27 = vadd.f32 %v6206_v16, %v1398_v17 }
 0x137   : > { %v6413_v59 = vld.sshfl [vmem:[#allocation1] sm:$0xff pattern:$0x73625140]  ;;  %v1506_v28 = vadd.f32 %v6210_v20, %v1399_v19  ;;  %1725 = vst [vmem:[#allocation1 + $0x21] ss:$4 sm:$0xff] %v1505_v27  ;;  %v1507_v30 = vadd.f32 %v6192_v3, %v1400_v25  ;;  %v1508_v34 = vadd.f32 %v6206_v16, %v1401_v26 }
 0x138   : > { %1720 = vst [vmem:[#allocation1] ss:$4 sm:$0xff] %v1500_v51  ;;  %v1021_v35 = vpop.f32.mrf.mxu0 }
 0x139   : > { %1721 = vst [vmem:[#allocation1 + $0x1] ss:$4 sm:$0xff] %v1501_v57  ;;  %v1119_v36 = vrot.slane %v1021_v35, 2  ;;  %v1120_v32 = vrot.slane %v1021_v35, 4  ;;  %v1121_v39 = vrot.slane %v1021_v35, 6  ;;  %v1304_v40 = vadd.f32 %v6184_v62, %v1021_v35 }
 0x13a   : > { %1722 = vst [vmem:[#allocation1 + $0x2] ss:$4 sm:$0xff] %v1502_v58  ;;  %v1793_v35 = vpack.c.bf16 %v6262_v21, %v6262_v21 }
 0x13b   : > { %1723 = vst [vmem:[#allocation1 + $0x3] ss:$4 sm:$0xff] %v1503_v61  ;;  %v1305_v42 = vadd.f32 %v6199_v10, %v1119_v36  ;;  %v1306_v44 = vadd.f32 %v6171_v50, %v1120_v32  ;;  %v1307_v47 = vadd.f32 %v6180_v60, %v1121_v39  ;;  %v1402_v49 = vmax.f32 %v1304_v40, 0.0 }
 0x13c   : > { %1726 = vst [vmem:[#allocation1 + $0x22] ss:$4 sm:$0xff] %v1506_v28 }
 0x13d   : > { %v1403_v51 = vmax.f32 %v1305_v42, 0.0  ;;  %v1404_v31 = vmax.f32 %v1306_v44, 0.0  ;;  %v1405_v53 = vmax.f32 %v1307_v47, 0.0  ;;  %v1509_v55 = vadd.f32 %v6210_v20, %v1402_v49  ;;  %v5851_v44 = vld [vmem:[%s8610_s4 + $0x78] sm:$0xff] }
 0x13e   : > { %2584 = vmatpush.bf16.msra.mxu1 %v5851_v44  ;;  %5908 = vmatpush.bf16.msra.mxu3 %v5851_v44 }
 0x13f   : > { %v1510_v57 = vadd.f32 %v6225_v37, %v1403_v51  ;;  %v1511_v58 = vadd.f32 %v6192_v3, %v1404_v31  ;;  %v1512_v61 = vadd.f32 %v6206_v16, %v1405_v53  ;;  %v1878_v31 = vrot.slane %v1793_v35, 2  ;;  %v5850_v53 = vld [vmem:[%s8610_s4 + $0x70] sm:$0xff] }
 0x140   : > { %v1023_v1 = vpop.f32.mrf.mxu0 }
 0x141   : > { %v1122_v5 = vrot.slane %v1023_v1, 2  ;;  %v1123_v7 = vrot.slane %v1023_v1, 4  ;;  %v1124_v8 = vrot.slane %v1023_v1, 6  ;;  %v1308_v9 = vadd.f32 %v6184_v62, %v1023_v1 }
 0x142   : > { %v6428_v41 = vld.sshfl [vmem:[#allocation1] sm:$0xff pattern:$0x73625140]  ;;  %v1794_v1 = vpack.c.bf16 %v6244_v56, %v6244_v56  ;;  %2585 = vmatpush.bf16.msra.mxu1 %v5850_v53  ;;  %5909 = vmatpush.bf16.msra.mxu3 %v5850_v53 }
 0x143   : > { %1729 = vst [vmem:[#allocation1] ss:$4 sm:$0xff] %v1507_v30  ;;  %v6437_v46 = vld.sshfl [vmem:[#allocation1 + $0x20] sm:$0xff pattern:$0x73625140]  ;;  %v1309_v48 = vadd.f32 %v6171_v50, %v1122_v5  ;;  %v1310_v14 = vadd.f32 %v6180_v60, %v1123_v7  ;;  %v1311_v15 = vadd.f32 %v6184_v62, %v1124_v8  ;;  %v1406_v17 = vmax.f32 %v1308_v9, 0.0 }
 0x144   : > { %1730 = vst [vmem:[#allocation1 + $0x1] ss:$4 sm:$0xff] %v1508_v34 }
 0x145   : > { %1731 = vst [vmem:[#allocation1 + $0x2] ss:$4 sm:$0xff] %v1509_v55  ;;  %v1407_v19 = vmax.f32 %v1309_v48, 0.0  ;;  %v1408_v25 = vmax.f32 %v1310_v14, 0.0  ;;  %v1409_v26 = vmax.f32 %v1311_v15, 0.0  ;;  %v1513_v27 = vadd.f32 %v6210_v20, %v1406_v17 }
 0x146   : > { %8793 = vst [vmem:[#allocation9_spill] sm:$0xff] %v6437_v46  ;;  %v6468_v48 = vsel %vm1902_vm4, %v1793_v35, %v1878_v31 }
 0x147   : > { %1732 = vst [vmem:[#allocation1 + $0x3] ss:$4 sm:$0xff] %v1510_v57  ;;  %v1514_v28 = vadd.f32 %v6192_v3, %v1407_v19  ;;  %v1515_v30 = vadd.f32 %v6206_v16, %v1408_v25  ;;  %v1516_v34 = vadd.f32 %v6210_v20, %v1409_v26  ;;  %v1879_v25 = vrot.slane %v1794_v1, 2 }
 0x148   : > { %1733 = vst [vmem:[#allocation1 + $0x20] ss:$4 sm:$0xff] %v1511_v58  ;;  %v1026_v32 = vpop.f32.mrf.mxu0 }
 0x149   : > { %1734 = vst [vmem:[#allocation1 + $0x21] ss:$4 sm:$0xff] %v1512_v61  ;;  %v1125_v39 = vrot.slane %v1026_v32, 2  ;;  %v1126_v40 = vrot.slane %v1026_v32, 4  ;;  %v1127_v42 = vrot.slane %v1026_v32, 6  ;;  %v1312_v47 = vadd.f32 %v6199_v10, %v1026_v32 }
 0x14a   : > { %1735 = vst [vmem:[#allocation1 + $0x22] ss:$4 sm:$0xff] %v1513_v27  ;;  %v2055_v27 = vshrl.u32 %v6468_v48, 16 }
 0x14b   : > { %v1313_v49 = vadd.f32 %v6171_v50, %v1125_v39  ;;  %v1314_v51 = vadd.f32 %v6180_v60, %v1126_v40  ;;  %v1315_v21 = vadd.f32 %v6184_v62, %v1127_v42  ;;  %v1410_v55 = vmax.f32 %v1312_v47, 0.0 }
 0x14c   : > { %v1907_v39 = vsel %vm1906_vm5, %v1793_v35, %v1878_v31  ;;  %v6481_v40 = vpack.c.bf16 %v6293_v0, %v6293_v0  ;;  %v2057_v53 = vrot.slane %v2055_v27, 6 }
 0x14d   : > { %v1411_v57 = vmax.f32 %v1313_v49, 0.0  ;;  %v1412_v58 = vmax.f32 %v1314_v51, 0.0  ;;  %v1413_v61 = vmax.f32 %v1315_v21, 0.0  ;;  %v1517_v5 = vadd.f32 %v6225_v37, %v1410_v55 }
 0x14e   : > { %v6449_v36 = vld.sshfl [vmem:[#allocation1] sm:$0xff pattern:$0x73625140]  ;;  %v6484_v49 = vsel %vm1902_vm4, %v1794_v1, %v1879_v25  ;;  %v6487_v21 = vrot.slane %v1907_v39, 2 }
 0x14f   : > { %8794 = vst [vmem:[#allocation10_spill] sm:$0xff] %v6449_v36  ;;  %v1518_v7 = vadd.f32 %v6192_v3, %v1411_v57  ;;  %v1519_v8 = vadd.f32 %v6206_v16, %v1412_v58  ;;  %v1520_v9 = vadd.f32 %v6210_v20, %v1413_v61  ;;  %v6495_v58 = vsel %vm1906_vm5, %v1794_v1, %v1879_v25  ;;  %v5938_v1 = vld [vmem:[%s8609_s3] ss:$0 sm:$0xff] }
 0x150   : > { %1738 = vst [vmem:[#allocation1] ss:$4 sm:$0xff] %v1514_v28  ;;  %v1028_v15 = vpop.f32.mrf.mxu0  ;;  %v2058_v28 = vshll.u32 %v6468_v48, 16  ;;  %v1883_v61 = vrot.slane %v6481_v40, 2  ;;  %v2064_v25 = vshll.u32 %v6487_v21, 16 }
 0x151   : > { %1739 = vst [vmem:[#allocation1 + $0x1] ss:$4 sm:$0xff] %v1515_v30  ;;  %v6470_v14 = vld.sshfl [vmem:[#allocation1 + $0x20] sm:$0xff pattern:$0x73625140]  ;;  %v1128_v17 = vrot.slane %v1028_v15, 2  ;;  %v1316_v26 = vadd.f32 %v6171_v50, %v1028_v15 }
 0x152   : > { %1740 = vst [vmem:[#allocation1 + $0x2] ss:$4 sm:$0xff] %v1516_v34  ;;  %v1129_v56 = vrot.slane %v1028_v15, 4  ;;  %v1130_v19 = vrot.slane %v1028_v15, 6  ;;  %v2060_v55 = vrot.slane %v2058_v28, 7 }
 0x153   : > { %1741 = vst [vmem:[#allocation1 + $0x3] ss:$4 sm:$0xff] %v1517_v5  ;;  %v1317_v30 = vadd.f32 %v6180_v60, %v1128_v17  ;;  %v1414_v42 = vmax.f32 %v1316_v26, 0.0  ;;  %v8615_v26 = vrot.slane %v6495_v58, 2 }
 0x154   : > { %1742 = vst [vmem:[#allocation1 + $0x20] ss:$4 sm:$0xff] %v1518_v7  ;;  %v1318_v34 = vadd.f32 %v6184_v62, %v1129_v56  ;;  %v1319_v32 = vadd.f32 %v6199_v10, %v1130_v19  ;;  %v1795_v7 = vpack.c.bf16 %v6282_v52, %v6282_v52  ;;  %v2061_v19 = vor.u32 %v2060_v55, %v2057_v53 }
 0x155   : > { %1743 = vst [vmem:[#allocation1 + $0x21] ss:$4 sm:$0xff] %v1519_v8  ;;  %v1415_v44 = vmax.f32 %v1317_v30, 0.0  ;;  %v1521_v51 = vadd.f32 %v6192_v3, %v1414_v42  ;;  %v2073_v8 = vshll.u32 %v6484_v49, 16  ;;  %v2077_v52 = vshrl.u32 %v6484_v49, 16 }
 0x156   : > { %1744 = vst [vmem:[#allocation1 + $0x22] ss:$4 sm:$0xff] %v1520_v9  ;;  %v1416_v50 = vmax.f32 %v1318_v34, 0.0  ;;  %v1417_v47 = vmax.f32 %v1319_v32, 0.0  ;;  %v6511_v32 = vsel %vm1902_vm4, %v6481_v40, %v1883_v61  ;;  %v1880_v39 = vrot.slane %v1795_v7, 2 }
 0x157   : > { %v1522_v35 = vadd.f32 %v6206_v16, %v1415_v44  ;;  %v6513_v42 = vrot.slane %v2073_v8, 7  ;;  %v6518_v55 = vrot.slane %v2064_v25, 7 }
 0x158   : > { %v1523_v0 = vadd.f32 %v6210_v20, %v1416_v50  ;;  %v1524_v31 = vadd.f32 %v6225_v37, %v1417_v47  ;;  %v1031_v5 = vpop.f32.mrf.mxu0  ;;  %v6536_v25 = vsel %vm1902_vm4, %v1795_v7, %v1880_v39 }
 0x159   : > { %v1131_v9 = vrot.slane %v1031_v5, 2  ;;  %v1132_v15 = vrot.slane %v1031_v5, 4  ;;  %v1133_v17 = vrot.slane %v1031_v5, 6  ;;  %v1320_v56 = vadd.f32 %v5938_v1, %v1031_v5 }
 0x15a   : > { %v6489_v57 = vld.sshfl [vmem:[#allocation1] sm:$0xff pattern:$0x73625140] }
 0x15b   : > { %1747 = vst [vmem:[#allocation1] ss:$4 sm:$0xff] %v1521_v51  ;;  %v1321_v27 = vadd.f32 %v6180_v60, %v1131_v9  ;;  %v1322_v28 = vadd.f32 %v6184_v62, %v1132_v15  ;;  %v1323_v30 = vadd.f32 %v5938_v1, %v1133_v17  ;;  %v1418_v34 = vmax.f32 %v1320_v56, 0.0 }
 0x15c   : > { %1748 = vst [vmem:[#allocation1 + $0x1] ss:$4 sm:$0xff] %v1522_v35  ;;  %v1799_v35 = vpack.c.bf16 %v6317_v54, %v6317_v54  ;;  %v6531_v15 = vrot.slane %v2061_v19, 2  ;;  %v2137_v17 = vshll.u32 %v6511_v32, 16  ;;  %v2141_v56 = vshrl.u32 %v6511_v32, 16 }
 0x15d   : > { %1749 = vst [vmem:[#allocation1 + $0x2] ss:$4 sm:$0xff] %v1523_v0  ;;  %v1419_v44 = vmax.f32 %v1321_v27, 0.0  ;;  %v1420_v50 = vmax.f32 %v1322_v28, 0.0  ;;  %v1421_v47 = vmax.f32 %v1323_v30, 0.0  ;;  %v1525_v51 = vadd.f32 %v6192_v3, %v1418_v34 }
 0x15e   : > { %1750 = vst [vmem:[#allocation1 + $0x3] ss:$4 sm:$0xff] %v1524_v31  ;;  %v6516_v53 = vld.sshfl [vmem:[#allocation1 + $0x20] sm:$0xff pattern:$0x73625140]  ;;  %v6522_v0 = vrot.slane %v2077_v52, 6 }
 0x15f   : > { %v6526_v31 = vshll.u32 %v8615_v26, 16  ;;  %v1526_v5 = vadd.f32 %v6206_v16, %v1419_v44  ;;  %v1527_v8 = vadd.f32 %v6210_v20, %v1420_v50  ;;  %v1528_v9 = vadd.f32 %v6192_v3, %v1421_v47  ;;  %1751 = vst [vmem:[#allocation1 + $0x20] ss:$4 sm:$0xff] %v1525_v51 }
 0x160   : > { %v1033_v54 = vpop.f32.mrf.mxu0  ;;  %v2068_v52 = vshrl.u32 %v6487_v21, 16  ;;  %v6548_v44 = vsel %vm1906_vm5, %v6481_v40, %v1883_v61  ;;  %v1800_v47 = vpack.c.bf16 %v6311_v38, %v6311_v38  ;;  %v1884_v51 = vrot.slane %v1799_v35, 2 }
 0x161   : > { %1752 = vst [vmem:[#allocation1 + $0x21] ss:$4 sm:$0xff] %v1526_v5  ;;  %v1134_v28 = vrot.slane %v1033_v54, 2  ;;  %v1135_v19 = vrot.slane %v1033_v54, 4  ;;  %v1136_v30 = vrot.slane %v1033_v54, 6  ;;  %v1324_v34 = vadd.f32 %v6180_v60, %v1033_v54 }
 0x162   : > { %1753 = vst [vmem:[#allocation1 + $0x22] ss:$4 sm:$0xff] %v1527_v8  ;;  %v1919_v26 = vsel %vm1906_vm5, %v1795_v7, %v1880_v39  ;;  %v1804_v40 = vpack.c.bf16 %v6345_v45, %v6345_v45  ;;  %v2070_v61 = vrot.slane %v2068_v52, 6  ;;  %v2087_v38 = vshrl.u32 %v6536_v25, 16 }
 0x163   : > { %v1325_v5 = vadd.f32 %v6184_v62, %v1134_v28  ;;  %v1326_v11 = vadd.f32 %v6199_v10, %v1135_v19  ;;  %v1327_v13 = vadd.f32 %v5938_v1, %v1136_v30  ;;  %v1422_v54 = vmax.f32 %v1324_v34, 0.0 }
 0x164   : > { %v2090_v8 = vshll.u32 %v6536_v25, 16  ;;  %v6566_v1 = vrot.slane %v2137_v17, 7  ;;  %v2143_v19 = vrot.slane %v2141_v56, 6  ;;  %v1885_v27 = vrot.slane %v1800_v47, 2 }
 0x165   : > { %v6550_v50 = vld.sshfl [vmem:[#allocation1] sm:$0xff pattern:$0x73625140]  ;;  %v1423_v7 = vmax.f32 %v1325_v5, 0.0  ;;  %v1424_v39 = vmax.f32 %v1326_v11, 0.0  ;;  %v1529_v28 = vadd.f32 %v6206_v16, %v1422_v54  ;;  %v8799_v30 = vmov 0 }
 0x166   : > { %8797 = vst [vmem:[#allocation11_spill] sm:$0xff] %v6550_v50  ;;  %v8800_v30 = vsel %vm6569_vm12, 4294967295, %v8799_v30  ;;  %v6577_v34 = vrot.slane %v1919_v26, 2  ;;  %v2080_v17 = vor.u32 %v6522_v0, %v6513_v42  ;;  %v2089_v56 = vrot.slane %v2087_v38, 6 }
 0x167   : > { %1756 = vst [vmem:[#allocation1] ss:$4 sm:$0xff] %v1528_v9  ;;  %v1425_v9 = vmax.f32 %v1327_v13, 0.0  ;;  %v1530_v45 = vadd.f32 %v6210_v20, %v1423_v7  ;;  %v1531_v52 = vadd.f32 %v6225_v37, %v1424_v39  ;;  %v1943_v13 = vsel %vm1906_vm5, %v1799_v35, %v1884_v51 }
 0x168   : > { %8798 = vst [vmem:[#allocation12_spill] sm:$0xff] %v6566_v1  ;;  %v2092_v5 = vrot.slane %v2090_v8, 7  ;;  %v1889_v54 = vrot.slane %v1804_v40, 2  ;;  %v2071_v7 = vor.u32 %v2070_v61, %v6518_v55  ;;  %v8803_v37 = vrot.slane %v6548_v44, 2 }
 0x169   : > { %8801 = vst [vmem:[#allocation13_spill] sm:$0xff] %v8800_v30  ;;  %v1532_v11 = vadd.f32 %v6192_v3, %v1425_v9  ;;  %v6581_v10 = vld.sshfl [vmem:[#allocation1 + $0x20] sm:$0xff pattern:$0x73625140]  ;;  %v2067_v3 = vsel %vm6569_vm12, %v6531_v15, %v6518_v55  ;;  %v6593_v26 = vsel %vm1902_vm4, %v1799_v35, %v1884_v51  ;;  %v6595_v0 = vrot.slane %v1943_v13, 2 }
 0x16a   : > { %1757 = vst [vmem:[#allocation1 + $0x1] ss:$4 sm:$0xff] %v1529_v28  ;;  %v6586_v39 = vshll.u32 %v8803_v37, 16  ;;  %v2144_v38 = vor.u32 %v2143_v19, %v6566_v1  ;;  %v8806_v8 = vrot.slane %v6354_v6, 2  ;;  %v1805_v9 = vpack.c.bf16 %v6373_v43, %v6373_v43 }
 0x16b   : > { %8802 = vst [vmem:[#allocation14_spill] sm:$0xff] %v6581_v10  ;;  %v6605_v28 = vsel %vm1902_vm4, %v1800_v47, %v1885_v27  ;;  %v6608_v55 = vsel %vm1906_vm5, %v1800_v47, %v1885_v27  ;;  %v2081_v35 = vrot.slane %v2080_v17, 2  ;;  %v2093_v15 = vor.u32 %v2092_v5, %v2089_v56 }
 0x16c   : > { %1758 = vst [vmem:[#allocation1 + $0x2] ss:$4 sm:$0xff] %v1530_v45  ;;  %v1967_v61 = vsel %vm1906_vm5, %v6354_v6, %v8806_v8  ;;  %v2096_v51 = vshll.u32 %v6577_v34, 16  ;;  %v6612_v19 = vsel %vm1902_vm4, %v1804_v40, %v1889_v54  ;;  %v2072_v45 = vrot.slane %v2071_v7, 2 }
 0x16d   : > { %1759 = vst [vmem:[#allocation1 + $0x3] ss:$4 sm:$0xff] %v1531_v52  ;;  %v2151_v6 = vshrl.u32 %v6593_v26, 16  ;;  %v2154_v52 = vshll.u32 %v6593_v26, 16  ;;  %v2085_v43 = vrot.slane %v6526_v31, 7  ;;  %v2160_v13 = vshll.u32 %v6595_v0, 16 }
 0x16e   : > { %8804 = vst [vmem:[#allocation15_spill] sm:$0xff] %v6593_v26  ;;  %v2164_v47 = vshrl.u32 %v6595_v0, 16  ;;  %v1890_v27 = vrot.slane %v1805_v9, 2  ;;  %v2076_v17 = vsel %vm6569_vm12, %v2072_v45, %v6513_v42  ;;  %v2169_v56 = vshll.u32 %v6605_v28, 16 }
 0x16f   : > { %8805 = vst [vmem:[#allocation16_spill] sm:$0xff] %v6595_v0  ;;  %v2173_v5 = vshrl.u32 %v6605_v28, 16  ;;  %v2233_v7 = vshll.u32 %v6612_v19, 16  ;;  %v2086_v37 = vsel %vm6569_vm12, %v2081_v35, %v2085_v43  ;;  %v2094_v8 = vrot.slane %v2093_v15, 2 }
 0x170   : > { %1760 = vst [vmem:[#allocation1 + $0x20] ss:$4 sm:$0xff] %v1532_v11  ;;  %v6616_v11 = vrot.slane %v1967_v61, 2  ;;  %v6629_v31 = vrot.slane %v2096_v51, 7  ;;  %v6632_v61 = vsel %vm1906_vm5, %v1804_v40, %v1889_v54  ;;  %v2237_v50 = vshrl.u32 %v6612_v19, 16 }
 0x171   : > { %8807 = vst [vmem:[#allocation17_spill] sm:$0xff] %v6605_v28  ;;  %v2153_v42 = vrot.slane %v2151_v6, 6  ;;  %v2156_v45 = vrot.slane %v2154_v52, 7  ;;  %v2162_v1 = vrot.slane %v2160_v13, 7  ;;  %v2166_v10 = vrot.slane %v2164_v47, 6 }
 0x172   : > { %8808 = vst [vmem:[#allocation18_spill] sm:$0xff] %v6612_v19  ;;  %v2224_v46 = vshll.u32 %v6616_v11, 16  ;;  %v2228_v36 = vshrl.u32 %v6616_v11, 16  ;;  %v1809_v35 = vpack.c.bf16 %v6413_v59, %v6413_v59  ;;  %v1979_v15 = vsel %vm1906_vm5, %v1805_v9, %v1890_v27 }
 0x173   : > { %8809 = vst [vmem:[#allocation19_spill] sm:$0xff] %v6616_v11  ;;  %v2171_v40 = vrot.slane %v2169_v56, 7  ;;  %v2175_v54 = vrot.slane %v2173_v5, 6  ;;  %v2149_v51 = vrot.slane %v6586_v39, 7  ;;  %v2145_v43 = vrot.slane %v2144_v38, 2 }
 0x174   : > { %8810 = vst [vmem:[#allocation20_spill] sm:$0xff] %v6629_v31  ;;  %v6635_v23 = vld.sshfl [vmem:[#allocation1] sm:$0xff pattern:$0x73625140]  ;;  %v6646_v6 = vsel %vm6569_vm12, %v2094_v8, %v6629_v31  ;;  %v8622_v52 = vrot.slane %v6632_v61, 2  ;;  %v8620_v13 = vrot.slane %v6608_v55, 2  ;;  %v2157_v59 = vor.u32 %v2156_v45, %v2153_v42 }
 0x175   : > { %8811 = vst [vmem:[#allocation21_spill] sm:$0xff] %v6635_v23  ;;  %v2239_v47 = vrot.slane %v2237_v50, 6  ;;  %v6654_v39 = vrot.slane %v1979_v15, 2  ;;  %v2167_v38 = vor.u32 %v2166_v10, %v2162_v1  ;;  %v6656_v56 = vrot.slane %v2224_v46, 7 }
 0x176   : > { %2440 = vst [vmem:[#allocation1] ss:$4 sm:$0xff] %v2067_v3  ;;  %v2235_v3 = vrot.slane %v2233_v7, 7  ;;  %v2230_v5 = vrot.slane %v2228_v36, 6  ;;  %v1894_v8 = vrot.slane %v1809_v35, 2  ;;  %v6660_v7 = vsel %vm6569_vm12, %v2145_v43, %v2149_v51 }
 0x177   : > { %2443 = vst [vmem:[#allocation1 + $0x1] ss:$4 sm:$0xff] %v2076_v17  ;;  %v6652_v17 = vsel %vm1902_vm4, %v1805_v9, %v1890_v27  ;;  %v1810_v42 = vpack.c.bf16 %v6418_v12, %v6418_v12  ;;  %v6666_v50 = vpack.c.bf16 %v6428_v41, %v6428_v41  ;;  %v2158_v9 = vrot.slane %v2157_v59, 2 }
 0x178   : > { %8812 = vst [vmem:[#allocation22_spill] sm:$0xff] %v6646_v6  ;;  %v2179_v10 = vshll.u32 %v8620_v13, 16  ;;  %v2247_v46 = vshrl.u32 %v6652_v17, 16  ;;  %v2250_v36 = vshll.u32 %v6652_v17, 16  ;;  %v2243_v27 = vshll.u32 %v8622_v52, 16 }
 0x179   : > { %2446 = vst [vmem:[#allocation1 + $0x2] ss:$4 sm:$0xff] %v2086_v37  ;;  %v2176_v37 = vor.u32 %v2175_v54, %v2171_v40  ;;  %v2168_v45 = vrot.slane %v2167_v38, 2  ;;  %v2256_v15 = vshll.u32 %v6654_v39, 16  ;;  %v2260_v12 = vshrl.u32 %v6654_v39, 16 }
 0x17a   : > { %2449 = vst [vmem:[#allocation1 + $0x3] ss:$4 sm:$0xff] %v6646_v6  ;;  %v2231_v54 = vor.u32 %v2230_v5, %v6656_v56  ;;  %v2240_v41 = vor.u32 %v2239_v47, %v2235_v3  ;;  %v2003_v51 = vsel %vm1906_vm5, %v1809_v35, %v1894_v8  ;;  %v6679_v59 = vsel %vm1902_vm4, %v1809_v35, %v1894_v8 }
 0x17b   : > { %8813 = vst [vmem:[#allocation23_spill] sm:$0xff] %v6652_v17  ;;  %v2177_v43 = vrot.slane %v2176_v37, 2  ;;  %v1895_v13 = vrot.slane %v1810_v42, 2  ;;  %v1896_v23 = vrot.slane %v6666_v50, 2  ;;  %v8818_v6 = vrot.slane %v6382_v63, 2 }
 0x17c   : > { %8814 = vst [vmem:[#allocation24_spill] sm:$0xff] %v6654_v39  ;;  %v6692_v47 = vsel %vm6569_vm12, %v2158_v9, %v2162_v1  ;;  %v2181_v5 = vrot.slane %v2179_v10, 7  ;;  %v2249_v37 = vrot.slane %v2247_v46, 6  ;;  %v6695_v35 = vrot.slane %v2003_v51, 2 }
 0x17d   : > { %8815 = vst [vmem:[#allocation25_spill] sm:$0xff] %v6656_v56  ;;  %v6686_v38 = vsel %vm1902_vm4, %v6382_v63, %v8818_v6  ;;  %v2252_v56 = vrot.slane %v2250_v36, 7  ;;  %v6699_v8 = vsel %vm6569_vm12, %v2168_v45, %v2171_v40  ;;  %v2258_v33 = vrot.slane %v2256_v15, 7 }
 0x17e   : > { %8816 = vst [vmem:[#allocation26_spill] sm:$0xff] %v6660_v7  ;;  %v2262_v63 = vrot.slane %v2260_v12, 6  ;;  %v1814_v6 = vpack.c.bf16 %v6470_v14, %v6470_v14  ;;  %v2311_v1 = vshrl.u32 %v6679_v59, 16  ;;  %v2314_v9 = vshll.u32 %v6679_v59, 16 }
 0x17f   : > { %8817 = vst [vmem:[#allocation27_spill] sm:$0xff] %v6679_v59  ;;  %v6708_v10 = vsel %vm6569_vm12, %v2177_v43, %v2181_v5  ;;  %v2232_v46 = vrot.slane %v2231_v54, 2  ;;  %v1815_v40 = vpack.c.bf16 %v6489_v57, %v6489_v57  ;;  %v2245_v36 = vrot.slane %v2243_v27, 7 }
 0x180   : > { %8819 = vst [vmem:[#allocation28_spill] sm:$0xff] %v6686_v38  ;;  %v2241_v45 = vrot.slane %v2240_v41, 2  ;;  %v6715_v14 = vsel %vm1902_vm4, %v1810_v42, %v1895_v13  ;;  %v2253_v15 = vor.u32 %v2252_v56, %v2249_v37  ;;  %v6723_v51 = vsel %vm1902_vm4, %v6666_v50, %v1896_v23 }
 0x181   : > { %v6688_v52 = vld.sshfl [vmem:[#allocation1] sm:$0xff pattern:$0x73625140]  ;;  %8821 = vst [vmem:[#allocation30_spill] sm:$0xff] %v6692_v47  ;;  %v6719_v12 = vsel %vm6569_vm12, %v2232_v46, %v2235_v3  ;;  %v2263_v54 = vor.u32 %v2262_v63, %v2258_v33  ;;  %v2265_v43 = vshll.u32 %v6686_v38, 16  ;;  %v1899_v57 = vrot.slane %v1814_v6, 2 }
 0x182   : > { %8820 = vst [vmem:[#allocation29_spill] sm:$0xff] %v6688_v52  ;;  %v2313_v5 = vrot.slane %v2311_v1, 6  ;;  %v2320_v27 = vshll.u32 %v6695_v35, 16  ;;  %v1816_v41 = vpack.c.bf16 %v6516_v53, %v6516_v53  ;;  %v1900_v56 = vrot.slane %v1815_v40, 2 }
 0x183   : > { %2465 = vst [vmem:[#allocation1] ss:$4 sm:$0xff] %v6660_v7  ;;  %v2329_v37 = vshll.u32 %v6715_v14, 16  ;;  %v2333_v3 = vshrl.u32 %v6715_v14, 16  ;;  %v2254_v46 = vrot.slane %v2253_v15, 2  ;;  %v2343_v63 = vshrl.u32 %v6723_v51, 16 }
 0x184   : > { %8822 = vst [vmem:[#allocation31_spill] sm:$0xff] %v6695_v35  ;;  %v2346_v7 = vshll.u32 %v6723_v51, 16  ;;  %v6736_v1 = vsel %vm6569_vm12, %v2241_v45, %v2245_v36  ;;  %v2264_v53 = vrot.slane %v2263_v54, 2  ;;  %v6744_v52 = vsel %vm1902_vm4, %v1814_v6, %v1899_v57 }
 0x185   : > { %8823 = vst [vmem:[#allocation32_spill] sm:$0xff] %v6699_v8  ;;  %v2322_v2 = vrot.slane %v2320_v27, 7  ;;  %v2015_v31 = vsel %vm1906_vm5, %v6666_v50, %v1896_v23  ;;  %v1901_v20 = vrot.slane %v1816_v41, 2  ;;  %v2039_v36 = vsel %vm1906_vm5, %v1815_v40, %v1900_v56 }
 0x186   : > { %2467 = vst [vmem:[#allocation1 + $0x1] ss:$4 sm:$0xff] %v6692_v47  ;;  %v2324_v47 = vshrl.u32 %v6695_v35, 16  ;;  %v2331_v45 = vrot.slane %v2329_v37, 7  ;;  %v2335_v16 = vrot.slane %v2333_v3, 6  ;;  %v2345_v54 = vrot.slane %v2343_v63, 6 }
 0x187   : > { %8824 = vst [vmem:[#allocation33_spill] sm:$0xff] %v6708_v10  ;;  %v2393_v27 = vshll.u32 %v6744_v52, 16  ;;  %v2397_v3 = vshrl.u32 %v6744_v52, 16 }
 0x188   : > { %2469 = vst [vmem:[#allocation1 + $0x2] ss:$4 sm:$0xff] %v6699_v8  ;;  %v2316_v8 = vrot.slane %v2314_v9, 7  ;;  %v6739_v9 = vsel %vm1906_vm5, %v1810_v42, %v1895_v13  ;;  %v6754_v13 = vsel %vm6569_vm12, %v2254_v46, %v2258_v33  ;;  %v2326_v42 = vrot.slane %v2324_v47, 6 }
 0x189   : > { %2471 = vst [vmem:[#allocation1 + $0x3] ss:$4 sm:$0xff] %v6708_v10  ;;  %v6741_v10 = vrot.slane %v2265_v43, 7  ;;  %v8636_v23 = vrot.slane %v6739_v9, 2  ;;  %v6767_v33 = vsel %vm1902_vm4, %v1815_v40, %v1900_v56  ;;  %v6769_v47 = vrot.slane %v2039_v36, 2 }
 0x18a   : > { %8825 = vst [vmem:[#allocation34_spill] sm:$0xff] %v6715_v14  ;;  %v2317_v15 = vor.u32 %v2316_v8, %v2313_v5  ;;  %v2348_v8 = vrot.slane %v2346_v7, 7  ;;  %v6764_v5 = vrot.slane %v2015_v31, 2  ;;  %v6773_v7 = vsel %vm1906_vm5, %v1814_v6, %v1899_v57 }
 0x18b   : > { %8826 = vst [vmem:[#allocation35_spill] sm:$0xff] %v6719_v12  ;;  %v6761_v50 = vsel %vm6569_vm12, %v2264_v53, %v6741_v10  ;;  %v2336_v37 = vor.u32 %v2335_v16, %v2331_v45  ;;  %v6778_v46 = vsel %vm1902_vm4, %v1816_v41, %v1901_v20  ;;  %v2327_v31 = vor.u32 %v2326_v42, %v2322_v2 }
 0x18c   : > { %8827 = vst [vmem:[#allocation36_spill] sm:$0xff] %v6723_v51  ;;  %v2318_v43 = vrot.slane %v2317_v15, 2  ;;  %v2349_v63 = vor.u32 %v2348_v8, %v2345_v54  ;;  %v2339_v40 = vshll.u32 %v8636_v23, 16  ;;  %v2407_v56 = vshrl.u32 %v6767_v33, 16 }
 0x18d   : > { %8828 = vst [vmem:[#allocation37_spill] sm:$0xff] %v6736_v1  ;;  %v2410_v53 = vshll.u32 %v6767_v33, 16  ;;  %v2352_v16 = vshll.u32 %v6764_v5, 16  ;;  %v2416_v57 = vshll.u32 %v6769_v47, 16  ;;  %v2420_v15 = vshrl.u32 %v6769_v47, 16 }
 0x18e   : > { %8829 = vst [vmem:[#allocation38_spill] sm:$0xff] %v6741_v10  ;;  %v6786_v6 = vsel %vm6569_vm12, %v2318_v43, %v2322_v2  ;;  %v2337_v42 = vrot.slane %v2336_v37, 2  ;;  %v2425_v54 = vshll.u32 %v6778_v46, 16  ;;  %v2429_v8 = vshrl.u32 %v6778_v46, 16 }
 0x18f   : > { %8830 = vst [vmem:[#allocation39_spill] sm:$0xff] %v6744_v52  ;;  %v6794_v23 = vrot.slane %v2393_v27, 7  ;;  %v6797_v2 = vsel %vm1906_vm5, %v1816_v41, %v1901_v20  ;;  %v2341_v43 = vrot.slane %v2339_v40, 7  ;;  %v6805_v36 = vrot.slane %v2352_v16, 7 }
 0x190   : > { %v6748_v22 = vld.sshfl [vmem:[#allocation1] sm:$0xff pattern:$0x73625140]  ;;  %8832 = vst [vmem:[#allocation41_spill] sm:$0xff] %v6754_v13  ;;  %v2418_v4 = vrot.slane %v2416_v57, 7  ;;  %v2422_v27 = vrot.slane %v2420_v15, 6 }
 0x191   : > { %8831 = vst [vmem:[#allocation40_spill] sm:$0xff] %v6748_v22  ;;  %v2412_v22 = vrot.slane %v2410_v53, 7  ;;  %v2427_v20 = vrot.slane %v2425_v54, 7  ;;  %v2431_v41 = vrot.slane %v2429_v8, 6  ;;  %v8843_v40 = vrot.slane %v6773_v7, 2 }
 0x192   : > { %2483 = vst [vmem:[#allocation1] ss:$4 sm:$0xff] %v6719_v12  ;;  %v2350_v12 = vrot.slane %v2349_v63, 2  ;;  %v2423_v53 = vor.u32 %v2422_v27, %v2418_v4 }
 0x193   : > { %2485 = vst [vmem:[#allocation1 + $0x1] ss:$4 sm:$0xff] %v6736_v1  ;;  %v2328_v1 = vrot.slane %v2327_v31, 2  ;;  %v2432_v16 = vor.u32 %v2431_v41, %v2427_v20 }
 0x194   : > { %8833 = vst [vmem:[#allocation42_spill] sm:$0xff] %v6761_v50 }
 0x195   : > { %2487 = vst [vmem:[#allocation1 + $0x2] ss:$4 sm:$0xff] %v6754_v13  ;;  %v2399_v13 = vrot.slane %v2397_v3, 6  ;;  %v6803_v37 = vsel %vm6569_vm12, %v2328_v1, %v2331_v45  ;;  %v6810_v3 = vsel %vm6569_vm12, %v2337_v42, %v2341_v43  ;;  %v6817_v1 = vsel %vm6569_vm12, %v2350_v12, %v6805_v36 }
 0x196   : > { %8834 = vst [vmem:[#allocation43_spill] sm:$0xff] %v6764_v5  ;;  %v8646_v45 = vrot.slane %v6797_v2, 2  ;;  %v2424_v12 = vrot.slane %v2423_v53, 2  ;;  %v2433_v54 = vrot.slane %v2432_v16, 2  ;;  %v2905_v53 = vrot.slane %v6487_v21, 7 }
 0x197   : > { %8835 = vst [vmem:[#allocation44_spill] sm:$0xff] %v6767_v33  ;;  %v2400_v31 = vor.u32 %v2399_v13, %v6794_v23  ;;  %v8850_v16 = vmov 0 }
 0x198   : > { %8836 = vst [vmem:[#allocation45_spill] sm:$0xff] %v6769_v47  ;;  %v2435_v13 = vshll.u32 %v8646_v45, 16  ;;  %v6839_v27 = vsel %vm6569_vm12, %v2424_v12, %v2427_v20  ;;  %v8851_v16 = vsel %vm6882_vm3, 4294967295, %v8850_v16  ;;  %v2907_v12 = vrot.slane %v2905_v53, 2 }
 0x199   : > { %2489 = vst [vmem:[#allocation1 + $0x3] ss:$4 sm:$0xff] %v6761_v50  ;;  %v2409_v50 = vrot.slane %v2407_v56, 6  ;;  %v2403_v56 = vshll.u32 %v8843_v40, 16  ;;  %v2401_v57 = vrot.slane %v2400_v31, 2 }
 0x19a   : > { %8837 = vst [vmem:[#allocation46_spill] sm:$0xff] %v6778_v46  ;;  %v2437_v43 = vrot.slane %v2435_v13, 7  ;;  %v8853_v13 = vrot.slane %v6495_v58, 2 }
 0x19b   : > { %8838 = vst [vmem:[#allocation47_spill] sm:$0xff] %v6786_v6  ;;  %v2413_v63 = vor.u32 %v2412_v22, %v2409_v50  ;;  %v2405_v42 = vrot.slane %v2403_v56, 7  ;;  %v2908_v56 = vrot.slane %v6484_v49, 7 }
 0x19c   : > { %8840 = vst [vmem:[#allocation49_spill] sm:$0xff] %v6803_v37  ;;  %v6844_v41 = vsel %vm6569_vm12, %v2433_v54, %v2437_v43  ;;  %v8647_v54 = vrot.slane %v6577_v34, 7 }
 0x19d   : > { %8841 = vst [vmem:[#allocation50_spill] sm:$0xff] %v6810_v3  ;;  %v2414_v15 = vrot.slane %v2413_v63, 2  ;;  %v6828_v8 = vsel %vm6569_vm12, %v2401_v57, %v2405_v42  ;;  %v5492_v57 = vrot.slane %v6468_v48, 9  ;;  %v2911_v42 = vrot.slane %v8853_v13, 7 }
 0x19e   : > { %8842 = vst [vmem:[#allocation51_spill] sm:$0xff] %v6817_v1  ;;  %v8856_v13 = vrot.slane %v6548_v44, 2 }
 0x19f   : > { %8844 = vst [vmem:[#allocation52_spill] sm:$0xff] %v6828_v8  ;;  %v6834_v50 = vsel %vm6569_vm12, %v2414_v15, %v2418_v4  ;;  %v2910_v15 = vrot.slane %v2908_v56, 2  ;;  %v2906_v43 = vsel %vm6882_vm3, %v5492_v57, %v2905_v53  ;;  %v8650_v53 = vrot.slane %v6511_v32, 7 }
 0x1a0   : > { %v6799_v10 = vld.sshfl [vmem:[#allocation1] sm:$0xff pattern:$0x73625140]  ;;  %8845 = vst [vmem:[#allocation53_spill] sm:$0xff] %v6834_v50  ;;  %v2938_v57 = vrot.slane %v6605_v28, 7 }
 0x1a1   : > { %8839 = vst [vmem:[#allocation48_spill] sm:$0xff] %v6799_v10 }
 0x1a2   : > { %2501 = vst [vmem:[#allocation1] ss:$4 sm:$0xff] %v6786_v6 }
 0x1a3   : > { %2503 = vst [vmem:[#allocation1 + $0x1] ss:$4 sm:$0xff] %v6803_v37 }
 0x1a4   : > { %2505 = vst [vmem:[#allocation1 + $0x2] ss:$4 sm:$0xff] %v6810_v3  ;;  %v2100_v3 = vshrl.u32 %v6577_v34, 16 }
 0x1a5   : > { %2507 = vst [vmem:[#allocation1 + $0x3] ss:$4 sm:$0xff] %v6817_v1 }
 0x1a6   : > { %8846 = vst [vmem:[#allocation54_spill] sm:$0xff] %v6839_v27 }
 0x1a7   : > { %8847 = vst [vmem:[#allocation55_spill] sm:$0xff] %v6844_v41 }
 0x1a8   : > { %8852 = vst [vmem:[#allocation58_spill] sm:$0xff] %v8851_v16 }
 0x1ac   : > { %v6830_v22 = vld.sshfl [vmem:[#allocation1] sm:$0xff pattern:$0x73625140] }
 0x1ad   : > { %2519 = vst [vmem:[#allocation1] ss:$4 sm:$0xff] %v6828_v8 }
 0x1ae   : > { %2521 = vst [vmem:[#allocation1 + $0x1] ss:$4 sm:$0xff] %v6834_v50 }
 0x1af   : > { %2523 = vst [vmem:[#allocation1 + $0x2] ss:$4 sm:$0xff] %v6839_v27 }
 0x1b0   : > { %2525 = vst [vmem:[#allocation1 + $0x3] ss:$4 sm:$0xff] %v6844_v41  ;;  %v8879_v41 = vld [vmem:[#allocation4_spill] sm:$0xff] }
 0x1b7   : > { %v6848_v31 = vld.sshfl [vmem:[#allocation1] sm:$0xff pattern:$0x73625140] }
 0x1b8   : > { %2638 = vst [vmem:[#allocation1] ss:$4 sm:$0xff] %v6468_v48  ;;  %v2912_v48 = vsel %vm6882_vm3, %v2910_v15, %v2911_v42  ;;  %v2930_v15 = vrot.slane %v8650_v53, 2 }
 0x1b9   : > { %2640 = vst [vmem:[#allocation1 + $0x1] ss:$4 sm:$0xff] %v6487_v21  ;;  %v5493_v21 = vrot.slane %v6536_v25, 9 }
 0x1ba   : > { %2642 = vst [vmem:[#allocation1 + $0x2] ss:$4 sm:$0xff] %v6484_v49  ;;  %v2909_v49 = vsel %vm6882_vm3, %v2907_v12, %v2908_v56  ;;  %v2935_v56 = vrot.slane %v6595_v0, 7  ;;  %v2931_v12 = vrot.slane %v8856_v13, 7 }
 0x1bb   : > { %2644 = vst [vmem:[#allocation1 + $0x3] ss:$4 sm:$0xff] %v6536_v25  ;;  %v6903_v58 = vsel %vm6882_vm3, %v5493_v21, %v8647_v54  ;;  %v8857_v21 = vrot.slane %v6608_v55, 2 }
 0x1bc   : > { %8855 = vst [vmem:[#allocation60_spill] sm:$0xff] %v6903_v58  ;;  %v2937_v42 = vrot.slane %v2935_v56, 2 }
 0x1bd   : > { %v2941_v54 = vrot.slane %v8857_v21, 7 }
 0x1be   : > { %v6929_v13 = vsel %vm6882_vm3, %v2937_v42, %v2938_v57 }
 0x1bf   : > { %8861 = vst [vmem:[#allocation64_spill] sm:$0xff] %v6929_v13 }
 0x1c2   : > { %v6854_v4 = vld.sshfl [vmem:[#allocation1] sm:$0xff pattern:$0x73625140] }
 0x1c3   : > { %2655 = vst [vmem:[#allocation1] ss:$4 sm:$0xff] %v6511_v32 }
 0x1c4   : > { %2656 = vst [vmem:[#allocation1 + $0x1] ss:$4 sm:$0xff] %v6593_v26 }
 0x1c5   : > { %2657 = vst [vmem:[#allocation1 + $0x2] ss:$4 sm:$0xff] %v6595_v0 }
 0x1c6   : > { %2658 = vst [vmem:[#allocation1 + $0x3] ss:$4 sm:$0xff] %v6605_v28 }
 0x1cd   : > { %v6860_v20 = vld.sshfl [vmem:[#allocation1] sm:$0xff pattern:$0x73625140] }
 0x1ce   : > { %8848 = vst [vmem:[#allocation56_spill] sm:$0xff] %v6860_v20 }
 0x1cf   : > { %2665 = vst [vmem:[#allocation1] ss:$4 sm:$0xff] %v6616_v11 }
 0x1d0   : > { %2666 = vst [vmem:[#allocation1 + $0x1] ss:$4 sm:$0xff] %v6612_v19 }
 0x1d1   : > { %2667 = vst [vmem:[#allocation1 + $0x2] ss:$4 sm:$0xff] %v6652_v17 }
 0x1d2   : > { %2668 = vst [vmem:[#allocation1 + $0x3] ss:$4 sm:$0xff] %v6654_v39 }
 0x1d9   : > { %v6866_v63 = vld.sshfl [vmem:[#allocation1] sm:$0xff pattern:$0x73625140] }
 0x1da   : > { %8849 = vst [vmem:[#allocation57_spill] sm:$0xff] %v6866_v63 }
 0x1db   : > { %2675 = vst [vmem:[#allocation1] ss:$4 sm:$0xff] %v6679_v59 }
 0x1dc   : > { %2676 = vst [vmem:[#allocation1 + $0x1] ss:$4 sm:$0xff] %v6695_v35 }
 0x1dd   : > { %2677 = vst [vmem:[#allocation1 + $0x2] ss:$4 sm:$0xff] %v6715_v14 }
 0x1de   : > { %2678 = vst [vmem:[#allocation1 + $0x3] ss:$4 sm:$0xff] %v6723_v51 }
 0x1e5   : > { %v6872_v40 = vld.sshfl [vmem:[#allocation1] sm:$0xff pattern:$0x73625140] }
 0x1e6   : > { %2685 = vst [vmem:[#allocation1] ss:$4 sm:$0xff] %v6744_v52 }
 0x1e7   : > { %2686 = vst [vmem:[#allocation1 + $0x1] ss:$4 sm:$0xff] %v6767_v33 }
 0x1e8   : > { %2687 = vst [vmem:[#allocation1 + $0x2] ss:$4 sm:$0xff] %v6769_v47 }
 0x1e9   : > { %2688 = vst [vmem:[#allocation1 + $0x3] ss:$4 sm:$0xff] %v6778_v46 }
 0x1f0   : > { %v6892_v45 = vld.sshfl [vmem:[#allocation1] sm:$0xff pattern:$0x73625140] }
 0x1f1   : > { %8854 = vst [vmem:[#allocation59_spill] sm:$0xff] %v6892_v45 }
 0x1f2   : > { %3024 = vst [vmem:[#allocation1] ss:$4 sm:$0xff] %v2906_v43  ;;  %v5495_v43 = vrot.slane %v6593_v26, 9 }
 0x1f3   : > { %3027 = vst [vmem:[#allocation1 + $0x1] ss:$4 sm:$0xff] %v2909_v49  ;;  %v2940_v49 = vrot.slane %v2938_v57, 2  ;;  %v2965_v57 = vrot.slane %v6654_v39, 7 }
 0x1f4   : > { %3030 = vst [vmem:[#allocation1 + $0x2] ss:$4 sm:$0xff] %v2912_v48  ;;  %v6918_v48 = vsel %vm6882_vm3, %v2930_v15, %v2931_v12  ;;  %v6924_v44 = vsel %vm6882_vm3, %v5495_v43, %v2935_v56  ;;  %v2958_v12 = vrot.slane %v6612_v19, 7  ;;  %v8655_v56 = vrot.slane %v6616_v11, 7 }
 0x1f5   : > { %3033 = vst [vmem:[#allocation1 + $0x3] ss:$4 sm:$0xff] %v6903_v58  ;;  %v6934_v55 = vsel %vm6882_vm3, %v2940_v49, %v2941_v54  ;;  %v8863_v43 = vrot.slane %v6632_v61, 2  ;;  %v1797_v54 = vpack.c.bf16 %v6302_v18, %v6302_v18  ;;  %v8660_v49 = vrot.slane %v6686_v38, 7 }
 0x1f6   : > { %8858 = vst [vmem:[#allocation61_spill] sm:$0xff] %v6918_v48  ;;  %v2960_v15 = vrot.slane %v2958_v12, 2  ;;  %v2957_v42 = vrot.slane %v8655_v56, 2 }
 0x1f7   : > { %8860 = vst [vmem:[#allocation63_spill] sm:$0xff] %v6924_v44  ;;  %v2961_v21 = vrot.slane %v8863_v43, 7  ;;  %v2967_v43 = vrot.slane %v2965_v57, 2  ;;  %v1882_v56 = vrot.slane %v1797_v54, 2 }
 0x1f8   : > { %8862 = vst [vmem:[#allocation65_spill] sm:$0xff] %v6934_v55  ;;  %v6950_v53 = vsel %vm6882_vm3, %v2957_v42, %v2958_v12  ;;  %v5500_v42 = vrot.slane %v6679_v59, 9 }
 0x1f9   : > { %8864 = vst [vmem:[#allocation66_spill] sm:$0xff] %v6950_v53  ;;  %v6957_v61 = vsel %vm6882_vm3, %v2960_v15, %v2961_v21  ;;  %v6969_v12 = vsel %vm6882_vm3, %v2967_v43, %v8660_v49  ;;  %v2988_v15 = vrot.slane %v6715_v14, 7  ;;  %v2985_v21 = vrot.slane %v6695_v35, 7 }
 0x1fa   : > { %8866 = vst [vmem:[#allocation68_spill] sm:$0xff] %v6957_v61 }
 0x1fb   : > { %8868 = vst [vmem:[#allocation70_spill] sm:$0xff] %v6969_v12  ;;  %v6989_v50 = vsel %vm6882_vm3, %v5500_v42, %v2985_v21 }
 0x1fc   : > { %v6920_v27 = vld.sshfl [vmem:[#allocation1] sm:$0xff pattern:$0x73625140]  ;;  %8870 = vst [vmem:[#allocation71_spill] sm:$0xff] %v6989_v50 }
 0x1fd   : > { %8859 = vst [vmem:[#allocation62_spill] sm:$0xff] %v6920_v27 }
 0x1fe   : > { %3049 = vst [vmem:[#allocation1] ss:$4 sm:$0xff] %v6918_v48  ;;  %v8671_v48 = vrot.slane %v6764_v5, 7 }
 0x1ff   : > { %3051 = vst [vmem:[#allocation1 + $0x1] ss:$4 sm:$0xff] %v6924_v44 }
 0x200   : > { %3053 = vst [vmem:[#allocation1 + $0x2] ss:$4 sm:$0xff] %v6929_v13  ;;  %v5498_v13 = vrot.slane %v6652_v17, 9 }
 0x201   : > { %3055 = vst [vmem:[#allocation1 + $0x3] ss:$4 sm:$0xff] %v6934_v55  ;;  %v1036_v55 = vpop.f32.mrf.mxu0 }
 0x202   : > { %v6962_v18 = vsel %vm6882_vm3, %v5498_v13, %v2965_v57  ;;  %v1931_v13 = vsel %vm1906_vm5, %v1797_v54, %v1882_v56  ;;  %v1796_v57 = vpack.c.bf16 %v6266_v24, %v6266_v24  ;;  %v1137_v37 = vrot.slane %v1036_v55, 2 }
 0x203   : > { %8867 = vst [vmem:[#allocation69_spill] sm:$0xff] %v6962_v18  ;;  %v6981_v49 = vrot.slane %v1931_v13, 2 }
 0x205   : > { %v2132_v42 = vshrl.u32 %v6981_v49, 16 }
 0x208   : > { %v6953_v44 = vld.sshfl [vmem:[#allocation1] sm:$0xff pattern:$0x73625140] }
 0x209   : > { %8865 = vst [vmem:[#allocation67_spill] sm:$0xff] %v6953_v44  ;;  %v1329_v44 = vadd.f32 %v6184_v62, %v1137_v37  ;;  %v8882_v37 = vld [vmem:[#allocation2_spill] sm:$0xff] }
 0x20a   : > { %3067 = vst [vmem:[#allocation1] ss:$4 sm:$0xff] %v6950_v53  ;;  %v8869_v53 = vrot.slane %v6739_v9, 2  ;;  %v5501_v9 = vrot.slane %v6723_v51, 9 }
 0x20b   : > { %3069 = vst [vmem:[#allocation1 + $0x1] ss:$4 sm:$0xff] %v6957_v61  ;;  %v2990_v61 = vrot.slane %v2988_v15, 2  ;;  %v1427_v62 = vmax.f32 %v1329_v44, 0.0  ;;  %v8885_v44 = vld [vmem:[#allocation3_spill] sm:$0xff] }
 0x20c   : > { %3071 = vst [vmem:[#allocation1 + $0x2] ss:$4 sm:$0xff] %v6962_v18  ;;  %v2991_v43 = vrot.slane %v8869_v53, 7  ;;  %v2987_v18 = vrot.slane %v2985_v21, 2  ;;  %v1881_v53 = vrot.slane %v1796_v57, 2  ;;  %v2128_v21 = vshll.u32 %v6981_v49, 16 }
 0x20d   : > { %3073 = vst [vmem:[#allocation1 + $0x3] ss:$4 sm:$0xff] %v6969_v12  ;;  %v5849_v12 = vld [vmem:[%s8610_s4 + $0x68] sm:$0xff] }
 0x20e   : > { %v6995_v8 = vsel %vm6882_vm3, %v2987_v18, %v2988_v15  ;;  %2586 = vmatpush.bf16.msra.mxu1 %v5849_v12  ;;  %5910 = vmatpush.bf16.msra.mxu3 %v5849_v12  ;;  %v7001_v13 = vsel %vm6882_vm3, %v2990_v61, %v2991_v43  ;;  %v7011_v15 = vsel %vm6882_vm3, %v5501_v9, %v8671_v48  ;;  %v5848_v61 = vld [vmem:[%s8610_s4 + $0x60] sm:$0xff]  ;;  %v3015_v12 = vrot.slane %v6769_v47, 7 }
 0x20f   : > { %8872 = vst [vmem:[#allocation73_spill] sm:$0xff] %v6995_v8  ;;  %v7020_v43 = vsel %vm1902_vm4, %v1796_v57, %v1881_v53  ;;  %v7023_v18 = vsel %vm1902_vm4, %v1797_v54, %v1882_v56  ;;  %v3018_v9 = vrot.slane %v6778_v46, 7  ;;  %v7026_v48 = vrot.slane %v2128_v21, 7 }
 0x210   : > { %8873 = vst [vmem:[#allocation74_spill] sm:$0xff] %v7001_v13  ;;  %v1328_v56 = vadd.f32 %v6180_v60, %v1036_v55  ;;  %v2105_v54 = vshll.u32 %v7020_v43, 16  ;;  %v2109_v21 = vshrl.u32 %v7020_v43, 16  ;;  %v3017_v6 = vrot.slane %v3015_v12, 2 }
 0x211   : > { %8874 = vst [vmem:[#allocation75_spill] sm:$0xff] %v7011_v15  ;;  %v1802_v60 = vpack.c.bf16 %v8879_v41, %v8879_v41  ;;  %v2119_v55 = vshrl.u32 %v7023_v18, 16  ;;  %v2122_v47 = vshll.u32 %v7023_v18, 16  ;;  %v2102_v41 = vrot.slane %v2100_v3, 6 }
 0x212   : > { %2587 = vmatpush.bf16.msra.mxu1 %v5848_v61  ;;  %5911 = vmatpush.bf16.msra.mxu3 %v5848_v61  ;;  %v1801_v61 = vpack.c.bf16 %v6336_v29, %v6336_v29  ;;  %v1426_v58 = vmax.f32 %v1328_v56, 0.0  ;;  %v7063_v56 = vsel %vm6882_vm3, %v3017_v6, %v3018_v9  ;;  %v1038_v6 = vpop.f32.mrf.mxu0 }
 0x213   : > { %8883 = vst [vmem:[#allocation2_spill] sm:$0xff] %v7063_v56  ;;  %v2124_v3 = vrot.slane %v2122_v47, 7 }
 0x214   : > { %v6991_v24 = vld.sshfl [vmem:[#allocation1] sm:$0xff pattern:$0x73625140]  ;;  %v1886_v27 = vrot.slane %v1801_v61, 2 }
 0x215   : > { %8871 = vst [vmem:[#allocation72_spill] sm:$0xff] %v6991_v24 }
 0x216   : > { %3085 = vst [vmem:[#allocation1] ss:$4 sm:$0xff] %v6989_v50  ;;  %v7082_v47 = vsel %vm1902_vm4, %v1801_v61, %v1886_v27 }
 0x217   : > { %3087 = vst [vmem:[#allocation1 + $0x1] ss:$4 sm:$0xff] %v6995_v8  ;;  %v8875_v8 = vrot.slane %v6744_v52, 7 }
 0x218   : > { %3089 = vst [vmem:[#allocation1 + $0x2] ss:$4 sm:$0xff] %v7001_v13  ;;  %v2134_v13 = vrot.slane %v2132_v42, 6  ;;  %v5503_v42 = vrot.slane %v6767_v33, 9 }
 0x219   : > { %3091 = vst [vmem:[#allocation1 + $0x3] ss:$4 sm:$0xff] %v7011_v15  ;;  %v3010_v50 = vrot.slane %v8875_v8, 2  ;;  %v8876_v15 = vrot.slane %v6773_v7, 2  ;;  %v3020_v8 = vrot.slane %v3018_v9, 2  ;;  %v8877_v7 = vrot.slane %v6797_v2, 2 }
 0x21a   : > { %v7054_v2 = vsel %vm6882_vm3, %v5503_v42, %v3015_v12  ;;  %v8886_v9 = vld [vmem:[#allocation5_spill] sm:$0xff] }
 0x21b   : > { %v3011_v24 = vrot.slane %v8876_v15, 7  ;;  %v3021_v15 = vrot.slane %v8877_v7, 7  ;;  %8881 = vst [vmem:[#allocation77_spill] sm:$0xff] %v7054_v2  ;;  %v2107_v7 = vrot.slane %v2105_v54, 7  ;;  %v2215_v42 = vshrl.u32 %v8886_v9, 16 }
 0x21c   : > { %v2218_v54 = vshll.u32 %v8886_v9, 16 }
 0x21d   : > { %v7044_v29 = vsel %vm6882_vm3, %v3010_v50, %v3011_v24  ;;  %v1533_v50 = vadd.f32 %v8882_v37, %v1426_v58  ;;  %v7059_v24 = vsel %vm1906_vm5, %v1796_v57, %v1881_v53  ;;  %v7068_v12 = vsel %vm6882_vm3, %v3020_v8, %v3021_v15  ;;  %v8887_v15 = vld [vmem:[#allocation20_spill] sm:$0xff] }
 0x21e   : > { %8878 = vst [vmem:[#allocation76_spill] sm:$0xff] %v7044_v29  ;;  %v1534_v58 = vadd.f32 %v8885_v44, %v1427_v62  ;;  %v2135_v57 = vor.u32 %v2134_v13, %v7026_v48  ;;  %v2121_v53 = vrot.slane %v2119_v55, 6  ;;  %v1955_v37 = vsel %vm1906_vm5, %v1801_v61, %v1886_v27  ;;  %v8888_v62 = vld [vmem:[#allocation7_spill] sm:$0xff]  ;;  %v8890_v27 = vld [vmem:[#allocation8_spill] sm:$0xff] }
 0x21f   : > { %8884 = vst [vmem:[#allocation78_spill] sm:$0xff] %v7068_v12  ;;  %v1807_v13 = vpack.c.bf16 %v8888_v62, %v8888_v62  ;;  %v7084_v44 = vrot.slane %v1955_v37, 2  ;;  %v2186_v62 = vshll.u32 %v7082_v47, 16  ;;  %v8891_v37 = vld [vmem:[#allocation14_spill] sm:$0xff] }
 0x220   : > { %v7050_v33 = vld.sshfl [vmem:[#allocation1] sm:$0xff pattern:$0x73625140]  ;;  %1761 = vst [vmem:[#allocation1 + $0x21] ss:$4 sm:$0xff] %v1533_v50  ;;  %v2125_v6 = vor.u32 %v2124_v3, %v2121_v53 }
 0x221   : > { %8880 = vst [vmem:[#allocation4_spill] sm:$0xff] %v7050_v33  ;;  %v2111_v33 = vrot.slane %v2109_v21, 6  ;;  %v1887_v21 = vrot.slane %v1802_v60, 2  ;;  %v1892_v61 = vrot.slane %v1807_v13, 2  ;;  %v2196_v14 = vshrl.u32 %v7084_v44, 16 }
 0x222   : > { %3103 = vst [vmem:[#allocation1] ss:$4 sm:$0xff] %v7044_v29  ;;  %v2217_v29 = vrot.slane %v2215_v42, 6  ;;  %v2126_v42 = vrot.slane %v2125_v6, 2  ;;  %v2188_v6 = vrot.slane %v2186_v62, 7 }
 0x223   : > { %3105 = vst [vmem:[#allocation1 + $0x1] ss:$4 sm:$0xff] %v7054_v2  ;;  %v2112_v55 = vor.u32 %v2111_v33, %v2107_v7  ;;  %v2136_v2 = vrot.slane %v2135_v57, 2  ;;  %v7087_v50 = vsel %vm1902_vm4, %v1802_v60, %v1887_v21  ;;  %v1808_v33 = vpack.c.bf16 %v8890_v27, %v8890_v27 }
 0x224   : > { %3107 = vst [vmem:[#allocation1 + $0x2] ss:$4 sm:$0xff] %v7063_v56  ;;  %v2103_v56 = vor.u32 %v2102_v41, %v8887_v15  ;;  %v8889_v41 = vrot.slane %v7059_v24, 2  ;;  %v2183_v15 = vshrl.u32 %v7082_v47, 16  ;;  %v7097_v57 = vpack.c.bf16 %v8891_v37, %v8891_v37 }
 0x225   : > { %3109 = vst [vmem:[#allocation1 + $0x3] ss:$4 sm:$0xff] %v7068_v12  ;;  %v2220_v12 = vrot.slane %v2218_v54, 7  ;;  %v2113_v53 = vrot.slane %v2112_v55, 2  ;;  %v2201_v54 = vshll.u32 %v7087_v50, 16  ;;  %v7110_v37 = vsel %vm1906_vm5, %v1802_v60, %v1887_v21 }
 0x226   : > { %1762 = vst [vmem:[#allocation1 + $0x22] ss:$4 sm:$0xff] %v1534_v58  ;;  %v2104_v8 = vrot.slane %v2103_v56, 2  ;;  %v2115_v58 = vshll.u32 %v8889_v41, 16  ;;  %v2192_v56 = vshll.u32 %v7084_v44, 16  ;;  %v2205_v41 = vshrl.u32 %v7087_v50, 16 }
 0x227   : > { %v1893_v35 = vrot.slane %v1808_v33, 2  ;;  %v2221_v59 = vor.u32 %v2220_v12, %v2217_v29  ;;  %v1991_v17 = vsel %vm1906_vm5, %v1807_v13, %v1892_v61  ;;  %v2203_v60 = vrot.slane %v2201_v54, 7 }
 0x228   : > { %v2117_v55 = vrot.slane %v2115_v58, 7  ;;  %v2207_v21 = vrot.slane %v2205_v41, 6  ;;  %v8715_v58 = vrot.slane %v7097_v57, 2  ;;  %v7126_v29 = vsel %vm1902_vm4, %v1807_v13, %v1892_v61 }
 0x229   : > { %8894 = vst [vmem:[#allocation20_spill] sm:$0xff] %v7126_v29  ;;  %v2194_v12 = vrot.slane %v2192_v56, 7  ;;  %v7142_v13 = vsel %vm1902_vm4, %v1808_v33, %v1893_v35  ;;  %v2222_v61 = vrot.slane %v2221_v59, 2  ;;  %v2282_v41 = vshll.u32 %v7126_v29, 16 }
 0x22a   : > { %8898 = vst [vmem:[#allocation14_spill] sm:$0xff] %v7142_v13 }
 0x22c   : > { %v7099_v3 = vld.sshfl [vmem:[#allocation1] sm:$0xff pattern:$0x73625140] }
 0x22d   : > { %8892 = vst [vmem:[#allocation3_spill] sm:$0xff] %v7099_v3  ;;  %v7107_v27 = vld.sshfl [vmem:[#allocation1 + $0x20] sm:$0xff pattern:$0x73625140]  ;;  %v2185_v3 = vrot.slane %v2183_v15, 6  ;;  %v8896_v15 = vld [vmem:[#allocation12_spill] sm:$0xff] }
 0x22e   : > { %3342 = vst [vmem:[#allocation1] ss:$4 sm:$0xff] %v6536_v25  ;;  %v7116_v25 = vsel %vm6569_vm12, %v2104_v8, %v2107_v7  ;;  %v7131_v7 = vsel %vm6569_vm12, %v2126_v42, %v7026_v48  ;;  %v2198_v8 = vrot.slane %v2196_v14, 6  ;;  %v7137_v62 = vsel %vm6569_vm12, %v2136_v2, %v8896_v15  ;;  %v8900_v42 = vld [vmem:[#allocation10_spill] sm:$0xff] }
 0x22f   : > { %3344 = vst [vmem:[#allocation1 + $0x1] ss:$4 sm:$0xff] %v6577_v34  ;;  %v2189_v54 = vor.u32 %v2188_v6, %v2185_v3  ;;  %v7144_v48 = vrot.slane %v1991_v17, 2  ;;  %v2279_v14 = vshrl.u32 %v7126_v29, 16  ;;  %v1813_v56 = vpack.c.bf16 %v8900_v42, %v8900_v42  ;;  %v8903_v15 = vld [vmem:[#allocation6_spill] sm:$0xff] }
 0x230   : > { %8893 = vst [vmem:[#allocation5_spill] sm:$0xff] %v7107_v27  ;;  %v7121_v27 = vsel %vm6569_vm12, %v2113_v53, %v2117_v55  ;;  %v2208_v2 = vor.u32 %v2207_v21, %v2203_v60  ;;  %v7154_v3 = vsel %vm1906_vm5, %v7097_v57, %v8715_v58  ;;  %v8902_v55 = vld [vmem:[#allocation9_spill] sm:$0xff]  ;;  %v2199_v59 = vor.u32 %v2198_v8, %v2194_v12 }
 0x231   : > { %3346 = vst [vmem:[#allocation1 + $0x2] ss:$4 sm:$0xff] %v7020_v43  ;;  %v7159_v17 = vpack.c.bf16 %v8902_v55, %v8902_v55  ;;  %v2269_v6 = vshrl.u32 %v6686_v38, 16  ;;  %v8904_v21 = vrot.slane %v7110_v37, 2  ;;  %v7168_v58 = vsel %vm1906_vm5, %v1808_v33, %v1893_v35 }
 0x232   : > { %3348 = vst [vmem:[#allocation1 + $0x3] ss:$4 sm:$0xff] %v7023_v18  ;;  %v2288_v63 = vshll.u32 %v7144_v48, 16  ;;  %v2292_v55 = vshrl.u32 %v7144_v48, 16  ;;  %v2301_v8 = vshrl.u32 %v7142_v13, 16  ;;  %v2281_v53 = vrot.slane %v2279_v14, 6 }
 0x233   : > { %2452 = vst [vmem:[#allocation1 + $0x20] ss:$4 sm:$0xff] %v7116_v25  ;;  %v2211_v42 = vshll.u32 %v8904_v21, 16  ;;  %v2209_v0 = vrot.slane %v2208_v2, 2  ;;  %v2284_v21 = vrot.slane %v2282_v41, 7  ;;  %v2200_v35 = vrot.slane %v2199_v59, 2 }
 0x234   : > { %8895 = vst [vmem:[#allocation7_spill] sm:$0xff] %v7131_v7  ;;  %v2271_v33 = vrot.slane %v2269_v6, 6  ;;  %v8726_v14 = vrot.slane %v7168_v58, 2  ;;  %v2290_v2 = vrot.slane %v2288_v63, 7  ;;  %v2294_v45 = vrot.slane %v2292_v55, 6  ;;  %v8913_v55 = vld [vmem:[#allocation38_spill] sm:$0xff] }
 0x235   : > { %2455 = vst [vmem:[#allocation1 + $0x21] ss:$4 sm:$0xff] %v7121_v27  ;;  %v2213_v52 = vrot.slane %v2211_v42, 7  ;;  %v7188_v41 = vsel %vm6569_vm12, %v2200_v35, %v2203_v60  ;;  %v2303_v6 = vrot.slane %v2301_v8, 6  ;;  %v8910_v42 = vld [vmem:[#allocation25_spill] sm:$0xff]  ;;  %v2285_v8 = vor.u32 %v2284_v21, %v2281_v53 }
 0x236   : > { %8897 = vst [vmem:[#allocation8_spill] sm:$0xff] %v7137_v62  ;;  %v7200_v63 = vsel %vm6569_vm12, %v2222_v61, %v8910_v42  ;;  %v8916_v61 = vrot.slane %v8903_v15, 2  ;;  %v2307_v20 = vshll.u32 %v8726_v14, 16  ;;  %v2356_v21 = vshrl.u32 %v6764_v5, 16 }
 0x237   : > { %2458 = vst [vmem:[#allocation1 + $0x22] ss:$4 sm:$0xff] %v7131_v7 }
 0x238   : > { %8899 = vst [vmem:[#allocation12_spill] sm:$0xff] %v7144_v48  ;;  %v2275_v42 = vshll.u32 %v8916_v61, 16 }
 0x239   : > { %2461 = vst [vmem:[#allocation1 + $0x23] ss:$4 sm:$0xff] %v7137_v62  ;;  %v2190_v62 = vrot.slane %v2189_v54, 2  ;;  %v7165_v19 = vld.sshfl [vmem:[#allocation1] sm:$0xff pattern:$0x73625140] }
 0x23a   : > { %8901 = vst [vmem:[#allocation10_spill] sm:$0xff] %v7154_v3  ;;  %v2297_v3 = vshll.u32 %v7142_v13, 16  ;;  %v1898_v54 = vrot.slane %v1813_v56, 2  ;;  %v2277_v14 = vrot.slane %v2275_v42, 7 }
 0x23b   : > { %8905 = vst [vmem:[#allocation9_spill] sm:$0xff] %v7165_v19  ;;  %v1897_v19 = vrot.slane %v7159_v17, 2  ;;  %v7180_v26 = vsel %vm6569_vm12, %v2190_v62, %v2194_v12  ;;  %v7194_v62 = vsel %vm6569_vm12, %v2209_v0, %v2213_v52  ;;  %v2295_v0 = vor.u32 %v2294_v45, %v2290_v2 }
 0x23c   : > { %8906 = vst [vmem:[#allocation6_spill] sm:$0xff] %v7168_v58  ;;  %v2299_v59 = vrot.slane %v2297_v3, 7  ;;  %v2027_v12 = vsel %vm1906_vm5, %v1813_v56, %v1898_v54  ;;  %v2272_v3 = vor.u32 %v2271_v33, %v8913_v55  ;;  %v7210_v52 = vsel %vm1902_vm4, %v1813_v56, %v1898_v54 }
 0x23d   : > { %3359 = vst [vmem:[#allocation1] ss:$4 sm:$0xff] %v6605_v28  ;;  %v7204_v60 = vsel %vm1902_vm4, %v7159_v17, %v1897_v19  ;;  %v7212_v35 = vrot.slane %v2027_v12, 2  ;;  %v2286_v45 = vrot.slane %v2285_v8, 2  ;;  %v2375_v56 = vshrl.u32 %v7210_v52, 16 }
 0x23e   : > { %3360 = vst [vmem:[#allocation1 + $0x1] ss:$4 sm:$0xff] %v7082_v47  ;;  %v2304_v10 = vor.u32 %v2303_v6, %v2299_v59  ;;  %v2361_v33 = vshll.u32 %v7204_v60, 16  ;;  %v2273_v55 = vrot.slane %v2272_v3, 2  ;;  %v2365_v53 = vshrl.u32 %v7204_v60, 16 }
 0x23f   : > { %3361 = vst [vmem:[#allocation1 + $0x2] ss:$4 sm:$0xff] %v7084_v44  ;;  %v2378_v54 = vshll.u32 %v7210_v52, 16  ;;  %v2296_v12 = vrot.slane %v2295_v0, 2  ;;  %v2384_v61 = vshll.u32 %v7212_v35, 16  ;;  %v2388_v6 = vshrl.u32 %v7212_v35, 16 }
 0x240   : > { %8907 = vst [vmem:[#allocation79_spill] sm:$0xff] %v7180_v26  ;;  %v7183_v28 = vld.sshfl [vmem:[#allocation1 + $0x20] sm:$0xff pattern:$0x73625140]  ;;  %v2309_v3 = vrot.slane %v2307_v20, 7  ;;  %v7232_v8 = vsel %vm1906_vm5, %v7159_v17, %v1897_v19  ;;  %v2367_v0 = vrot.slane %v2365_v53, 6  ;;  %v7243_v20 = vsel %vm6569_vm12, %v2286_v45, %v2290_v2 }
 0x241   : > { %3362 = vst [vmem:[#allocation1 + $0x3] ss:$4 sm:$0xff] %v7087_v50  ;;  %v2380_v42 = vrot.slane %v2378_v54, 7  ;;  %v7248_v19 = vsel %vm6569_vm12, %v2296_v12, %v2299_v59  ;;  %v2386_v17 = vrot.slane %v2384_v61, 7  ;;  %v5847_v2 = vld [vmem:[%s8610_s4 + $0x58] sm:$0xff]  ;;  %v5846_v12 = vld [vmem:[%s8610_s4 + $0x50] sm:$0xff] }
 0x242   : > { %8908 = vst [vmem:[#allocation80_spill] sm:$0xff] %v7188_v41  ;;  %2588 = vmatpush.bf16.msra.mxu1 %v5847_v2  ;;  %5912 = vmatpush.bf16.msra.mxu3 %v5847_v2  ;;  %v8921_v61 = vld [vmem:[#allocation11_spill] sm:$0xff] }
 0x243   : > { %2473 = vst [vmem:[#allocation1 + $0x20] ss:$4 sm:$0xff] %v7180_v26 }
 0x244   : > { %8909 = vst [vmem:[#allocation81_spill] sm:$0xff] %v7194_v62 }
 0x245   : > { %2475 = vst [vmem:[#allocation1 + $0x21] ss:$4 sm:$0xff] %v7188_v41 }
 0x246   : > { %8911 = vst [vmem:[#allocation25_spill] sm:$0xff] %v7200_v63  ;;  %2589 = vmatpush.bf16.msra.mxu1 %v5846_v12  ;;  %5913 = vmatpush.bf16.msra.mxu3 %v5846_v12 }
 0x247   : > { %8912 = vst [vmem:[#allocation82_spill] sm:$0xff] %v7204_v60 }
 0x248   : > { %2477 = vst [vmem:[#allocation1 + $0x22] ss:$4 sm:$0xff] %v7194_v62  ;;  %v7219_v11 = vld.sshfl [vmem:[#allocation1] sm:$0xff pattern:$0x73625140] }
 0x249   : > { %2479 = vst [vmem:[#allocation1 + $0x23] ss:$4 sm:$0xff] %v7200_v63  ;;  %v2363_v63 = vrot.slane %v2361_v33, 7  ;;  %v2358_v33 = vrot.slane %v2356_v21, 6 }
 0x24a   : > { %8914 = vst [vmem:[#allocation38_spill] sm:$0xff] %v7210_v52 }
 0x24b   : > { %8915 = vst [vmem:[#allocation83_spill] sm:$0xff] %v7212_v35  ;;  %v2368_v45 = vor.u32 %v2367_v0, %v2363_v63 }
 0x24c   : > { %8917 = vst [vmem:[#allocation84_spill] sm:$0xff] %v7219_v11  ;;  %v2305_v11 = vrot.slane %v2304_v10, 2  ;;  %v2377_v10 = vrot.slane %v2375_v56, 6  ;;  %v2359_v56 = vor.u32 %v2358_v33, %v6805_v36  ;;  %v5845_v33 = vld [vmem:[%s8610_s4 + $0x48] sm:$0xff] }
 0x24d   : > { %3369 = vst [vmem:[#allocation1] ss:$4 sm:$0xff] %v6654_v39  ;;  %v7236_v39 = vsel %vm6569_vm12, %v2273_v55, %v2277_v14  ;;  %v2390_v14 = vrot.slane %v2388_v6, 6  ;;  %v8731_v55 = vrot.slane %v7232_v8, 2  ;;  %v1817_v6 = vpack.c.bf16 %v8921_v61, %v8921_v61  ;;  %2590 = vmatpush.bf16.msra.mxu1 %v5845_v33  ;;  %5914 = vmatpush.bf16.msra.mxu3 %v5845_v33  ;;  %v5841_v33 = vld [vmem:[%s8610_s4 + $0x28] sm:$0xff] }
 0x24e   : > { %3370 = vst [vmem:[#allocation1 + $0x1] ss:$4 sm:$0xff] %v6686_v38  ;;  %v7257_v53 = vsel %vm6569_vm12, %v2305_v11, %v2309_v3  ;;  %v2381_v59 = vor.u32 %v2380_v42, %v2377_v10  ;;  %v2369_v3 = vrot.slane %v2368_v45, 2  ;;  %v2360_v36 = vrot.slane %v2359_v56, 2 }
 0x24f   : > { %3371 = vst [vmem:[#allocation1 + $0x2] ss:$4 sm:$0xff] %v7126_v29  ;;  %v2391_v54 = vor.u32 %v2390_v14, %v2386_v17  ;;  %v2371_v21 = vshll.u32 %v8731_v55, 16  ;;  %v3331_v45 = vrot.slane %v1817_v6, 2  ;;  %v5494_v55 = vrot.slane %v7023_v18, 9 }
 0x250   : > { %8918 = vst [vmem:[#allocation85_spill] sm:$0xff] %v7236_v39  ;;  %v7239_v58 = vld.sshfl [vmem:[#allocation1 + $0x20] sm:$0xff pattern:$0x73625140]  ;;  %v2382_v0 = vrot.slane %v2381_v59, 2  ;;  %v7279_v14 = vsel %vm6569_vm12, %v2360_v36, %v2363_v63  ;;  %v8928_v36 = vld [vmem:[#allocation22_spill] sm:$0xff] }
 0x251   : > { %3372 = vst [vmem:[#allocation1 + $0x3] ss:$4 sm:$0xff] %v7144_v48  ;;  %v2392_v10 = vrot.slane %v2391_v54, 2  ;;  %v2373_v42 = vrot.slane %v2371_v21, 7  ;;  %v5844_v54 = vld [vmem:[%s8610_s4 + $0x40] sm:$0xff]  ;;  %v3336_v21 = vsel %vm1906_vm5, %v1817_v6, %v3331_v45  ;;  %v7308_v12 = vsel %vm1902_vm4, %v1817_v6, %v3331_v45 }
 0x252   : > { %8919 = vst [vmem:[#allocation86_spill] sm:$0xff] %v7243_v20  ;;  %v7291_v56 = vsel %vm6569_vm12, %v2382_v0, %v2386_v17  ;;  %2591 = vmatpush.bf16.msra.mxu1 %v5844_v54  ;;  %5915 = vmatpush.bf16.msra.mxu3 %v5844_v54  ;;  %v7310_v61 = vrot.slane %v3336_v21, 2  ;;  %v8929_v45 = vld [vmem:[#allocation33_spill] sm:$0xff]  ;;  %v5838_v21 = vld [vmem:[%s8610_s4 + $0x10] sm:$0xff] }
 0x253   : > { %2491 = vst [vmem:[#allocation1 + $0x20] ss:$4 sm:$0xff] %v7236_v39  ;;  %v7286_v59 = vsel %vm6569_vm12, %v2369_v3, %v2373_v42  ;;  %v7297_v63 = vsel %vm6569_vm12, %v2392_v10, %v6794_v23  ;;  %v8925_v23 = vld [vmem:[#allocation29_spill] sm:$0xff]  ;;  %v8926_v3 = vrot.slane %v7097_v57, 2  ;;  %v5842_v10 = vld [vmem:[%s8610_s4 + $0x30] sm:$0xff]  ;;  %v8990_v30 = vld [vmem:[#allocation84_spill] sm:$0xff] }
 0x254   : > { %8920 = vst [vmem:[#allocation87_spill] sm:$0xff] %v7248_v19 }
 0x255   : > { %2493 = vst [vmem:[#allocation1 + $0x21] ss:$4 sm:$0xff] %v7243_v20  ;;  %2592 = vmatmul.bf16.vlgmr.msra.gmra.mxu1 %v8925_v23  ;;  %2622 = vmatmul.bf16.vlgmr.msra.gmra.mxu3 %v6830_v22  ;;  %v7320_v0 = vsel %vm1902_vm4, %v7097_v57, %v8926_v3  ;;  %v5843_v22 = vld [vmem:[%s8610_s4 + $0x38] sm:$0xff]  ;;  %v5837_v23 = vld [vmem:[%s8610_s4 + $0x8] sm:$0xff] }
 0x256   : > { %2495 = vst [vmem:[#allocation1 + $0x22] ss:$4 sm:$0xff] %v7248_v19  ;;  %2747 = vmatpush.bf16.msra.mxu2 %v5843_v22  ;;  %5916 = vmatpush.bf16.msrb.mxu3 %v5843_v22  ;;  %v8931_v22 = vld [vmem:[#allocation42_spill] sm:$0xff] }
 0x257   : > { %2497 = vst [vmem:[#allocation1 + $0x23] ss:$4 sm:$0xff] %v7257_v53 }
 0x258   : > { %v7267_v11 = vld.sshfl [vmem:[#allocation1] sm:$0xff pattern:$0x73625140]  ;;  %8922 = vst [vmem:[#allocation11_spill] sm:$0xff] %v7279_v14 }
 0x259   : > { %3379 = vst [vmem:[#allocation1] ss:$4 sm:$0xff] %v6723_v51  ;;  %v8972_v51 = vld [vmem:[#allocation44_spill] sm:$0xff] }
 0x25a   : > { %3380 = vst [vmem:[#allocation1 + $0x1] ss:$4 sm:$0xff] %v6764_v5  ;;  %2748 = vmatpush.bf16.msra.mxu2 %v5842_v10  ;;  %5917 = vmatpush.bf16.msrb.mxu3 %v5842_v10 }
 0x25b   : > { %3381 = vst [vmem:[#allocation1 + $0x2] ss:$4 sm:$0xff] %v7204_v60 }
 0x25c   : > { %3382 = vst [vmem:[#allocation1 + $0x3] ss:$4 sm:$0xff] %v7210_v52 }
 0x25d   : > { %8923 = vst [vmem:[#allocation88_spill] sm:$0xff] %v7286_v59 }
 0x25e   : > { %v7282_v2 = vld.sshfl [vmem:[#allocation1 + $0x20] sm:$0xff pattern:$0x73625140]  ;;  %8924 = vst [vmem:[#allocation89_spill] sm:$0xff] %v7291_v56  ;;  %2749 = vmatpush.bf16.msra.mxu2 %v5841_v33  ;;  %5918 = vmatpush.bf16.msrb.mxu3 %v5841_v33 }
 0x25f   : > { %2509 = vst [vmem:[#allocation1 + $0x20] ss:$4 sm:$0xff] %v7279_v14 }
 0x260   : > { %2511 = vst [vmem:[#allocation1 + $0x21] ss:$4 sm:$0xff] %v7286_v59 }
 0x261   : > { %2513 = vst [vmem:[#allocation1 + $0x22] ss:$4 sm:$0xff] %v7291_v56 }
 0x262   : > { %2515 = vst [vmem:[#allocation1 + $0x23] ss:$4 sm:$0xff] %v7297_v63 }
 0x263   : > { %v7305_v17 = vld.sshfl [vmem:[#allocation1] sm:$0xff pattern:$0x73625140] }
 0x264   : > { %3389 = vst [vmem:[#allocation1] ss:$4 sm:$0xff] %v6778_v46  ;;  %v8968_v46 = vld [vmem:[#allocation31_spill] sm:$0xff] }
 0x265   : > { %3390 = vst [vmem:[#allocation1 + $0x1] ss:$4 sm:$0xff] %v7308_v12  ;;  %2597 = vmatmul.bf16.gmra.mxu1 %v7183_v28  ;;  %v5839_v28 = vld [vmem:[%s8610_s4 + $0x18] sm:$0xff] }
 0x266   : > { %3392 = vst [vmem:[#allocation1 + $0x2] ss:$4 sm:$0xff] %v7310_v61 }
 0x267   : > { %3393 = vst [vmem:[#allocation1 + $0x3] ss:$4 sm:$0xff] %v7320_v0 }
 0x269   : > { %v2517_v6 = vld.sshfl [vmem:[#allocation1 + $0x20] sm:$0xff pattern:$0x73625140] }
 0x26a   : > { %2646 = vst [vmem:[#allocation1 + $0x20] ss:$4 sm:$0xff] %v6577_v34  ;;  %2627 = vmatmul.bf16.gmra.mxu3 %v2517_v6  ;;  %v8930_v6 = vld [vmem:[#allocation40_spill] sm:$0xff] }
 0x26b   : > { %2648 = vst [vmem:[#allocation1 + $0x21] ss:$4 sm:$0xff] %v7020_v43 }
 0x26c   : > { %2650 = vst [vmem:[#allocation1 + $0x22] ss:$4 sm:$0xff] %v7023_v18 }
 0x26d   : > { %2652 = vst [vmem:[#allocation1 + $0x23] ss:$4 sm:$0xff] %v6981_v49 }
 0x26e   : > { %v7331_v57 = vld.sshfl [vmem:[#allocation1] sm:$0xff pattern:$0x73625140] }
 0x26f   : > { %8927 = vst [vmem:[#allocation29_spill] sm:$0xff] %v7331_v57  ;;  %v3616_v57 = vshrl.u32 %v7308_v12, 16 }
 0x270   : > { %3647 = vst [vmem:[#allocation1] ss:$4 sm:$0xff] %v8928_v36  ;;  %v5836_v36 = vld [vmem:[%s8610_s4] sm:$0xff] }
 0x271   : > { %3649 = vst [vmem:[#allocation1 + $0x1] ss:$4 sm:$0xff] %v7116_v25 }
 0x272   : > { %3651 = vst [vmem:[#allocation1 + $0x2] ss:$4 sm:$0xff] %v7121_v27  ;;  %v5840_v27 = vld [vmem:[%s8610_s4 + $0x20] sm:$0xff] }
 0x273   : > { %3653 = vst [vmem:[#allocation1 + $0x3] ss:$4 sm:$0xff] %v7131_v7  ;;  %2750 = vmatpush.bf16.msra.mxu2 %v5840_v27  ;;  %5919 = vmatpush.bf16.msrb.mxu3 %v5840_v27 }
 0x274   : > { %v7340_v42 = vld.sshfl [vmem:[#allocation1 + $0x20] sm:$0xff pattern:$0x73625140] }
 0x275   : > { %2659 = vst [vmem:[#allocation1 + $0x20] ss:$4 sm:$0xff] %v7082_v47  ;;  %2602 = vmatmul.bf16.gmra.mxu1 %v8930_v6  ;;  %v8933_v6 = vrot.slane %v6577_v34, 7 }
 0x276   : > { %2660 = vst [vmem:[#allocation1 + $0x21] ss:$4 sm:$0xff] %v7084_v44 }
 0x277   : > { %2661 = vst [vmem:[#allocation1 + $0x22] ss:$4 sm:$0xff] %v7087_v50  ;;  %2751 = vmatpush.bf16.msra.mxu2 %v5839_v28  ;;  %5920 = vmatpush.bf16.msrb.mxu3 %v5839_v28  ;;  %v8932_v28 = vrot.slane %v7059_v24, 2 }
 0x278   : > { %2662 = vst [vmem:[#allocation1 + $0x23] ss:$4 sm:$0xff] %v8886_v9 }
 0x27a   : > { %v7353_v25 = vld.sshfl [vmem:[#allocation1] sm:$0xff pattern:$0x73625140]  ;;  %2632 = vmatmul.bf16.gmra.mxu3 %v6848_v31  ;;  %v2918_v31 = vrot.slane %v7020_v43, 7 }
 0x27b   : > { %3664 = vst [vmem:[#allocation1] ss:$4 sm:$0xff] %v8929_v45  ;;  %2752 = vmatpush.bf16.msra.mxu2 %v5838_v21  ;;  %5921 = vmatpush.bf16.msrb.mxu3 %v5838_v21  ;;  %v2921_v21 = vrot.slane %v8932_v28, 7  ;;  %v8967_v45 = vld [vmem:[#allocation27_spill] sm:$0xff] }
 0x27c   : > { %3665 = vst [vmem:[#allocation1 + $0x1] ss:$4 sm:$0xff] %v7180_v26  ;;  %v2920_v27 = vrot.slane %v2918_v31, 2  ;;  %v5862_v26 = vld [vmem:[%s8610_s4 + $0xd0] sm:$0xff] }
 0x27d   : > { %3666 = vst [vmem:[#allocation1 + $0x2] ss:$4 sm:$0xff] %v7188_v41  ;;  %v8965_v41 = vld [vmem:[#allocation18_spill] sm:$0xff] }
 0x27e   : > { %3667 = vst [vmem:[#allocation1 + $0x3] ss:$4 sm:$0xff] %v7194_v62  ;;  %v7411_v24 = vsel %vm6882_vm3, %v2920_v27, %v2921_v21  ;;  %v5496_v27 = vrot.slane %v7082_v47, 9  ;;  %v8937_v21 = vrot.slane %v7110_v37, 2  ;;  %v8947_v62 = vld [vmem:[#allocation6_spill] sm:$0xff] }
 0x27f   : > { %v7362_v54 = vld.sshfl [vmem:[#allocation1 + $0x20] sm:$0xff pattern:$0x73625140]  ;;  %2753 = vmatpush.bf16.msra.mxu2 %v5837_v23  ;;  %5922 = vmatpush.bf16.msrb.mxu3 %v5837_v23  ;;  %v2925_v23 = vrot.slane %v6981_v49, 7 }
 0x280   : > { %2669 = vst [vmem:[#allocation1 + $0x20] ss:$4 sm:$0xff] %v6686_v38 }
 0x281   : > { %2670 = vst [vmem:[#allocation1 + $0x21] ss:$4 sm:$0xff] %v7126_v29  ;;  %v2927_v28 = vrot.slane %v2925_v23, 2  ;;  %v7418_v34 = vsel %vm6882_vm3, %v5494_v55, %v2925_v23  ;;  %v2951_v23 = vrot.slane %v8937_v21, 7 }
 0x282   : > { %2671 = vst [vmem:[#allocation1 + $0x22] ss:$4 sm:$0xff] %v7144_v48 }
 0x283   : > { %2672 = vst [vmem:[#allocation1 + $0x23] ss:$4 sm:$0xff] %v7142_v13  ;;  %2754 = vmatpush.bf16.msra.mxu2 %v5836_v36  ;;  %5923 = vmatpush.bf16.msrb.mxu3 %v5836_v36  ;;  %v2917_v36 = vrot.slane %v8933_v6, 2 }
 0x284   : > { %8934 = vst [vmem:[#allocation22_spill] sm:$0xff] %v7418_v34 }
 0x285   : > { %v7374_v3 = vld.sshfl [vmem:[#allocation1] sm:$0xff pattern:$0x73625140]  ;;  %2607 = vmatmul.bf16.gmra.mxu1 %v7239_v58  ;;  %v2948_v58 = vrot.slane %v7087_v50, 7 }
 0x286   : > { %3674 = vst [vmem:[#allocation1] ss:$4 sm:$0xff] %v8931_v22  ;;  %2755 = vmatmul.bf16.vlgmr.msra.gmra.mxu2 %v6854_v4  ;;  %v7405_v4 = vsel %vm6882_vm3, %v2917_v36, %v2918_v31  ;;  %v8935_v31 = vrot.slane %v6511_v32, 7 }
 0x287   : > { %3675 = vst [vmem:[#allocation1 + $0x1] ss:$4 sm:$0xff] %v7236_v39  ;;  %v2950_v55 = vrot.slane %v2948_v58, 2 }
 0x288   : > { %3676 = vst [vmem:[#allocation1 + $0x2] ss:$4 sm:$0xff] %v7243_v20  ;;  %v7425_v6 = vsel %vm6882_vm3, %v2927_v28, %v8935_v31  ;;  %v8948_v20 = vrot.slane %v8947_v62, 2 }
 0x289   : > { %3677 = vst [vmem:[#allocation1 + $0x3] ss:$4 sm:$0xff] %v7248_v19  ;;  %v7449_v37 = vsel %vm6882_vm3, %v2950_v55, %v2951_v23  ;;  %v8945_v55 = vrot.slane %v6686_v38, 7 }
 0x28a   : > { %v7385_v10 = vld.sshfl [vmem:[#allocation1 + $0x20] sm:$0xff pattern:$0x73625140]  ;;  %2785 = vmatmul.bf16.vlgmr.msrb.gmra.mxu3 %v6872_v40  ;;  %8936 = vst [vmem:[#allocation40_spill] sm:$0xff] %v7425_v6  ;;  %v2945_v40 = vrot.slane %v7084_v44, 7  ;;  %v2981_v39 = vrot.slane %v8948_v20, 7 }
 0x28b   : > { %2679 = vst [vmem:[#allocation1 + $0x20] ss:$4 sm:$0xff] %v6764_v5  ;;  %v2970_v23 = vrot.slane %v8945_v55, 2  ;;  %v8953_v20 = vld [vmem:[#allocation56_spill] sm:$0xff] }
 0x28c   : > { %2680 = vst [vmem:[#allocation1 + $0x21] ss:$4 sm:$0xff] %v7204_v60  ;;  %v2947_v36 = vrot.slane %v2945_v40, 2  ;;  %v7437_v28 = vsel %vm6882_vm3, %v5496_v27, %v2945_v40  ;;  %v2978_v27 = vrot.slane %v7142_v13, 7 }
 0x28d   : > { %2681 = vst [vmem:[#allocation1 + $0x22] ss:$4 sm:$0xff] %v7210_v52 }
 0x28e   : > { %2682 = vst [vmem:[#allocation1 + $0x23] ss:$4 sm:$0xff] %v7212_v35  ;;  %v7444_v19 = vsel %vm6882_vm3, %v2947_v36, %v2948_v58  ;;  %v2975_v58 = vrot.slane %v7144_v48, 7  ;;  %v8944_v36 = vld [vmem:[#allocation48_spill] sm:$0xff] }
 0x28f   : > { %8938 = vst [vmem:[#allocation90_spill] sm:$0xff] %v7437_v28 }
 0x290   : > { %v7393_v33 = vld.sshfl [vmem:[#allocation1] sm:$0xff pattern:$0x73625140]  ;;  %8939 = vst [vmem:[#allocation91_spill] sm:$0xff] %v7444_v19 }
 0x291   : > { %3685 = vst [vmem:[#allocation1 + $0x1] ss:$4 sm:$0xff] %v7279_v14 }
 0x292   : > { %3684 = vst [vmem:[#allocation1] ss:$4 sm:$0xff] %v6817_v1  ;;  %v2977_v1 = vrot.slane %v2975_v58, 2 }
 0x293   : > { %3687 = vst [vmem:[#allocation1 + $0x3] ss:$4 sm:$0xff] %v7291_v56  ;;  %v5497_v56 = vrot.slane %v8886_v9, 9 }
 0x294   : > { %3686 = vst [vmem:[#allocation1 + $0x2] ss:$4 sm:$0xff] %v7286_v59  ;;  %v8946_v59 = vrot.slane %v8903_v15, 2  ;;  %v7483_v15 = vsel %vm6882_vm3, %v2977_v1, %v2978_v27  ;;  %v8954_v1 = vrot.slane %v7232_v8, 2 }
 0x295   : > { %v2684_v43 = vld.sshfl [vmem:[#allocation1 + $0x20] sm:$0xff pattern:$0x73625140]  ;;  %8940 = vst [vmem:[#allocation92_spill] sm:$0xff] %v7449_v37  ;;  %2612 = vmatmul.bf16.gmra.mxu1 %v8944_v36  ;;  %v8955_v36 = vrot.slane %v6764_v5, 7  ;;  %v3619_v5 = vshll.u32 %v7308_v12, 16 }
 0x296   : > { %3036 = vst [vmem:[#allocation1 + $0x20] ss:$4 sm:$0xff] %v7405_v4  ;;  %2760 = vmatmul.bf16.gmra.mxu2 %v7340_v42  ;;  %v8941_v42 = vld [vmem:[#allocation19_spill] sm:$0xff]  ;;  %v2971_v14 = vrot.slane %v8946_v59, 7  ;;  %v3005_v59 = vrot.slane %v7212_v35, 7 }
 0x297   : > { %3039 = vst [vmem:[#allocation1 + $0x21] ss:$4 sm:$0xff] %v7411_v24  ;;  %v8942_v21 = vrot.slane %v8941_v42, 7  ;;  %v2997_v55 = vrot.slane %v8955_v36, 2 }
 0x298   : > { %3042 = vst [vmem:[#allocation1 + $0x22] ss:$4 sm:$0xff] %v7418_v34  ;;  %v7472_v22 = vsel %vm6882_vm3, %v2970_v23, %v2971_v14  ;;  %v2998_v14 = vrot.slane %v7204_v60, 7 }
 0x299   : > { %3045 = vst [vmem:[#allocation1 + $0x23] ss:$4 sm:$0xff] %v7425_v6  ;;  %v7456_v40 = vsel %vm6882_vm3, %v5497_v56, %v8942_v21  ;;  %v5499_v56 = vrot.slane %v7126_v29, 9  ;;  %v2980_v21 = vrot.slane %v2978_v27, 2  ;;  %v3001_v27 = vrot.slane %v8954_v1, 7 }
 0x29a   : > { %8943 = vst [vmem:[#allocation93_spill] sm:$0xff] %v7456_v40  ;;  %2790 = vmatmul.bf16.gmra.mxu3 %v2684_v43  ;;  %v7502_v23 = vsel %vm6882_vm3, %v2997_v55, %v2998_v14  ;;  %v5858_v55 = vld [vmem:[%s8610_s4 + $0xb0] sm:$0xff] }
 0x29b   : > { %8949 = vst [vmem:[#allocation48_spill] sm:$0xff] %v7472_v22  ;;  %v7478_v43 = vsel %vm6882_vm3, %v5499_v56, %v2975_v58  ;;  %v7488_v62 = vsel %vm6882_vm3, %v2980_v21, %v2981_v39  ;;  %v3000_v58 = vrot.slane %v2998_v14, 2  ;;  %v5502_v39 = vrot.slane %v7210_v52, 9  ;;  %v8957_v21 = vld [vmem:[#allocation59_spill] sm:$0xff]  ;;  %v8969_v52 = vld [vmem:[#allocation34_spill] sm:$0xff] }
 0x29c   : > { %8950 = vst [vmem:[#allocation6_spill] sm:$0xff] %v7478_v43  ;;  %v8960_v14 = vld [vmem:[#allocation39_spill] sm:$0xff] }
 0x29d   : > { %8951 = vst [vmem:[#allocation94_spill] sm:$0xff] %v7483_v15  ;;  %v7510_v8 = vsel %vm6882_vm3, %v3000_v58, %v3001_v27  ;;  %v7515_v1 = vsel %vm6882_vm3, %v5502_v39, %v3005_v59  ;;  %v8961_v36 = vrot.slane %v8960_v14, 7  ;;  %v5867_v58 = vld [vmem:[%s8610_s4 + $0xf8] sm:$0xff]  ;;  %v5866_v39 = vld [vmem:[%s8610_s4 + $0xf0] sm:$0xff] }
 0x29e   : > { %8952 = vst [vmem:[#allocation95_spill] sm:$0xff] %v7488_v62  ;;  %3452 = vmatpush.bf16.msrb.mxu1 %v5867_v58  ;;  %v5856_v58 = vld [vmem:[%s8610_s4 + $0xa0] sm:$0xff] }
 0x29f   : > { %8956 = vst [vmem:[#allocation56_spill] sm:$0xff] %v7502_v23 }
 0x2a0   : > { %v7439_v31 = vld.sshfl [vmem:[#allocation1 + $0x20] sm:$0xff pattern:$0x73625140]  ;;  %8958 = vst [vmem:[#allocation59_spill] sm:$0xff] %v7510_v8 }
 0x2a1   : > { %3057 = vst [vmem:[#allocation1 + $0x20] ss:$4 sm:$0xff] %v7437_v28 }
 0x2a2   : > { %3059 = vst [vmem:[#allocation1 + $0x21] ss:$4 sm:$0xff] %v7444_v19  ;;  %3453 = vmatpush.bf16.msrb.mxu1 %v5866_v39  ;;  %v5855_v39 = vld [vmem:[%s8610_s4 + $0x98] sm:$0xff] }
 0x2a3   : > { %3061 = vst [vmem:[#allocation1 + $0x22] ss:$4 sm:$0xff] %v7449_v37 }
 0x2a4   : > { %3063 = vst [vmem:[#allocation1 + $0x23] ss:$4 sm:$0xff] %v7456_v40 }
 0x2a5   : > { %2617 = vmatmul.bf16.gmra.mxu1 %v7282_v2  ;;  %8959 = vst [vmem:[#allocation96_spill] sm:$0xff] %v7515_v1 }
 0x2a6   : > { %2765 = vmatmul.bf16.gmra.mxu2 %v8953_v20  ;;  %v3007_v20 = vrot.slane %v3005_v59, 2  ;;  %v5859_v59 = vld [vmem:[%s8610_s4 + $0xb8] sm:$0xff] }
 0x2a7   : > { %3168 = vmatpush.bf16.msra.mxu3 %v5859_v59  ;;  %v5864_v59 = vld [vmem:[%s8610_s4 + $0xe0] sm:$0xff] }
 0x2a8   : > { %v7522_v2 = vsel %vm6882_vm3, %v3007_v20, %v8961_v36  ;;  %v5857_v20 = vld [vmem:[%s8610_s4 + $0xa8] sm:$0xff] }
 0x2a9   : > { %v5865_v36 = vld [vmem:[%s8610_s4 + $0xe8] sm:$0xff] }
 0x2aa   : > { %2795 = vmatmul.bf16.gmra.mxu3 %v8957_v21  ;;  %v8962_v21 = vld [vmem:[#allocation15_spill] sm:$0xff]  ;;  %3454 = vmatpush.bf16.msrb.mxu1 %v5865_v36  ;;  %v8964_v36 = vld [vmem:[#allocation57_spill] sm:$0xff] }
 0x2ab   : > { %v7474_v7 = vld.sshfl [vmem:[#allocation1 + $0x20] sm:$0xff pattern:$0x73625140]  ;;  %3169 = vmatpush.bf16.msra.mxu3 %v5858_v55 }
 0x2ac   : > { %3075 = vst [vmem:[#allocation1 + $0x20] ss:$4 sm:$0xff] %v7472_v22 }
 0x2ad   : > { %3077 = vst [vmem:[#allocation1 + $0x21] ss:$4 sm:$0xff] %v7478_v43 }
 0x2ae   : > { %3079 = vst [vmem:[#allocation1 + $0x22] ss:$4 sm:$0xff] %v7483_v15  ;;  %3455 = vmatpush.bf16.msrb.mxu1 %v5864_v59  ;;  %v5854_v59 = vld [vmem:[%s8610_s4 + $0x90] sm:$0xff] }
 0x2af   : > { %3081 = vst [vmem:[#allocation1 + $0x23] ss:$4 sm:$0xff] %v7488_v62  ;;  %3170 = vmatpush.bf16.msra.mxu3 %v5857_v20  ;;  %v5863_v20 = vld [vmem:[%s8610_s4 + $0xd8] sm:$0xff] }
 0x2b2   : > { %3456 = vmatpush.bf16.msrb.mxu1 %v5863_v20 }
 0x2b3   : > { %3171 = vmatpush.bf16.msra.mxu3 %v5856_v58  ;;  %v8966_v58 = vld [vmem:[#allocation23_spill] sm:$0xff] }
 0x2b6   : > { %v7504_v56 = vld.sshfl [vmem:[#allocation1 + $0x20] sm:$0xff pattern:$0x73625140]  ;;  %2770 = vmatmul.bf16.gmra.mxu2 %v7362_v54  ;;  %v8963_v54 = vld [vmem:[#allocation16_spill] sm:$0xff]  ;;  %3457 = vmatpush.bf16.msrb.mxu1 %v5862_v26 }
 0x2b7   : > { %3093 = vst [vmem:[#allocation1 + $0x20] ss:$4 sm:$0xff] %v7502_v23  ;;  %3172 = vmatpush.bf16.msra.mxu3 %v5855_v39  ;;  %v5861_v39 = vld [vmem:[%s8610_s4 + $0xc8] sm:$0xff]  ;;  %v5852_v26 = vld [vmem:[%s8610_s4 + $0x80] sm:$0xff] }
 0x2b8   : > { %3095 = vst [vmem:[#allocation1 + $0x21] ss:$4 sm:$0xff] %v7510_v8 }
 0x2b9   : > { %3097 = vst [vmem:[#allocation1 + $0x22] ss:$4 sm:$0xff] %v7515_v1 }
 0x2ba   : > { %3099 = vst [vmem:[#allocation1 + $0x23] ss:$4 sm:$0xff] %v7522_v2  ;;  %3458 = vmatpush.bf16.msrb.mxu1 %v5861_v39  ;;  %v8971_v39 = vld [vmem:[#allocation9_spill] sm:$0xff] }
 0x2bb   : > { %3173 = vmatpush.bf16.msra.mxu3 %v5854_v59  ;;  %v5860_v59 = vld [vmem:[%s8610_s4 + $0xc0] sm:$0xff] }
 0x2be   : > { %3459 = vmatpush.bf16.msrb.mxu1 %v5860_v59  ;;  %v5875_v59 = vld [vmem:[%s8610_s4 + $0x138] sm:$0xff] }
 0x2bf   : > { %3759 = vmatpush.bf16.msrb.mxu2 %v5875_v59  ;;  %v8979_v59 = vld [vmem:[#allocation32_spill] sm:$0xff] }
 0x2c1   : > { %v7533_v27 = vld.sshfl [vmem:[#allocation1 + $0x20] sm:$0xff pattern:$0x73625140]  ;;  %3460 = vmatmul.bf16.vlgmr.msrb.gmra.mxu1 %v8971_v39 }
 0x2c2   : > { %3350 = vst [vmem:[#allocation1 + $0x20] ss:$4 sm:$0xff] %v6981_v49  ;;  %v8973_v39 = vld [vmem:[#allocation45_spill] sm:$0xff] }
 0x2c3   : > { %3352 = vst [vmem:[#allocation1 + $0x21] ss:$4 sm:$0xff] %v6511_v32 }
 0x2c4   : > { %3354 = vst [vmem:[#allocation1 + $0x22] ss:$4 sm:$0xff] %v8962_v21 }
 0x2c5   : > { %3356 = vst [vmem:[#allocation1 + $0x23] ss:$4 sm:$0xff] %v8963_v54 }
 0x2c6   : > { %2775 = vmatmul.bf16.gmra.mxu2 %v8964_v36  ;;  %v5853_v36 = vld [vmem:[%s8610_s4 + $0x88] sm:$0xff] }
 0x2c7   : > { %3174 = vmatpush.bf16.msra.mxu3 %v5853_v36  ;;  %v8970_v36 = vld [vmem:[#allocation62_spill] sm:$0xff] }
 0x2cb   : > { %3175 = vmatpush.bf16.msra.mxu3 %v5852_v26  ;;  %v3633_v26 = vshll.u32 %v7320_v0, 16 }
 0x2cc   : > { %v7557_v55 = vld.sshfl [vmem:[#allocation1 + $0x20] sm:$0xff pattern:$0x73625140] }
 0x2cd   : > { %3363 = vst [vmem:[#allocation1 + $0x20] ss:$4 sm:$0xff] %v8886_v9 }
 0x2ce   : > { %3364 = vst [vmem:[#allocation1 + $0x21] ss:$4 sm:$0xff] %v8941_v42  ;;  %3176 = vmatmul.bf16.vlgmr.msra.gmra.mxu3 %v8970_v36  ;;  %v3624_v36 = vshll.u32 %v7310_v61, 16 }
 0x2cf   : > { %3365 = vst [vmem:[#allocation1 + $0x22] ss:$4 sm:$0xff] %v8965_v41 }
 0x2d0   : > { %3366 = vst [vmem:[#allocation1 + $0x23] ss:$4 sm:$0xff] %v8966_v58  ;;  %v3626_v48 = vrot.slane %v3624_v36, 7  ;;  %v8974_v58 = vld [vmem:[#allocation10_spill] sm:$0xff] }
 0x2d1   : > { %v8755_v41 = vrot.slane %v8974_v58, 2  ;;  %3465 = vmatmul.bf16.gmra.mxu1 %v7557_v55  ;;  %v8981_v55 = vld [vmem:[#allocation55_spill] sm:$0xff] }
 0x2d6   : > { %2780 = vmatmul.bf16.gmra.mxu2 %v7385_v10  ;;  %v3637_v10 = vshrl.u32 %v7320_v0, 16 }
 0x2d7   : > { %v7582_v20 = vld.sshfl [vmem:[#allocation1 + $0x20] sm:$0xff pattern:$0x73625140] }
 0x2d8   : > { %3373 = vst [vmem:[#allocation1 + $0x20] ss:$4 sm:$0xff] %v7142_v13  ;;  %v5874_v13 = vld [vmem:[%s8610_s4 + $0x130] sm:$0xff] }
 0x2d9   : > { %3374 = vst [vmem:[#allocation1 + $0x21] ss:$4 sm:$0xff] %v8967_v45  ;;  %v3639_v45 = vrot.slane %v3637_v10, 6  ;;  %3760 = vmatpush.bf16.msrb.mxu2 %v5874_v13  ;;  %v8977_v13 = vld [vmem:[#allocation30_spill] sm:$0xff] }
 0x2da   : > { %3375 = vst [vmem:[#allocation1 + $0x22] ss:$4 sm:$0xff] %v8968_v46  ;;  %v7612_v46 = vpop.f32.mrf.mxu1 }
 0x2db   : > { %3376 = vst [vmem:[#allocation1 + $0x23] ss:$4 sm:$0xff] %v8969_v52  ;;  %v3628_v52 = vshrl.u32 %v7310_v61, 16 }
 0x2dd   : > { %v3630_v29 = vrot.slane %v3628_v52, 6  ;;  %v3643_v52 = vshll.u32 %v8755_v41, 16 }
 0x2de   : > { %3181 = vmatmul.bf16.gmra.mxu3 %v7439_v31  ;;  %v7636_v31 = vld.sshfl [vmem:[#allocation1] sm:$0xff pattern:$0x73625140] }
 0x2df   : > { %3694 = vst [vmem:[#allocation1] ss:$4 sm:$0xff] %v8981_v55 }
 0x2e1   : > { %3470 = vmatmul.bf16.gmra.mxu1 %v8990_v30  ;;  %v8993_v30 = vld [vmem:[#allocation49_spill] sm:$0xff] }
 0x2e2   : > { %v7597_v60 = vld.sshfl [vmem:[#allocation1 + $0x20] sm:$0xff pattern:$0x73625140] }
 0x2e3   : > { %3383 = vst [vmem:[#allocation1 + $0x20] ss:$4 sm:$0xff] %v7212_v35  ;;  %v3618_v35 = vrot.slane %v3616_v57, 6  ;;  %v3631_v57 = vor.u32 %v3630_v29, %v3626_v48  ;;  %v5872_v29 = vld [vmem:[%s8610_s4 + $0x120] sm:$0xff] }
 0x2e4   : > { %3384 = vst [vmem:[#allocation1 + $0x21] ss:$4 sm:$0xff] %v8960_v14  ;;  %v3621_v14 = vrot.slane %v3619_v5, 7  ;;  %v5873_v5 = vld [vmem:[%s8610_s4 + $0x128] sm:$0xff] }
 0x2e5   : > { %3385 = vst [vmem:[#allocation1 + $0x22] ss:$4 sm:$0xff] %v8972_v51  ;;  %v3635_v51 = vrot.slane %v3633_v26, 7  ;;  %v8975_v26 = vld [vmem:[#allocation8_spill] sm:$0xff]  ;;  %3761 = vmatpush.bf16.msrb.mxu2 %v5873_v5  ;;  %v3645_v5 = vrot.slane %v3643_v52, 7  ;;  %v8985_v52 = vld [vmem:[#allocation35_spill] sm:$0xff] }
 0x2e6   : > { %3386 = vst [vmem:[#allocation1 + $0x23] ss:$4 sm:$0xff] %v8973_v39  ;;  %v3622_v38 = vor.u32 %v3621_v14, %v3618_v35  ;;  %v8976_v35 = vld [vmem:[#allocation26_spill] sm:$0xff] }
 0x2e7   : > { %v3640_v42 = vor.u32 %v3639_v45, %v3635_v51  ;;  %v7630_v45 = vpop.f32.mrf.mxu1 }
 0x2e8   : > { %v3623_v10 = vrot.slane %v3622_v38, 2  ;;  %8978 = vst [vmem:[#allocation15_spill] sm:$0xff] %v7630_v45  ;;  %v3632_v38 = vrot.slane %v3631_v57, 2  ;;  %v8988_v45 = vld [vmem:[#allocation60_spill] sm:$0xff] }
 0x2e9   : > { %v3641_v14 = vrot.slane %v3640_v42, 2  ;;  %3762 = vmatpush.bf16.msrb.mxu2 %v5872_v29  ;;  %v8986_v29 = vld [vmem:[#allocation37_spill] sm:$0xff] }
 0x2ea   : > { %v7640_v36 = vsel %vm6569_vm12, %v3623_v10, %v3626_v48  ;;  %v7645_v42 = vsel %vm6569_vm12, %v3632_v38, %v3635_v51  ;;  %v5871_v48 = vld [vmem:[%s8610_s4 + $0x118] sm:$0xff]  ;;  %v8984_v10 = vld [vmem:[#allocation25_spill] sm:$0xff]  ;;  %v5870_v51 = vld [vmem:[%s8610_s4 + $0x110] sm:$0xff] }
 0x2eb   : > { %8980 = vst [vmem:[#allocation16_spill] sm:$0xff] %v7640_v36  ;;  %v7650_v41 = vsel %vm6569_vm12, %v3641_v14, %v3645_v5  ;;  %v8987_v38 = vld [vmem:[#allocation41_spill] sm:$0xff] }
 0x2ec   : > { %8982 = vst [vmem:[#allocation57_spill] sm:$0xff] %v7645_v42 }
 0x2ed   : > { %v7618_v39 = vld.sshfl [vmem:[#allocation1 + $0x20] sm:$0xff pattern:$0x73625140]  ;;  %3696 = vst [vmem:[#allocation1 + $0x1] ss:$4 sm:$0xff] %v7640_v36  ;;  %3763 = vmatpush.bf16.msrb.mxu2 %v5871_v48  ;;  %v5869_v48 = vld [vmem:[%s8610_s4 + $0x108] sm:$0xff] }
 0x2ee   : > { %3655 = vst [vmem:[#allocation1 + $0x20] ss:$4 sm:$0xff] %v8975_v26 }
 0x2ef   : > { %3657 = vst [vmem:[#allocation1 + $0x21] ss:$4 sm:$0xff] %v8976_v35  ;;  %v7662_v14 = vpop.f32.mrf.mxu1 }
 0x2f0   : > { %3659 = vst [vmem:[#allocation1 + $0x22] ss:$4 sm:$0xff] %v8977_v13 }
 0x2f1   : > { %3661 = vst [vmem:[#allocation1 + $0x23] ss:$4 sm:$0xff] %v8979_v59  ;;  %3764 = vmatpush.bf16.msrb.mxu2 %v5870_v51  ;;  %v7677_v51 = vpop.f32.mrf.mxu3  ;;  %3475 = vmatmul.bf16.gmra.mxu1 %v7582_v20 }
 0x2f2   : > { %8983 = vst [vmem:[#allocation62_spill] sm:$0xff] %v7650_v41 }
 0x2f3   : > { %3698 = vst [vmem:[#allocation1 + $0x2] ss:$4 sm:$0xff] %v7645_v42  ;;  %v5868_v42 = vld [vmem:[%s8610_s4 + $0x100] sm:$0xff] }
 0x2f4   : > { %3700 = vst [vmem:[#allocation1 + $0x3] ss:$4 sm:$0xff] %v7650_v41  ;;  %v8989_v41 = vld [vmem:[#allocation67_spill] sm:$0xff] }
 0x2f5   : > { %3186 = vmatmul.bf16.gmra.mxu3 %v8989_v41  ;;  %3765 = vmatpush.bf16.msrb.mxu2 %v5869_v48  ;;  %v8995_v48 = vld [vmem:[#allocation65_spill] sm:$0xff] }
 0x2f7   : > { %v7685_v41 = vpop.f32.mrf.mxu1 }
 0x2f8   : > { %v3663_v57 = vld.sshfl [vmem:[#allocation1 + $0x20] sm:$0xff pattern:$0x73625140]  ;;  %8991 = vst [vmem:[#allocation9_spill] sm:$0xff] %v7685_v41 }
 0x2f9   : > { %3668 = vst [vmem:[#allocation1 + $0x20] ss:$4 sm:$0xff] %v8984_v10  ;;  %3766 = vmatpush.bf16.msrb.mxu2 %v5868_v42 }
 0x2fa   : > { %3669 = vst [vmem:[#allocation1 + $0x21] ss:$4 sm:$0xff] %v8985_v52 }
 0x2fb   : > { %3670 = vst [vmem:[#allocation1 + $0x22] ss:$4 sm:$0xff] %v8986_v29  ;;  %v7666_v5 = vld.sshfl [vmem:[#allocation1] sm:$0xff pattern:$0x73625140] }
 0x2fc   : > { %3671 = vst [vmem:[#allocation1 + $0x23] ss:$4 sm:$0xff] %v8987_v38  ;;  %3767 = vmatmul.bf16.vlgmr.msrb.gmra.mxu2 %v7353_v25  ;;  %v8996_v25 = vld [vmem:[#allocation52_spill] sm:$0xff] }
 0x2fd   : > { %3932 = vst [vmem:[#allocation1] ss:$4 sm:$0xff] %v8988_v45 }
 0x2fe   : > { %3934 = vst [vmem:[#allocation1 + $0x1] ss:$4 sm:$0xff] %v7405_v4  ;;  %v8992_v4 = vld [vmem:[#allocation47_spill] sm:$0xff] }
 0x2ff   : > { %3936 = vst [vmem:[#allocation1 + $0x2] ss:$4 sm:$0xff] %v7411_v24  ;;  %v8994_v24 = vld [vmem:[#allocation50_spill] sm:$0xff]  ;;  %v7701_v41 = vpop.f32.mrf.mxu1 }
 0x300   : > { %3938 = vst [vmem:[#allocation1 + $0x3] ss:$4 sm:$0xff] %v7418_v34  ;;  %v7694_v34 = vpop.f32.mrf.mxu3 }
 0x301   : > { %3480 = vmatmul.bf16.gmra.mxu1 %v7267_v11  ;;  %v5882_v11 = vld [vmem:[%s8610_s4 + $0x170] sm:$0xff] }
 0x303   : > { %v7682_v36 = vld.sshfl [vmem:[#allocation1 + $0x20] sm:$0xff pattern:$0x73625140] }
 0x304   : > { %3678 = vst [vmem:[#allocation1 + $0x20] ss:$4 sm:$0xff] %v7257_v53 }
 0x305   : > { %3679 = vst [vmem:[#allocation1 + $0x21] ss:$4 sm:$0xff] %v8992_v4  ;;  %3191 = vmatmul.bf16.gmra.mxu3 %v7474_v7  ;;  %v8999_v4 = vld [vmem:[#allocation70_spill] sm:$0xff] }
 0x306   : > { %3680 = vst [vmem:[#allocation1 + $0x22] ss:$4 sm:$0xff] %v8993_v30 }
 0x307   : > { %3681 = vst [vmem:[#allocation1 + $0x23] ss:$4 sm:$0xff] %v8994_v24  ;;  %v7691_v45 = vld.sshfl [vmem:[#allocation1] sm:$0xff pattern:$0x73625140]  ;;  %v7720_v7 = vpop.f32.mrf.mxu1 }
 0x308   : > { %3949 = vst [vmem:[#allocation1] ss:$4 sm:$0xff] %v8995_v48  ;;  %v8997_v48 = vld [vmem:[#allocation53_spill] sm:$0xff]  ;;  %v7708_v55 = vpop.f32.mrf.mxu3 }
 0x309   : > { %3950 = vst [vmem:[#allocation1 + $0x1] ss:$4 sm:$0xff] %v7437_v28  ;;  %v2756_v28 = vpop.f32.mrf.mxu2 }
 0x30a   : > { %3951 = vst [vmem:[#allocation1 + $0x2] ss:$4 sm:$0xff] %v7444_v19  ;;  %v8998_v19 = vld [vmem:[#allocation54_spill] sm:$0xff] }
 0x30b   : > { %3952 = vst [vmem:[#allocation1 + $0x3] ss:$4 sm:$0xff] %v7449_v37  ;;  %v7712_v37 = vadd.f32 %v2756_v28, %v7612_v46  ;;  %v9002_v46 = vld [vmem:[#allocation61_spill] sm:$0xff]  ;;  %v9003_v28 = vld [vmem:[#allocation63_spill] sm:$0xff] }
 0x30c   : > { %3772 = vmatmul.bf16.gmra.mxu2 %v3663_v57  ;;  %9000 = vst [vmem:[#allocation10_spill] sm:$0xff] %v7720_v7  ;;  %v5891_v57 = vld [vmem:[%s8610_s4 + $0x1b8] sm:$0xff] }
 0x30d   : > { %v9006_v7 = vld [vmem:[#allocation72_spill] sm:$0xff]  ;;  %4328 = vmatpush.bf16.msrb.mxu0 %v5891_v57  ;;  %v5906_v57 = vld [vmem:[%s8610_s4 + $0x230] sm:$0xff] }
 0x30e   : > { %v7699_v42 = vld.sshfl [vmem:[#allocation1 + $0x20] sm:$0xff pattern:$0x73625140] }
 0x30f   : > { %3688 = vst [vmem:[#allocation1 + $0x20] ss:$4 sm:$0xff] %v7297_v63 }
 0x310   : > { %3689 = vst [vmem:[#allocation1 + $0x21] ss:$4 sm:$0xff] %v8996_v25 }
 0x311   : > { %3690 = vst [vmem:[#allocation1 + $0x22] ss:$4 sm:$0xff] %v8997_v48  ;;  %v7724_v48 = vpop.f32.mrf.mxu3  ;;  %v7726_v25 = vpop.f32.mrf.mxu2  ;;  %3485 = vmatmul.bf16.gmra.mxu1 %v7597_v60  ;;  %v3924_v60 = vrot.slane %v7310_v61, 7 }
 0x312   : > { %3691 = vst [vmem:[#allocation1 + $0x23] ss:$4 sm:$0xff] %v8998_v19  ;;  %v7714_v30 = vld.sshfl [vmem:[#allocation1] sm:$0xff pattern:$0x73625140] }
 0x313   : > { %3959 = vst [vmem:[#allocation1] ss:$4 sm:$0xff] %v8999_v4 }
 0x314   : > { %3960 = vst [vmem:[#allocation1 + $0x1] ss:$4 sm:$0xff] %v7472_v22  ;;  %v9004_v22 = vld [vmem:[#allocation64_spill] sm:$0xff] }
 0x315   : > { %3961 = vst [vmem:[#allocation1 + $0x2] ss:$4 sm:$0xff] %v7478_v43  ;;  %3196 = vmatmul.bf16.gmra.mxu3 %v9006_v7  ;;  %v5899_v7 = vld [vmem:[%s8610_s4 + $0x1f8] sm:$0xff] }
 0x316   : > { %3962 = vst [vmem:[#allocation1 + $0x3] ss:$4 sm:$0xff] %v7483_v15  ;;  %v5907_v15 = vld [vmem:[%s8610_s4 + $0x238] sm:$0xff]  ;;  %4635 = vmatpush.bf16.msra.mxu1 %v5899_v7  ;;  %v9008_v7 = vld [vmem:[#allocation66_spill] sm:$0xff] }
 0x317   : > { %9001 = vst [vmem:[#allocation8_spill] sm:$0xff] %v7726_v25  ;;  %v5883_v25 = vld [vmem:[%s8610_s4 + $0x178] sm:$0xff]  ;;  %4920 = vmatpush.bf16.msra.mxu2 %v5907_v15  ;;  %v5898_v15 = vld [vmem:[%s8610_s4 + $0x1f0] sm:$0xff] }
 0x318   : > { %4044 = vmatpush.bf16.msrb.mxu3 %v5883_v25 }
 0x319   : > { %v7722_v20 = vld.sshfl [vmem:[#allocation1 + $0x20] sm:$0xff pattern:$0x73625140] }
 0x31a   : > { %3940 = vst [vmem:[#allocation1 + $0x20] ss:$4 sm:$0xff] %v7425_v6  ;;  %v7763_v6 = vpop.f32.mrf.mxu1  ;;  %4636 = vmatpush.bf16.msra.mxu1 %v5898_v15 }
 0x31b   : > { %3942 = vst [vmem:[#allocation1 + $0x21] ss:$4 sm:$0xff] %v9002_v46  ;;  %v2761_v46 = vpop.f32.mrf.mxu2  ;;  %4921 = vmatpush.bf16.msra.mxu2 %v5906_v57  ;;  %v5888_v57 = vld [vmem:[%s8610_s4 + $0x1a0] sm:$0xff] }
 0x31c   : > { %3944 = vst [vmem:[#allocation1 + $0x22] ss:$4 sm:$0xff] %v9003_v28  ;;  %v5890_v28 = vld [vmem:[%s8610_s4 + $0x1b0] sm:$0xff]  ;;  %4045 = vmatpush.bf16.msrb.mxu3 %v5882_v11  ;;  %3777 = vmatmul.bf16.gmra.mxu2 %v7374_v3  ;;  %v9010_v11 = vld [vmem:[#allocation69_spill] sm:$0xff] }
 0x31d   : > { %3946 = vst [vmem:[#allocation1 + $0x23] ss:$4 sm:$0xff] %v9004_v22  ;;  %v7732_v43 = vld.sshfl [vmem:[#allocation1] sm:$0xff pattern:$0x73625140]  ;;  %4329 = vmatpush.bf16.msrb.mxu0 %v5890_v28  ;;  %v5897_v28 = vld [vmem:[%s8610_s4 + $0x1e8] sm:$0xff] }
 0x31e   : > { %9005 = vst [vmem:[#allocation26_spill] sm:$0xff] %v7732_v43  ;;  %v5889_v43 = vld [vmem:[%s8610_s4 + $0x1a8] sm:$0xff]  ;;  %v5880_v3 = vld [vmem:[%s8610_s4 + $0x160] sm:$0xff]  ;;  %4637 = vmatpush.bf16.msra.mxu1 %v5897_v28  ;;  %v5886_v28 = vld [vmem:[%s8610_s4 + $0x190] sm:$0xff] }
 0x31f   : > { %3970 = vst [vmem:[#allocation1 + $0x1] ss:$4 sm:$0xff] %v7502_v23  ;;  %v7754_v23 = vpop.f32.mrf.mxu3 }
 0x320   : > { %3971 = vst [vmem:[#allocation1 + $0x2] ss:$4 sm:$0xff] %v7510_v8  ;;  %v9007_v8 = vld [vmem:[#allocation75_spill] sm:$0xff] }
 0x321   : > { %3972 = vst [vmem:[#allocation1 + $0x3] ss:$4 sm:$0xff] %v7515_v1  ;;  %v7766_v1 = vadd.f32 %v2761_v46, %v7662_v14  ;;  %v5881_v14 = vld [vmem:[%s8610_s4 + $0x168] sm:$0xff]  ;;  %4330 = vmatpush.bf16.msrb.mxu0 %v5889_v43  ;;  %v5887_v43 = vld [vmem:[%s8610_s4 + $0x198] sm:$0xff]  ;;  %3490 = vmatmul.bf16.gmra.mxu1 %v7305_v17 }
 0x322   : > { %3969 = vst [vmem:[#allocation1] ss:$4 sm:$0xff] %v9007_v8  ;;  %v5905_v46 = vld [vmem:[%s8610_s4 + $0x228] sm:$0xff]  ;;  %4046 = vmatpush.bf16.msrb.mxu3 %v5881_v14  ;;  %v7800_v15 = vpop.f32.mrf.mxu1  ;;  %v5895_v17 = vld [vmem:[%s8610_s4 + $0x1d8] sm:$0xff] }
 0x323   : > { %v7795_v4 = vpop.f32.mrf.mxu2  ;;  %4922 = vmatpush.bf16.msra.mxu2 %v5905_v46  ;;  %9012 = vst [vmem:[#allocation32_spill] sm:$0xff] %v7800_v15  ;;  %v5896_v46 = vld [vmem:[%s8610_s4 + $0x1e0] sm:$0xff] }
 0x324   : > { %v7771_v25 = vld.sshfl [vmem:[#allocation1 + $0x20] sm:$0xff pattern:$0x73625140]  ;;  %9011 = vst [vmem:[#allocation30_spill] sm:$0xff] %v7795_v4  ;;  %4638 = vmatpush.bf16.msra.mxu1 %v5896_v46 }
 0x325   : > { %3953 = vst [vmem:[#allocation1 + $0x20] ss:$4 sm:$0xff] %v7456_v40  ;;  %v9009_v40 = vld [vmem:[#allocation68_spill] sm:$0xff]  ;;  %4331 = vmatpush.bf16.msrb.mxu0 %v5888_v57  ;;  %3201 = vmatmul.bf16.gmra.mxu3 %v7504_v56  ;;  %v3927_v57 = vrot.slane %v7320_v0, 7  ;;  %v9015_v15 = vld [vmem:[#allocation73_spill] sm:$0xff] }
 0x326   : > { %3954 = vst [vmem:[#allocation1 + $0x21] ss:$4 sm:$0xff] %v9008_v7  ;;  %4047 = vmatpush.bf16.msrb.mxu3 %v5880_v3  ;;  %v9014_v3 = vld [vmem:[#allocation71_spill] sm:$0xff]  ;;  %v5648_v7 = vrot.slane %v7308_v12, 9 }
 0x327   : > { %3955 = vst [vmem:[#allocation1 + $0x22] ss:$4 sm:$0xff] %v9009_v40  ;;  %v7793_v8 = vpop.f32.mrf.mxu3  ;;  %v5904_v40 = vld [vmem:[%s8610_s4 + $0x220] sm:$0xff]  ;;  %v3929_v46 = vrot.slane %v3927_v57, 2 }
 0x328   : > { %3956 = vst [vmem:[#allocation1 + $0x23] ss:$4 sm:$0xff] %v9010_v11  ;;  %4923 = vmatpush.bf16.msra.mxu2 %v5904_v40  ;;  %v9017_v11 = vrot.slane %v8974_v58, 2  ;;  %4639 = vmatpush.bf16.msra.mxu1 %v5895_v17  ;;  %v9030_v17 = vld [vmem:[#allocation23_spill] sm:$0xff] }
 0x329   : > { %4332 = vmatpush.bf16.msrb.mxu0 %v5887_v43 }
 0x32a   : > { %v3930_v22 = vrot.slane %v9017_v11, 7 }
 0x32b   : > { %v2766_v40 = vpop.f32.mrf.mxu2 }
 0x32c   : > { %v7824_v4 = vadd.f32 %v2766_v40, %v7701_v41  ;;  %3782 = vmatmul.bf16.gmra.mxu2 %v7682_v36  ;;  %v5879_v41 = vld [vmem:[%s8610_s4 + $0x158] sm:$0xff]  ;;  %v9018_v40 = vld [vmem:[#allocation78_spill] sm:$0xff]  ;;  %v5884_v36 = vld [vmem:[%s8610_s4 + $0x180] sm:$0xff]  ;;  %v7859_v11 = vsel %vm6882_vm3, %v3929_v46, %v3930_v22 }
 0x32d   : > { %4333 = vmatpush.bf16.msrb.mxu0 %v5886_v28  ;;  %v7846_v28 = vsel %vm6882_vm3, %v5648_v7, %v3924_v60  ;;  %4048 = vmatpush.bf16.msrb.mxu3 %v5879_v41  ;;  %9019 = vst [vmem:[#allocation35_spill] sm:$0xff] %v7859_v11  ;;  %v9023_v22 = vld [vmem:[#allocation2_spill] sm:$0xff]  ;;  %v9024_v46 = vld [vmem:[#allocation4_spill] sm:$0xff] }
 0x32f   : > { %v7809_v14 = vld.sshfl [vmem:[#allocation1 + $0x20] sm:$0xff pattern:$0x73625140]  ;;  %v2786_v56 = vpop.f32.mrf.mxu3 }
 0x330   : > { %9013 = vst [vmem:[#allocation25_spill] sm:$0xff] %v7809_v14  ;;  %v7827_v43 = vadd.f32 %v2786_v56, %v7677_v51  ;;  %v7836_v14 = vpop.f32.mrf.mxu1  ;;  %v7839_v51 = vld.sshfl [vmem:[#allocation1] sm:$0xff pattern:$0x73625140] }
 0x331   : > { %3963 = vst [vmem:[#allocation1 + $0x20] ss:$4 sm:$0xff] %v7488_v62  ;;  %v9016_v62 = vld [vmem:[#allocation74_spill] sm:$0xff]  ;;  %3495 = vmatmul.bf16.gmra.mxu1 %v7618_v39  ;;  %v9032_v39 = vld [vmem:[#allocation28_spill] sm:$0xff] }
 0x332   : > { %3964 = vst [vmem:[#allocation1 + $0x21] ss:$4 sm:$0xff] %v9014_v3  ;;  %v5885_v3 = vld [vmem:[%s8610_s4 + $0x188] sm:$0xff] }
 0x333   : > { %3965 = vst [vmem:[#allocation1 + $0x22] ss:$4 sm:$0xff] %v9015_v15  ;;  %v3926_v15 = vrot.slane %v3924_v60, 2  ;;  %4334 = vmatpush.bf16.msrb.mxu0 %v5885_v3  ;;  %v7861_v7 = vpop.f32.mrf.mxu2  ;;  %v9022_v3 = vld [vmem:[#allocation77_spill] sm:$0xff] }
 0x334   : > { %3966 = vst [vmem:[#allocation1 + $0x23] ss:$4 sm:$0xff] %v9016_v62 }
 0x335   : > { %3979 = vst [vmem:[#allocation1] ss:$4 sm:$0xff] %v9018_v40  ;;  %v7851_v58 = vsel %vm6882_vm3, %v3926_v15, %v3927_v57  ;;  %v9021_v57 = vld [vmem:[#allocation76_spill] sm:$0xff]  ;;  %3206 = vmatmul.bf16.gmra.mxu3 %v9024_v46 }
 0x336   : > { %3981 = vst [vmem:[#allocation1 + $0x1] ss:$4 sm:$0xff] %v7846_v28 }
 0x337   : > { %9020 = vst [vmem:[#allocation37_spill] sm:$0xff] %v7861_v7  ;;  %v2788_v56 = vpop.f32.mrf.mxu3  ;;  %4335 = vmatpush.bf16.msrb.mxu0 %v5884_v36 }
 0x338   : > { %3983 = vst [vmem:[#allocation1 + $0x2] ss:$4 sm:$0xff] %v7851_v58  ;;  %v7867_v15 = vadd.f32 %v2788_v56, %v7694_v34  ;;  %v5903_v34 = vld [vmem:[%s8610_s4 + $0x218] sm:$0xff]  ;;  %v7879_v41 = vpop.f32.mrf.mxu1 }
 0x339   : > { %3985 = vst [vmem:[#allocation1 + $0x3] ss:$4 sm:$0xff] %v7859_v11  ;;  %4924 = vmatpush.bf16.msra.mxu2 %v5903_v34 }
 0x33a   : > { %9025 = vst [vmem:[#allocation41_spill] sm:$0xff] %v7879_v41 }
 0x33b   : > { %v7864_v60 = vld.sshfl [vmem:[#allocation1 + $0x20] sm:$0xff pattern:$0x73625140]  ;;  %v2771_v56 = vpop.f32.mrf.mxu2 }
 0x33c   : > { %3973 = vst [vmem:[#allocation1 + $0x20] ss:$4 sm:$0xff] %v7522_v2  ;;  %v7884_v36 = vadd.f32 %v2771_v56, %v7763_v6  ;;  %v5878_v6 = vld [vmem:[%s8610_s4 + $0x150] sm:$0xff]  ;;  %3787 = vmatmul.bf16.gmra.mxu2 %v7393_v33 }
 0x33d   : > { %3974 = vst [vmem:[#allocation1 + $0x21] ss:$4 sm:$0xff] %v9021_v57  ;;  %4049 = vmatpush.bf16.msrb.mxu3 %v5878_v6  ;;  %v9031_v6 = vld [vmem:[#allocation24_spill] sm:$0xff] }
 0x33e   : > { %3975 = vst [vmem:[#allocation1 + $0x22] ss:$4 sm:$0xff] %v9022_v3 }
 0x33f   : > { %3976 = vst [vmem:[#allocation1 + $0x23] ss:$4 sm:$0xff] %v9023_v22  ;;  %v2791_v7 = vpop.f32.mrf.mxu3 }
 0x340   : > { %v7881_v16 = vld.sshfl [vmem:[#allocation1] sm:$0xff pattern:$0x73625140]  ;;  %v7887_v11 = vadd.f32 %v2791_v7, %v7708_v55  ;;  %v2618_v55 = vpop.f32.mrf.mxu1 }
 0x341   : > { %4218 = vst [vmem:[#allocation1] ss:$4 sm:$0xff] %v7023_v18  ;;  %v5876_v7 = vld [vmem:[%s8610_s4 + $0x140] sm:$0xff] }
 0x342   : > { %4220 = vst [vmem:[#allocation1 + $0x1] ss:$4 sm:$0xff] %v6981_v49  ;;  %v9026_v49 = vld [vmem:[#allocation17_spill] sm:$0xff] }
 0x343   : > { %4222 = vst [vmem:[#allocation1 + $0x2] ss:$4 sm:$0xff] %v6511_v32  ;;  %v5877_v32 = vld [vmem:[%s8610_s4 + $0x148] sm:$0xff]  ;;  %v7908_v18 = vpop.f32.mrf.mxu2 }
 0x344   : > { %4224 = vst [vmem:[#allocation1 + $0x3] ss:$4 sm:$0xff] %v8962_v21  ;;  %4050 = vmatpush.bf16.msrb.mxu3 %v5877_v32  ;;  %v9034_v32 = vld [vmem:[#allocation20_spill] sm:$0xff] }
 0x345   : > { %9027 = vst [vmem:[#allocation60_spill] sm:$0xff] %v7908_v18  ;;  %3211 = vmatmul.bf16.gmra.mxu3 %v7533_v27 }
 0x346   : > { %v7899_v46 = vld.sshfl [vmem:[#allocation1 + $0x20] sm:$0xff pattern:$0x73625140] }
 0x347   : > { %4226 = vst [vmem:[#allocation1 + $0x20] ss:$4 sm:$0xff] %v8963_v54  ;;  %v2793_v21 = vpop.f32.mrf.mxu3 }
 0x348   : > { %4228 = vst [vmem:[#allocation1 + $0x21] ss:$4 sm:$0xff] %v9026_v49  ;;  %v7912_v33 = vadd.f32 %v2793_v21, %v7724_v48  ;;  %4051 = vmatpush.bf16.msrb.mxu3 %v5876_v7  ;;  %v9029_v48 = vld [vmem:[#allocation18_spill] sm:$0xff]  ;;  %v7935_v49 = vpop.f32.mrf.mxu1  ;;  %v5894_v21 = vld [vmem:[%s8610_s4 + $0x1d0] sm:$0xff] }
 0x349   : > { %4230 = vst [vmem:[#allocation1 + $0x22] ss:$4 sm:$0xff] %v7082_v47  ;;  %v5902_v47 = vld [vmem:[%s8610_s4 + $0x210] sm:$0xff]  ;;  %4640 = vmatpush.bf16.msra.mxu1 %v5894_v21 }
 0x34a   : > { %4232 = vst [vmem:[#allocation1 + $0x23] ss:$4 sm:$0xff] %v7084_v44  ;;  %v9028_v44 = vld [vmem:[#allocation19_spill] sm:$0xff]  ;;  %4925 = vmatpush.bf16.msra.mxu2 %v5902_v47 }
 0x34b   : > { %v4233_v54 = vld.sshfl [vmem:[#allocation1] sm:$0xff pattern:$0x73625140]  ;;  %v2776_v34 = vpop.f32.mrf.mxu2  ;;  %9033 = vst [vmem:[#allocation67_spill] sm:$0xff] %v7935_v49  ;;  %v9042_v21 = vld [vmem:[#allocation3_spill] sm:$0xff] }
 0x34c   : > { %4336 = vmatmul.bf16.vlgmr.msrb.gmra.mxu0 %v4233_v54  ;;  %4235 = vst [vmem:[#allocation1] ss:$4 sm:$0xff] %v7087_v50  ;;  %v7928_v27 = vadd.f32 %v2776_v34, %v7836_v14  ;;  %3792 = vmatmul.bf16.gmra.mxu2 %v7699_v42  ;;  %v9035_v54 = vld [vmem:[#allocation12_spill] sm:$0xff]  ;;  %v9038_v34 = vld [vmem:[#allocation27_spill] sm:$0xff] }
 0x34d   : > { %4236 = vst [vmem:[#allocation1 + $0x1] ss:$4 sm:$0xff] %v8886_v9 }
 0x34e   : > { %4237 = vst [vmem:[#allocation1 + $0x2] ss:$4 sm:$0xff] %v9028_v44  ;;  %v9037_v44 = vld [vmem:[#allocation14_spill] sm:$0xff] }
 0x34f   : > { %4238 = vst [vmem:[#allocation1 + $0x3] ss:$4 sm:$0xff] %v9029_v48  ;;  %v2796_v56 = vpop.f32.mrf.mxu3 }
 0x350   : > { %v7931_v9 = vadd.f32 %v2796_v56, %v7754_v23  ;;  %v5893_v23 = vld [vmem:[%s8610_s4 + $0x1c8] sm:$0xff]  ;;  %v9039_v56 = vld [vmem:[#allocation31_spill] sm:$0xff] }
 0x351   : > { %v4234_v50 = vld.sshfl [vmem:[#allocation1 + $0x20] sm:$0xff pattern:$0x73625140]  ;;  %4641 = vmatpush.bf16.msra.mxu1 %v5893_v23 }
 0x352   : > { %4239 = vst [vmem:[#allocation1 + $0x20] ss:$4 sm:$0xff] %v9030_v17  ;;  %v3461_v17 = vpop.f32.mrf.mxu1 }
 0x353   : > { %4240 = vst [vmem:[#allocation1 + $0x21] ss:$4 sm:$0xff] %v9031_v6  ;;  %v7946_v7 = vpop.f32.mrf.mxu2  ;;  %v9040_v6 = vld [vmem:[#allocation34_spill] sm:$0xff] }
 0x354   : > { %4241 = vst [vmem:[#allocation1 + $0x22] ss:$4 sm:$0xff] %v9032_v39  ;;  %v5892_v39 = vld [vmem:[%s8610_s4 + $0x1c0] sm:$0xff] }
 0x355   : > { %4242 = vst [vmem:[#allocation1 + $0x23] ss:$4 sm:$0xff] %v9034_v32  ;;  %v9041_v32 = vld [vmem:[#allocation36_spill] sm:$0xff]  ;;  %3216 = vmatmul.bf16.gmra.mxu3 %v9042_v21  ;;  %4642 = vmatpush.bf16.msra.mxu1 %v5892_v39  ;;  %v9048_v39 = vld [vmem:[#allocation83_spill] sm:$0xff] }
 0x356   : > { %v4243_v14 = vld.sshfl [vmem:[#allocation1] sm:$0xff pattern:$0x73625140]  ;;  %9036 = vst [vmem:[#allocation84_spill] sm:$0xff] %v7946_v7 }
 0x357   : > { %4245 = vst [vmem:[#allocation1] ss:$4 sm:$0xff] %v9035_v54  ;;  %v2798_v47 = vpop.f32.mrf.mxu3  ;;  %v9044_v54 = vld [vmem:[#allocation29_spill] sm:$0xff] }
 0x358   : > { %4246 = vst [vmem:[#allocation1 + $0x1] ss:$4 sm:$0xff] %v9037_v44  ;;  %v7950_v48 = vadd.f32 %v2798_v47, %v7793_v8  ;;  %v9043_v8 = vld [vmem:[#allocation43_spill] sm:$0xff]  ;;  %3500 = vmatmul.bf16.gmra.mxu1 %v9044_v54  ;;  %v9045_v47 = vld [vmem:[#allocation82_spill] sm:$0xff] }
 0x359   : > { %4247 = vst [vmem:[#allocation1 + $0x2] ss:$4 sm:$0xff] %v9038_v34  ;;  %v2819_v34 = vrot.slane %v7712_v37, 4 }
 0x35a   : > { %4248 = vst [vmem:[#allocation1 + $0x3] ss:$4 sm:$0xff] %v9039_v56  ;;  %v7974_v7 = vpop.f32.mrf.mxu1 }
 0x35b   : > { %v2781_v23 = vpop.f32.mrf.mxu2 }
 0x35c   : > { %v7954_v42 = vld.sshfl [vmem:[#allocation1 + $0x20] sm:$0xff pattern:$0x73625140]  ;;  %4341 = vmatmul.bf16.gmra.mxu0 %v4234_v50  ;;  %v7966_v50 = vadd.f32 %v2781_v23, %v2618_v55  ;;  %3797 = vmatmul.bf16.gmra.mxu2 %v7636_v31  ;;  %v9050_v55 = vld [vmem:[#allocation44_spill] sm:$0xff]  ;;  %v3524_v31 = vrot.slane %v3461_v17, 4 }
 0x35d   : > { %4249 = vst [vmem:[#allocation1 + $0x20] ss:$4 sm:$0xff] %v9040_v6 }
 0x35e   : > { %4250 = vst [vmem:[#allocation1 + $0x21] ss:$4 sm:$0xff] %v9041_v32  ;;  %v9046_v32 = vld [vmem:[#allocation21_spill] sm:$0xff] }
 0x35f   : > { %4251 = vst [vmem:[#allocation1 + $0x22] ss:$4 sm:$0xff] %v9043_v8  ;;  %v3177_v44 = vpop.f32.mrf.mxu3  ;;  %v1819_v21 = vpack.c.bf16 %v9046_v32, %v9046_v32  ;;  %v9047_v8 = vld [vmem:[#allocation38_spill] sm:$0xff]  ;;  %v9051_v32 = vld [vmem:[#allocation45_spill] sm:$0xff] }
 0x360   : > { %4252 = vst [vmem:[#allocation1 + $0x23] ss:$4 sm:$0xff] %v9045_v47  ;;  %v3240_v56 = vrot.slane %v3177_v44, 4  ;;  %v3276_v6 = vadd.f32 %v3177_v44, %v7712_v37  ;;  %v9049_v47 = vld [vmem:[#allocation39_spill] sm:$0xff]  ;;  %v5901_v44 = vld [vmem:[%s8610_s4 + $0x208] sm:$0xff] }
 0x361   : > { %v7969_v49 = vld.sshfl [vmem:[#allocation1] sm:$0xff pattern:$0x73625140]  ;;  %v4207_v37 = vrot.slane %v1819_v21, 2  ;;  %4926 = vmatpush.bf16.msra.mxu2 %v5901_v44 }
 0x362   : > { %4255 = vst [vmem:[#allocation1] ss:$4 sm:$0xff] %v9047_v8  ;;  %v3277_v54 = vadd.f32 %v3240_v56, %v2819_v34  ;;  %v9052_v34 = vld [vmem:[#allocation5_spill] sm:$0xff]  ;;  %v9053_v8 = vld [vmem:[#allocation46_spill] sm:$0xff] }
 0x363   : > { %4256 = vst [vmem:[#allocation1 + $0x1] ss:$4 sm:$0xff] %v9048_v39  ;;  %v7988_v56 = vpack.c.bf16 %v9052_v34, %v9052_v34  ;;  %v8005_v44 = vsel %vm1902_vm4, %v1819_v21, %v4207_v37 }
 0x364   : > { %4257 = vst [vmem:[#allocation1 + $0x2] ss:$4 sm:$0xff] %v9049_v47  ;;  %v4212_v47 = vsel %vm1906_vm5, %v1819_v21, %v4207_v37  ;;  %v7999_v18 = vadd.f32 %v3524_v31, %v3277_v54  ;;  %v9054_v21 = vld [vmem:[#allocation33_spill] sm:$0xff]  ;;  %v9057_v31 = vld [vmem:[#allocation80_spill] sm:$0xff] }
 0x365   : > { %4258 = vst [vmem:[#allocation1 + $0x3] ss:$4 sm:$0xff] %v9050_v55  ;;  %v3466_v55 = vpop.f32.mrf.mxu1  ;;  %v8777_v41 = vrot.slane %v7988_v56, 2  ;;  %4052 = vmatmul.bf16.vlgmr.msrb.gmra.mxu3 %v7691_v45 }
 0x367   : > { %v7980_v23 = vld.sshfl [vmem:[#allocation1 + $0x20] sm:$0xff pattern:$0x73625140]  ;;  %v7991_v39 = vpop.f32.mrf.mxu3 }
 0x368   : > { %4259 = vst [vmem:[#allocation1 + $0x20] ss:$4 sm:$0xff] %v9051_v32  ;;  %v7997_v32 = vadd.f32 %v3461_v17, %v3276_v6  ;;  %v2821_v17 = vrot.slane %v7766_v1, 4 }
 0x369   : > { %4260 = vst [vmem:[#allocation1 + $0x21] ss:$4 sm:$0xff] %v9053_v8  ;;  %v9056_v8 = vld [vmem:[#allocation79_spill] sm:$0xff] }
 0x36a   : > { %4261 = vst [vmem:[#allocation1 + $0x22] ss:$4 sm:$0xff] %v7308_v12  ;;  %v8007_v12 = vrot.slane %v4212_v47, 2  ;;  %v5900_v47 = vld [vmem:[%s8610_s4 + $0x200] sm:$0xff] }
 0x36b   : > { %4262 = vst [vmem:[#allocation1 + $0x23] ss:$4 sm:$0xff] %v7310_v61  ;;  %v8015_v61 = vsel %vm1902_vm4, %v7988_v56, %v8777_v41  ;;  %4927 = vmatpush.bf16.msra.mxu2 %v5900_v47 }
 0x36c   : > { %4346 = vmatmul.bf16.gmra.mxu0 %v4243_v14  ;;  %v8001_v34 = vld.sshfl [vmem:[#allocation1] sm:$0xff pattern:$0x73625140]  ;;  %3802 = vmatmul.bf16.gmra.mxu2 %v7722_v20 }
 0x36d   : > { %4265 = vst [vmem:[#allocation1] ss:$4 sm:$0xff] %v7320_v0  ;;  %v8025_v37 = vpop.f32.mrf.mxu1 }
 0x36e   : > { %4266 = vst [vmem:[#allocation1 + $0x1] ss:$4 sm:$0xff] %v8005_v44 }
 0x36f   : > { %4268 = vst [vmem:[#allocation1 + $0x2] ss:$4 sm:$0xff] %v8007_v12  ;;  %v3182_v14 = vpop.f32.mrf.mxu3 }
 0x370   : > { %4269 = vst [vmem:[#allocation1 + $0x3] ss:$4 sm:$0xff] %v8015_v61  ;;  %v3242_v6 = vrot.slane %v3182_v14, 4  ;;  %v3280_v0 = vadd.f32 %v3182_v14, %v7766_v1  ;;  %v3526_v14 = vrot.slane %v3466_v55, 4 }
 0x371   : > { %9055 = vst [vmem:[#allocation50_spill] sm:$0xff] %v8025_v37  ;;  %v9082_v37 = vld [vmem:[#allocation53_spill] sm:$0xff] }
 0x372   : > { %v8019_v45 = vld.sshfl [vmem:[#allocation1 + $0x20] sm:$0xff pattern:$0x73625140]  ;;  %v3281_v54 = vadd.f32 %v3242_v6, %v2821_v17 }
 0x373   : > { %4531 = vst [vmem:[#allocation1 + $0x20] ss:$4 sm:$0xff] %v8979_v59  ;;  %v9058_v59 = vld [vmem:[#allocation7_spill] sm:$0xff] }
 0x374   : > { %4533 = vst [vmem:[#allocation1 + $0x21] ss:$4 sm:$0xff] %v9054_v21  ;;  %v8043_v21 = vadd.f32 %v3466_v55, %v3280_v0  ;;  %v8045_v20 = vadd.f32 %v3526_v14, %v3281_v54  ;;  %v2823_v55 = vrot.slane %v7824_v4, 4 }
 0x375   : > { %4535 = vst [vmem:[#allocation1 + $0x22] ss:$4 sm:$0xff] %v9056_v8  ;;  %v8040_v17 = vpop.f32.mrf.mxu1  ;;  %4057 = vmatmul.bf16.gmra.mxu3 %v7771_v25  ;;  %v9059_v8 = vld [vmem:[#allocation42_spill] sm:$0xff] }
 0x376   : > { %4537 = vst [vmem:[#allocation1 + $0x23] ss:$4 sm:$0xff] %v9057_v31  ;;  %v8053_v31 = vpop.f32.mrf.mxu2 }
 0x377   : > { %v8033_v41 = vld.sshfl [vmem:[#allocation1] sm:$0xff pattern:$0x73625140]  ;;  %v8035_v1 = vpop.f32.mrf.mxu3  ;;  %9062 = vst [vmem:[#allocation54_spill] sm:$0xff] %v8053_v31 }
 0x378   : > { %4523 = vst [vmem:[#allocation1] ss:$4 sm:$0xff] %v9058_v59 }
 0x379   : > { %4525 = vst [vmem:[#allocation1 + $0x1] ss:$4 sm:$0xff] %v8975_v26  ;;  %v9060_v26 = vld [vmem:[#allocation85_spill] sm:$0xff] }
 0x37a   : > { %4527 = vst [vmem:[#allocation1 + $0x2] ss:$4 sm:$0xff] %v8976_v35  ;;  %v9061_v35 = vld [vmem:[#allocation86_spill] sm:$0xff] }
 0x37b   : > { %4529 = vst [vmem:[#allocation1 + $0x3] ss:$4 sm:$0xff] %v8977_v13 }
 0x37c   : > { %4351 = vmatmul.bf16.gmra.mxu0 %v7954_v42  ;;  %v9063_v42 = vld [vmem:[#allocation81_spill] sm:$0xff]  ;;  %3807 = vmatmul.bf16.gmra.mxu2 %v7666_v5 }
 0x37d   : > { %v4539_v6 = vld.sshfl [vmem:[#allocation1 + $0x20] sm:$0xff pattern:$0x73625140]  ;;  %v8058_v25 = vpop.f32.mrf.mxu1 }
 0x37e   : > { %4544 = vst [vmem:[#allocation1 + $0x20] ss:$4 sm:$0xff] %v8987_v38 }
 0x37f   : > { %4545 = vst [vmem:[#allocation1 + $0x21] ss:$4 sm:$0xff] %v9059_v8  ;;  %v3187_v13 = vpop.f32.mrf.mxu3  ;;  %v3768_v14 = vpop.f32.mrf.mxu2  ;;  %v9066_v8 = vld [vmem:[#allocation51_spill] sm:$0xff] }
 0x380   : > { %4546 = vst [vmem:[#allocation1 + $0x22] ss:$4 sm:$0xff] %v9060_v26  ;;  %v3244_v0 = vrot.slane %v3187_v13, 4  ;;  %v3284_v54 = vadd.f32 %v3187_v13, %v7824_v4  ;;  %v3831_v26 = vrot.slane %v3768_v14, 4  ;;  %v9069_v13 = vld [vmem:[#allocation87_spill] sm:$0xff] }
 0x381   : > { %4547 = vst [vmem:[#allocation1 + $0x23] ss:$4 sm:$0xff] %v9061_v35  ;;  %v8071_v35 = vadd.f32 %v3768_v14, %v7997_v32 }
 0x382   : > { %v4538_v47 = vld.sshfl [vmem:[#allocation1] sm:$0xff pattern:$0x73625140]  ;;  %v3285_v38 = vadd.f32 %v3244_v0, %v2823_v55  ;;  %9064 = vst [vmem:[#allocation72_spill] sm:$0xff] %v8058_v25  ;;  %v8076_v5 = vadd.f32 %v3831_v26, %v7999_v18  ;;  %v9070_v0 = vld [vmem:[#allocation47_spill] sm:$0xff]  ;;  %v2825_v18 = vrot.slane %v7884_v36, 4 }
 0x383   : > { %4643 = vmatmul.bf16.vlgmr.msra.gmra.mxu1 %v4538_v47  ;;  %4540 = vst [vmem:[#allocation1] ss:$4 sm:$0xff] %v9063_v42  ;;  %v4495_v26 = vshll.u32 %v8005_v44, 16  ;;  %v9078_v25 = vrot.slane %v7988_v56, 2 }
 0x384   : > { %4541 = vst [vmem:[#allocation1 + $0x1] ss:$4 sm:$0xff] %v8984_v10  ;;  %v9067_v10 = vld [vmem:[#allocation11_spill] sm:$0xff] }
 0x385   : > { %4542 = vst [vmem:[#allocation1 + $0x2] ss:$4 sm:$0xff] %v8985_v52  ;;  %v9068_v52 = vld [vmem:[#allocation88_spill] sm:$0xff]  ;;  %4062 = vmatmul.bf16.gmra.mxu3 %v7714_v30 }
 0x386   : > { %4543 = vst [vmem:[#allocation1 + $0x3] ss:$4 sm:$0xff] %v8986_v29  ;;  %v8078_v29 = vpop.f32.mrf.mxu1 }
 0x387   : > { %v8067_v4 = vpop.f32.mrf.mxu3  ;;  %v8086_v55 = vpop.f32.mrf.mxu2 }
 0x388   : > { %v8064_v59 = vld.sshfl [vmem:[#allocation1 + $0x20] sm:$0xff pattern:$0x73625140]  ;;  %9065 = vst [vmem:[#allocation74_spill] sm:$0xff] %v8067_v4 }
 0x389   : > { %4554 = vst [vmem:[#allocation1 + $0x20] ss:$4 sm:$0xff] %v8994_v24  ;;  %v9079_v4 = vld [vmem:[#allocation89_spill] sm:$0xff] }
 0x38a   : > { %4555 = vst [vmem:[#allocation1 + $0x21] ss:$4 sm:$0xff] %v9066_v8 }
 0x38b   : > { %4556 = vst [vmem:[#allocation1 + $0x22] ss:$4 sm:$0xff] %v9067_v10  ;;  %v9073_v10 = vld [vmem:[#allocation55_spill] sm:$0xff] }
 0x38c   : > { %4557 = vst [vmem:[#allocation1 + $0x23] ss:$4 sm:$0xff] %v9068_v52  ;;  %4356 = vmatmul.bf16.gmra.mxu0 %v7969_v49  ;;  %v9071_v49 = vld [vmem:[#allocation49_spill] sm:$0xff]  ;;  %v8106_v52 = vadd.f32 %v8040_v17, %v3284_v54 }
 0x38d   : > { %v8082_v24 = vld.sshfl [vmem:[#allocation1] sm:$0xff pattern:$0x73625140] }
 0x38e   : > { %4550 = vst [vmem:[#allocation1] ss:$4 sm:$0xff] %v9069_v13  ;;  %v8098_v8 = vpop.f32.mrf.mxu1  ;;  %v9074_v13 = vld [vmem:[#allocation16_spill] sm:$0xff] }
 0x38f   : > { %4551 = vst [vmem:[#allocation1 + $0x1] ss:$4 sm:$0xff] %v7257_v53  ;;  %v3192_v32 = vpop.f32.mrf.mxu3  ;;  %v4492_v53 = vshrl.u32 %v8005_v44, 16 }
 0x390   : > { %4552 = vst [vmem:[#allocation1 + $0x2] ss:$4 sm:$0xff] %v9070_v0  ;;  %v3246_v47 = vrot.slane %v3192_v32, 4  ;;  %v8091_v42 = vadd.f32 %v3192_v32, %v7884_v36  ;;  %v3528_v36 = vrot.slane %v8040_v17, 4  ;;  %v4513_v32 = vshrl.u32 %v8015_v61, 16  ;;  %v9075_v0 = vld [vmem:[#allocation57_spill] sm:$0xff] }
 0x391   : > { %4553 = vst [vmem:[#allocation1 + $0x3] ss:$4 sm:$0xff] %v9071_v49  ;;  %v4494_v31 = vrot.slane %v4492_v53, 6 }
 0x392   : > { %v8096_v14 = vadd.f32 %v3246_v47, %v2825_v18  ;;  %9072 = vst [vmem:[#allocation78_spill] sm:$0xff] %v8098_v8  ;;  %v4504_v18 = vshrl.u32 %v8007_v12, 16  ;;  %v3569_v47 = vadd.f32 %v3528_v36, %v3285_v38  ;;  %v4497_v8 = vrot.slane %v4495_v26, 7 }
 0x393   : > { %v8094_v30 = vld.sshfl [vmem:[#allocation1 + $0x20] sm:$0xff pattern:$0x73625140]  ;;  %4648 = vmatmul.bf16.gmra.mxu1 %v4539_v6  ;;  %v4509_v6 = vshll.u32 %v8015_v61, 16  ;;  %v4515_v36 = vrot.slane %v4513_v32, 6 }
 0x394   : > { %4564 = vst [vmem:[#allocation1 + $0x20] ss:$4 sm:$0xff] %v8998_v19  ;;  %v4500_v19 = vshll.u32 %v8007_v12, 16 }
 0x395   : > { %4565 = vst [vmem:[#allocation1 + $0x21] ss:$4 sm:$0xff] %v9073_v10  ;;  %v3773_v10 = vpop.f32.mrf.mxu2  ;;  %v4511_v38 = vrot.slane %v4509_v6, 7 }
 0x396   : > { %4566 = vst [vmem:[#allocation1 + $0x22] ss:$4 sm:$0xff] %v9074_v13  ;;  %v3833_v54 = vrot.slane %v3773_v10, 4  ;;  %v8119_v13 = vadd.f32 %v3773_v10, %v8043_v21  ;;  %v8132_v26 = vpop.f32.mrf.mxu1  ;;  %v4506_v21 = vrot.slane %v4504_v18, 6  ;;  %v9081_v10 = vld [vmem:[#allocation52_spill] sm:$0xff] }
 0x397   : > { %4567 = vst [vmem:[#allocation1 + $0x23] ss:$4 sm:$0xff] %v9075_v0  ;;  %v8114_v49 = vpop.f32.mrf.mxu3  ;;  %v8125_v0 = vsel %vm1906_vm5, %v7988_v56, %v9078_v25  ;;  %v4498_v25 = vor.u32 %v4497_v8, %v4494_v31  ;;  %v9087_v31 = vld [vmem:[#allocation90_spill] sm:$0xff] }
 0x398   : > { %9076 = vst [vmem:[#allocation76_spill] sm:$0xff] %v8114_v49  ;;  %v8116_v17 = vld.sshfl [vmem:[#allocation1] sm:$0xff pattern:$0x73625140]  ;;  %v8130_v53 = vadd.f32 %v3833_v54, %v8045_v20  ;;  %v4502_v49 = vrot.slane %v4500_v19, 7  ;;  %v8784_v56 = vrot.slane %v8125_v0, 2 }
 0x399   : > { %9077 = vst [vmem:[#allocation77_spill] sm:$0xff] %v8119_v13  ;;  %v9084_v20 = vld [vmem:[#allocation64_spill] sm:$0xff]  ;;  %v9085_v54 = vld [vmem:[#allocation65_spill] sm:$0xff]  ;;  %v9090_v13 = vld [vmem:[#allocation62_spill] sm:$0xff] }
 0x39a   : > { %4560 = vst [vmem:[#allocation1] ss:$4 sm:$0xff] %v9079_v4  ;;  %v9083_v4 = vld [vmem:[#allocation25_spill] sm:$0xff]  ;;  %v4507_v32 = vor.u32 %v4506_v21, %v4502_v49 }
 0x39b   : > { %4561 = vst [vmem:[#allocation1 + $0x1] ss:$4 sm:$0xff] %v7297_v63  ;;  %4067 = vmatmul.bf16.gmra.mxu3 %v9083_v4  ;;  %v4516_v63 = vor.u32 %v4515_v36, %v4511_v38  ;;  %v9088_v36 = vld [vmem:[#allocation91_spill] sm:$0xff] }
 0x39c   : > { %9080 = vst [vmem:[#allocation2_spill] sm:$0xff] %v8130_v53  ;;  %4361 = vmatmul.bf16.gmra.mxu0 %v7980_v23  ;;  %v4519_v23 = vshll.u32 %v8784_v56, 16 }
 0x39d   : > { %4562 = vst [vmem:[#allocation1 + $0x2] ss:$4 sm:$0xff] %v9081_v10  ;;  %v8143_v18 = vpop.f32.mrf.mxu2  ;;  %v4499_v10 = vrot.slane %v4498_v25, 2 }
 0x39e   : > { %4563 = vst [vmem:[#allocation1 + $0x3] ss:$4 sm:$0xff] %v9082_v37  ;;  %v8139_v6 = vld.sshfl [vmem:[#allocation1 + $0x20] sm:$0xff pattern:$0x73625140]  ;;  %v2827_v37 = vrot.slane %v7928_v27, 4 }
 0x39f   : > { %4816 = vst [vmem:[#allocation1 + $0x20] ss:$4 sm:$0xff] %v9084_v20  ;;  %v3197_v19 = vpop.f32.mrf.mxu3  ;;  %v4517_v20 = vrot.slane %v4516_v63, 2  ;;  %v4521_v56 = vrot.slane %v4519_v23, 7  ;;  %v9091_v23 = vld [vmem:[#allocation69_spill] sm:$0xff] }
 0x3a0   : > { %4818 = vst [vmem:[#allocation1 + $0x21] ss:$4 sm:$0xff] %v9085_v54  ;;  %v3248_v8 = vrot.slane %v3197_v19, 4  ;;  %v3292_v4 = vadd.f32 %v3197_v19, %v7928_v27  ;;  %v4508_v54 = vrot.slane %v4507_v32, 2 }
 0x3a1   : > { %9086 = vst [vmem:[#allocation4_spill] sm:$0xff] %v8143_v18  ;;  %v4503_v18 = vsel %vm6569_vm12, %v4499_v10, %v4502_v49  ;;  %v4522_v63 = vsel %vm6569_vm12, %v4517_v20, %v4521_v56  ;;  %v3572_v56 = vadd.f32 %v8078_v29, %v8091_v42  ;;  %v9095_v20 = vld [vmem:[#allocation26_spill] sm:$0xff] }
 0x3a2   : > { %4820 = vst [vmem:[#allocation1 + $0x22] ss:$4 sm:$0xff] %v9087_v31  ;;  %v3293_v21 = vadd.f32 %v3248_v8, %v2827_v37  ;;  %v8157_v31 = vpop.f32.mrf.mxu1  ;;  %v4512_v27 = vsel %vm6569_vm12, %v4508_v54, %v4511_v38  ;;  %v9092_v38 = vld [vmem:[#allocation70_spill] sm:$0xff]  ;;  %v9093_v8 = vld [vmem:[#allocation48_spill] sm:$0xff] }
 0x3a3   : > { %4822 = vst [vmem:[#allocation1 + $0x23] ss:$4 sm:$0xff] %v9088_v36  ;;  %4653 = vmatmul.bf16.gmra.mxu1 %v8082_v24  ;;  %v3530_v24 = vrot.slane %v8078_v29, 4  ;;  %v9094_v36 = vld [vmem:[#allocation6_spill] sm:$0xff] }
 0x3a4   : > { %v9096_v54 = vld [vmem:[#allocation22_spill] sm:$0xff] }
 0x3a5   : > { %v8152_v53 = vld.sshfl [vmem:[#allocation1] sm:$0xff pattern:$0x73625140]  ;;  %v3778_v19 = vpop.f32.mrf.mxu2 }
 0x3a6   : > { %4570 = vst [vmem:[#allocation1] ss:$4 sm:$0xff] %v9090_v13  ;;  %v3835_v10 = vrot.slane %v3778_v19, 4  ;;  %v8169_v13 = vadd.f32 %v3778_v19, %v8106_v52 }
 0x3a7   : > { %4572 = vst [vmem:[#allocation1 + $0x1] ss:$4 sm:$0xff] %v4503_v18  ;;  %v8164_v32 = vpop.f32.mrf.mxu3  ;;  %v3573_v18 = vadd.f32 %v3530_v24, %v8096_v14  ;;  %v2829_v14 = vrot.slane %v7966_v50, 4  ;;  %v9099_v24 = vld [vmem:[#allocation63_spill] sm:$0xff] }
 0x3a8   : > { %4574 = vst [vmem:[#allocation1 + $0x2] ss:$4 sm:$0xff] %v4512_v27  ;;  %v8176_v37 = vadd.f32 %v3835_v10, %v3569_v47  ;;  %v9097_v27 = vld [vmem:[#allocation40_spill] sm:$0xff]  ;;  %v9098_v47 = vld [vmem:[#allocation61_spill] sm:$0xff] }
 0x3a9   : > { %4576 = vst [vmem:[#allocation1 + $0x3] ss:$4 sm:$0xff] %v4522_v63 }
 0x3aa   : > { %v8166_v49 = vld.sshfl [vmem:[#allocation1 + $0x20] sm:$0xff pattern:$0x73625140]  ;;  %v3486_v25 = vpop.f32.mrf.mxu1 }
 0x3ab   : > { %4829 = vst [vmem:[#allocation1 + $0x20] ss:$4 sm:$0xff] %v9091_v23  ;;  %4072 = vmatmul.bf16.gmra.mxu3 %v9095_v20  ;;  %v9100_v23 = vld [vmem:[#allocation75_spill] sm:$0xff] }
 0x3ac   : > { %4830 = vst [vmem:[#allocation1 + $0x21] ss:$4 sm:$0xff] %v9092_v38  ;;  %4366 = vmatmul.bf16.gmra.mxu0 %v8001_v34  ;;  %v9101_v38 = vld [vmem:[#allocation56_spill] sm:$0xff] }
 0x3ad   : > { %4831 = vst [vmem:[#allocation1 + $0x22] ss:$4 sm:$0xff] %v9093_v8  ;;  %v8186_v42 = vpop.f32.mrf.mxu2  ;;  %v9102_v8 = vld [vmem:[#allocation59_spill] sm:$0xff] }
 0x3ae   : > { %4832 = vst [vmem:[#allocation1 + $0x23] ss:$4 sm:$0xff] %v9094_v36  ;;  %v3532_v36 = vrot.slane %v8132_v26, 4 }
 0x3af   : > { %v3202_v29 = vpop.f32.mrf.mxu3 }
 0x3b0   : > { %v8182_v52 = vld.sshfl [vmem:[#allocation1] sm:$0xff pattern:$0x73625140]  ;;  %v3250_v63 = vrot.slane %v3202_v29, 4  ;;  %v3296_v34 = vadd.f32 %v3202_v29, %v7966_v50 }
 0x3b1   : > { %4808 = vst [vmem:[#allocation1] ss:$4 sm:$0xff] %v9096_v54 }
 0x3b2   : > { %4810 = vst [vmem:[#allocation1 + $0x1] ss:$4 sm:$0xff] %v9097_v27  ;;  %v3297_v19 = vadd.f32 %v3250_v63, %v2829_v14  ;;  %v8202_v27 = vpop.f32.mrf.mxu1  ;;  %v9104_v14 = vld [vmem:[#allocation92_spill] sm:$0xff]  ;;  %v9105_v63 = vld [vmem:[#allocation93_spill] sm:$0xff] }
 0x3b3   : > { %4812 = vst [vmem:[#allocation1 + $0x2] ss:$4 sm:$0xff] %v9098_v47  ;;  %4658 = vmatmul.bf16.gmra.mxu1 %v8064_v59  ;;  %v3577_v47 = vadd.f32 %v3532_v36, %v3293_v21  ;;  %v9109_v36 = vld [vmem:[#allocation95_spill] sm:$0xff] }
 0x3b4   : > { %4814 = vst [vmem:[#allocation1 + $0x3] ss:$4 sm:$0xff] %v9099_v24 }
 0x3b5   : > { %v8193_v10 = vld.sshfl [vmem:[#allocation1 + $0x20] sm:$0xff pattern:$0x73625140]  ;;  %v3783_v50 = vpop.f32.mrf.mxu2  ;;  %9103 = vst [vmem:[#allocation17_spill] sm:$0xff] %v8202_v27 }
 0x3b6   : > { %4839 = vst [vmem:[#allocation1 + $0x20] ss:$4 sm:$0xff] %v9016_v62  ;;  %v3837_v59 = vrot.slane %v3783_v50, 4  ;;  %v8204_v29 = vadd.f32 %v3783_v50, %v3572_v56  ;;  %v3576_v62 = vadd.f32 %v8132_v26, %v3292_v4  ;;  %v2831_v26 = vrot.slane %v7827_v43, 4 }
 0x3b7   : > { %4840 = vst [vmem:[#allocation1 + $0x21] ss:$4 sm:$0xff] %v9100_v23  ;;  %v8200_v20 = vpop.f32.mrf.mxu3  ;;  %v9106_v23 = vld [vmem:[#allocation66_spill] sm:$0xff] }
 0x3b8   : > { %4841 = vst [vmem:[#allocation1 + $0x22] ss:$4 sm:$0xff] %v9101_v38  ;;  %v8209_v24 = vadd.f32 %v3837_v59, %v3573_v18  ;;  %v9107_v38 = vld [vmem:[#allocation68_spill] sm:$0xff]  ;;  %v3534_v59 = vrot.slane %v3486_v25, 4 }
 0x3b9   : > { %4842 = vst [vmem:[#allocation1 + $0x23] ss:$4 sm:$0xff] %v9102_v8 }
 0x3bb   : > { %v4823_v54 = vld.sshfl [vmem:[#allocation1] sm:$0xff pattern:$0x73625140]  ;;  %4077 = vmatmul.bf16.gmra.mxu3 %v7864_v60 }
 0x3bc   : > { %4928 = vmatmul.bf16.vlgmr.msra.gmra.mxu2 %v4823_v54  ;;  %4825 = vst [vmem:[#allocation1] ss:$4 sm:$0xff] %v9104_v14  ;;  %4371 = vmatmul.bf16.gmra.mxu0 %v8019_v45  ;;  %v3491_v45 = vpop.f32.mrf.mxu1  ;;  %v9110_v54 = vld [vmem:[#allocation71_spill] sm:$0xff]  ;;  %v9111_v14 = vld [vmem:[#allocation73_spill] sm:$0xff] }
 0x3bd   : > { %4826 = vst [vmem:[#allocation1 + $0x1] ss:$4 sm:$0xff] %v9105_v63  ;;  %v8218_v50 = vpop.f32.mrf.mxu2 }
 0x3be   : > { %4827 = vst [vmem:[#allocation1 + $0x2] ss:$4 sm:$0xff] %v9106_v23 }
 0x3bf   : > { %4828 = vst [vmem:[#allocation1 + $0x3] ss:$4 sm:$0xff] %v9107_v38  ;;  %v3207_v8 = vpop.f32.mrf.mxu3  ;;  %v3580_v38 = vadd.f32 %v3486_v25, %v3296_v34  ;;  %v2834_v34 = vrot.slane %v7912_v33, 4 }
 0x3c0   : > { %v8215_v56 = vld.sshfl [vmem:[#allocation1 + $0x20] sm:$0xff pattern:$0x73625140]  ;;  %v3252_v4 = vrot.slane %v3207_v8, 4  ;;  %v3300_v21 = vadd.f32 %v3207_v8, %v7827_v43  ;;  %v3581_v8 = vadd.f32 %v3534_v59, %v3297_v19  ;;  %v3536_v19 = vrot.slane %v3491_v45, 4 }
 0x3c1   : > { %4849 = vst [vmem:[#allocation1 + $0x20] ss:$4 sm:$0xff] %v9023_v22  ;;  %v9108_v22 = vld [vmem:[#allocation94_spill] sm:$0xff] }
 0x3c2   : > { %4850 = vst [vmem:[#allocation1 + $0x21] ss:$4 sm:$0xff] %v9018_v40  ;;  %v3301_v60 = vadd.f32 %v3252_v4, %v2831_v26  ;;  %v2832_v40 = vrot.slane %v7867_v15, 4 }
 0x3c3   : > { %4851 = vst [vmem:[#allocation1 + $0x22] ss:$4 sm:$0xff] %v7846_v28  ;;  %4663 = vmatmul.bf16.gmra.mxu1 %v8116_v17 }
 0x3c4   : > { %4852 = vst [vmem:[#allocation1 + $0x23] ss:$4 sm:$0xff] %v7851_v58 }
 0x3c5   : > { %v3788_v28 = vpop.f32.mrf.mxu2 }
 0x3c6   : > { %v4833_v18 = vld.sshfl [vmem:[#allocation1] sm:$0xff pattern:$0x73625140]  ;;  %v3839_v23 = vrot.slane %v3788_v28, 4  ;;  %v8232_v17 = vadd.f32 %v3788_v28, %v3576_v62  ;;  %v2833_v62 = vrot.slane %v7887_v11, 4 }
 0x3c7   : > { %4835 = vst [vmem:[#allocation1] ss:$4 sm:$0xff] %v9108_v22  ;;  %v3209_v43 = vpop.f32.mrf.mxu3  ;;  %v3493_v22 = vpop.f32.mrf.mxu1 }
 0x3c8   : > { %4836 = vst [vmem:[#allocation1 + $0x1] ss:$4 sm:$0xff] %v9109_v36  ;;  %v3253_v63 = vrot.slane %v3209_v43, 4  ;;  %v3302_v58 = vadd.f32 %v3209_v43, %v7867_v15  ;;  %v8235_v4 = vadd.f32 %v3839_v23, %v3577_v47  ;;  %v9112_v15 = vld [vmem:[#allocation96_spill] sm:$0xff]  ;;  %v3537_v47 = vrot.slane %v3493_v22, 4 }
 0x3c9   : > { %4837 = vst [vmem:[#allocation1 + $0x2] ss:$4 sm:$0xff] %v9110_v54 }
 0x3ca   : > { %4838 = vst [vmem:[#allocation1 + $0x3] ss:$4 sm:$0xff] %v9111_v14  ;;  %v3303_v26 = vadd.f32 %v3253_v63, %v2832_v40 }
 0x3cb   : > { %4082 = vmatmul.bf16.gmra.mxu3 %v7839_v51 }
 0x3cc   : > { %4933 = vmatmul.bf16.gmra.mxu2 %v8166_v49  ;;  %4376 = vmatmul.bf16.gmra.mxu0 %v8033_v41 }
 0x3cd   : > { %v8241_v14 = vpop.f32.mrf.mxu2 }
 0x3cf   : > { %v3212_v54 = vpop.f32.mrf.mxu3  ;;  %v3496_v51 = vpop.f32.mrf.mxu1 }
 0x3d0   : > { %v3254_v49 = vrot.slane %v3212_v54, 4  ;;  %v3304_v25 = vadd.f32 %v3212_v54, %v7887_v11 }
 0x3d1   : > { %v8239_v36 = vld.sshfl [vmem:[#allocation1] sm:$0xff pattern:$0x73625140] }
 0x3d2   : > { %4845 = vst [vmem:[#allocation1] ss:$4 sm:$0xff] %v9112_v15  ;;  %v3305_v41 = vadd.f32 %v3254_v49, %v2833_v62  ;;  %v4803_v15 = vrot.slane %v8015_v61, 7  ;;  %v4800_v62 = vrot.slane %v8007_v12, 7 }
 0x3d3   : > { %4846 = vst [vmem:[#allocation1 + $0x1] ss:$4 sm:$0xff] %v7522_v2  ;;  %4668 = vmatmul.bf16.gmra.mxu1 %v8094_v30  ;;  %v3584_v2 = vadd.f32 %v3491_v45, %v3300_v21  ;;  %v3586_v30 = vadd.f32 %v3493_v22, %v3302_v58  ;;  %v9113_v21 = vrot.slane %v8125_v0, 2 }
 0x3d4   : > { %4847 = vst [vmem:[#allocation1 + $0x2] ss:$4 sm:$0xff] %v9021_v57  ;;  %v3585_v57 = vadd.f32 %v3536_v19, %v3301_v60  ;;  %v2835_v60 = vrot.slane %v7931_v9, 4  ;;  %v4802_v61 = vrot.slane %v4800_v62, 2  ;;  %v3538_v19 = vrot.slane %v3496_v51, 4 }
 0x3d5   : > { %4848 = vst [vmem:[#allocation1 + $0x3] ss:$4 sm:$0xff] %v9022_v3  ;;  %v3793_v59 = vpop.f32.mrf.mxu2  ;;  %v3587_v3 = vadd.f32 %v3537_v47, %v3303_v26  ;;  %v4806_v45 = vrot.slane %v9113_v21, 7  ;;  %v9114_v26 = vld [vmem:[#allocation35_spill] sm:$0xff] }
 0x3d6   : > { %v3841_v11 = vrot.slane %v3793_v59, 4  ;;  %v8252_v63 = vadd.f32 %v3793_v59, %v3580_v38  ;;  %v4805_v38 = vrot.slane %v4803_v15, 2  ;;  %v4804_v0 = vsel %vm6882_vm3, %v4802_v61, %v4803_v15 }
 0x3d7   : > { %v3214_v40 = vpop.f32.mrf.mxu3  ;;  %v3588_v15 = vadd.f32 %v3496_v51, %v3304_v25 }
 0x3d8   : > { %v3255_v43 = vrot.slane %v3214_v40, 4  ;;  %v3306_v28 = vadd.f32 %v3214_v40, %v7912_v33  ;;  %v8254_v54 = vadd.f32 %v3841_v11, %v3581_v8  ;;  %v5793_v33 = vrot.slane %v8005_v44, 9 }
 0x3da   : > { %v3307_v23 = vadd.f32 %v3255_v43, %v2834_v34  ;;  %v4801_v22 = vsel %vm6882_vm3, %v5793_v33, %v4800_v62  ;;  %v4807_v34 = vsel %vm6882_vm3, %v4805_v38, %v4806_v45 }
 0x3db   : > { %4087 = vmatmul.bf16.gmra.mxu3 %v7899_v46  ;;  %v3498_v46 = vpop.f32.mrf.mxu1 }
 0x3dc   : > { %4938 = vmatmul.bf16.gmra.mxu2 %v4833_v18  ;;  %v8266_v8 = vld.sshfl [vmem:[#allocation1] sm:$0xff pattern:$0x73625140]  ;;  %v3539_v47 = vrot.slane %v3498_v46, 4  ;;  %v3590_v33 = vadd.f32 %v3498_v46, %v3306_v28 }
 0x3dd   : > { %v8259_v27 = vpop.f32.mrf.mxu2  ;;  %4855 = vst [vmem:[#allocation1] ss:$4 sm:$0xff] %v9114_v26 }
 0x3de   : > { %4857 = vst [vmem:[#allocation1 + $0x1] ss:$4 sm:$0xff] %v4801_v22  ;;  %v3591_v45 = vadd.f32 %v3539_v47, %v3307_v23 }
 0x3df   : > { %v3217_v49 = vpop.f32.mrf.mxu3  ;;  %4859 = vst [vmem:[#allocation1 + $0x2] ss:$4 sm:$0xff] %v4804_v0 }
 0x3e0   : > { %v3256_v18 = vrot.slane %v3217_v49, 4  ;;  %v3308_v58 = vadd.f32 %v3217_v49, %v7931_v9  ;;  %4861 = vst [vmem:[#allocation1 + $0x3] ss:$4 sm:$0xff] %v4807_v34  ;;  %v2836_v9 = vrot.slane %v7950_v48, 4  ;;  %v3589_v49 = vadd.f32 %v3538_v19, %v3305_v41 }
 0x3e2   : > { %v3309_v44 = vadd.f32 %v3256_v18, %v2835_v60 }
 0x3e3   : > { %4673 = vmatmul.bf16.gmra.mxu1 %v8152_v53  ;;  %v3501_v60 = vpop.f32.mrf.mxu1 }
 0x3e5   : > { %v3798_v59 = vpop.f32.mrf.mxu2 }
 0x3e6   : > { %v3843_v53 = vrot.slane %v3798_v59, 4  ;;  %v8278_v62 = vadd.f32 %v3798_v59, %v3584_v2  ;;  %v4337_v59 = vpop.f32.mrf.mxu0 }
 0x3e7   : > { %v3219_v40 = vpop.f32.mrf.mxu3 }
 0x3e8   : > { %v3257_v43 = vrot.slane %v3219_v40, 4  ;;  %v3310_v11 = vadd.f32 %v3219_v40, %v7950_v48  ;;  %v8281_v21 = vadd.f32 %v3843_v53, %v3585_v57  ;;  %v3592_v57 = vadd.f32 %v3501_v60, %v3308_v58 }
 0x3ea   : > { %v3311_v38 = vadd.f32 %v3257_v43, %v2836_v9 }
 0x3eb   : > { %4092 = vmatmul.bf16.gmra.mxu3 %v7881_v16  ;;  %v3503_v2 = vpop.f32.mrf.mxu1 }
 0x3ec   : > { %4943 = vmatmul.bf16.gmra.mxu2 %v8193_v10  ;;  %v3540_v10 = vrot.slane %v3501_v60, 4  ;;  %v3541_v41 = vrot.slane %v3503_v2, 4  ;;  %v3594_v16 = vadd.f32 %v3503_v2, %v3310_v11  ;;  %v9118_v60 = vld [vmem:[#allocation8_spill] sm:$0xff] }
 0x3ed   : > { %v3800_v18 = vpop.f32.mrf.mxu2 }
 0x3ee   : > { %v3844_v61 = vrot.slane %v3800_v18, 4  ;;  %v8284_v26 = vadd.f32 %v3800_v18, %v3586_v30  ;;  %v3593_v23 = vadd.f32 %v3540_v10, %v3309_v44  ;;  %v3595_v30 = vadd.f32 %v3541_v41, %v3311_v38  ;;  %v4339_v11 = vpop.f32.mrf.mxu0 }
 0x3ef   : > { %v4053_v58 = vpop.f32.mrf.mxu3 }
 0x3f0   : > { %v8287_v48 = vadd.f32 %v3844_v61, %v3587_v3  ;;  %v4116_v10 = vrot.slane %v4053_v58, 4 }
 0x3f3   : > { %4678 = vmatmul.bf16.gmra.mxu1 %v8139_v6 }
 0x3f5   : > { %v3803_v25 = vpop.f32.mrf.mxu2 }
 0x3f6   : > { %v3845_v51 = vrot.slane %v3803_v25, 4  ;;  %v8289_v28 = vadd.f32 %v3803_v25, %v3588_v15 }
 0x3f8   : > { %v8292_v46 = vadd.f32 %v3845_v51, %v3589_v49  ;;  %v4152_v51 = vadd.f32 %v4053_v58, %v8071_v35 }
 0x3fc   : > { %4948 = vmatmul.bf16.gmra.mxu2 %v8239_v36 }
 0x3fd   : > { %v3805_v12 = vpop.f32.mrf.mxu2 }
 0x3fe   : > { %v3846_v22 = vrot.slane %v3805_v12, 4  ;;  %v8294_v6 = vadd.f32 %v3805_v12, %v3590_v33  ;;  %v4854_v33 = vld.sshfl [vmem:[#allocation1 + $0x20] sm:$0xff pattern:$0x73625140] }
 0x400   : > { %v8297_v3 = vadd.f32 %v3846_v22, %v3591_v45  ;;  %v4644_v43 = vpop.f32.mrf.mxu1  ;;  %v9117_v45 = vld [vmem:[#allocation15_spill] sm:$0xff]  ;;  %v3832_v22 = vrot.slane %v8086_v55, 4 }
 0x401   : > { %v2759_v18 = vadd.f32 %v9118_v60, %v9117_v45 }
 0x403   : > { %4683 = vmatmul.bf16.gmra.mxu1 %v8182_v52  ;;  %v4055_v52 = vpop.f32.mrf.mxu3  ;;  %v2820_v25 = vrot.slane %v2759_v18, 4  ;;  %v3278_v41 = vadd.f32 %v7991_v39, %v2759_v18 }
 0x405   : > { %v3808_v0 = vpop.f32.mrf.mxu2  ;;  %v3562_v12 = vadd.f32 %v7974_v7, %v3278_v41 }
 0x406   : > { %v3847_v34 = vrot.slane %v3808_v0, 4  ;;  %v8299_v9 = vadd.f32 %v3808_v0, %v3592_v57  ;;  %v4862_v0 = vld.sshfl [vmem:[#allocation1] sm:$0xff pattern:$0x73625140] }
 0x407   : > { %v3869_v58 = vadd.f32 %v8086_v55, %v3562_v12  ;;  %v9120_v12 = vld [vmem:[#allocation30_spill] sm:$0xff] }
 0x408   : > { %v8302_v36 = vadd.f32 %v3847_v34, %v3593_v23  ;;  %v8309_v53 = vpop.f32.mrf.mxu1  ;;  %v4400_v34 = vrot.slane %v4337_v59, 4 }
 0x409   : > { %v4154_v18 = vadd.f32 %v4055_v52, %v3869_v58 }
 0x40b   : > { %v8311_v15 = vpop.f32.mrf.mxu3 }
 0x40c   : > { %4953 = vmatmul.bf16.gmra.mxu2 %v8215_v56  ;;  %v8313_v56 = vpop.f32.mrf.mxu0 }
 0x40d   : > { %v3810_v44 = vpop.f32.mrf.mxu2 }
 0x40e   : > { %v3848_v19 = vrot.slane %v3810_v44, 4  ;;  %v8304_v47 = vadd.f32 %v3810_v44, %v3594_v16  ;;  %v4153_v16 = vadd.f32 %v4116_v10, %v8076_v5  ;;  %v4436_v44 = vadd.f32 %v4337_v59, %v4152_v51 }
 0x410   : > { %v8306_v40 = vadd.f32 %v3848_v19, %v3595_v30  ;;  %v8315_v49 = vpop.f32.mrf.mxu1  ;;  %v3525_v30 = vrot.slane %v7974_v7, 4  ;;  %v4707_v19 = vrot.slane %v4644_v43, 4  ;;  %v4437_v45 = vadd.f32 %v4400_v34, %v4153_v16 }
 0x411   : > { %v4743_v7 = vadd.f32 %v4644_v43, %v4436_v44  ;;  %v4401_v16 = vrot.slane %v4339_v11, 4 }
 0x412   : > { %9116 = vst [vmem:[#allocation19_spill] sm:$0xff] %v8306_v40  ;;  %v4744_v10 = vadd.f32 %v4707_v19, %v4437_v45  ;;  %v3243_v19 = vrot.slane %v8035_v1, 4 }
 0x413   : > { %v8317_v38 = vpop.f32.mrf.mxu3 }
 0x414   : > { %v8321_v61 = vpop.f32.mrf.mxu0 }
 0x418   : > { %v8324_v2 = vpop.f32.mrf.mxu1 }
 0x41b   : > { %v8328_v23 = vpop.f32.mrf.mxu3 }
 0x41c   : > { %4958 = vmatmul.bf16.gmra.mxu2 %v8266_v8  ;;  %v3241_v8 = vrot.slane %v7991_v39, 4  ;;  %v8337_v39 = vld [vmem:[%s8611_s5] ss:$0 sm:$0xff]  ;;  %v8340_v5 = vpop.f32.mrf.mxu0 }
 0x41d   : > { %v8345_v51 = vrot.slane %v8337_v39, 4 }
 0x41e   : > { %v3279_v57 = vadd.f32 %v3241_v8, %v2820_v25 }
 0x420   : > { %v3563_v35 = vadd.f32 %v3525_v30, %v3279_v57  ;;  %v8342_v8 = vpop.f32.mrf.mxu1  ;;  %v9119_v30 = vld [vmem:[#allocation9_spill] sm:$0xff] }
 0x421   : > { %v2764_v40 = vadd.f32 %v9120_v12, %v9119_v30 }
 0x422   : > { %v3870_v60 = vadd.f32 %v3832_v22, %v3563_v35  ;;  %v4708_v22 = vrot.slane %v8309_v53, 4  ;;  %v4118_v35 = vrot.slane %v8311_v15, 4 }
 0x423   : > { %v8350_v43 = vpop.f32.mrf.mxu3 }
 0x42c   : > { %4963 = vmatmul.bf16.gmra.mxu2 %v4854_v33  ;;  %v4117_v33 = vrot.slane %v4055_v52, 4  ;;  %v4438_v52 = vadd.f32 %v4339_v11, %v4154_v18  ;;  %v8358_v11 = vpop.f32.mrf.mxu0  ;;  %v9121_v18 = vld [vmem:[#allocation77_spill] sm:$0xff] }
 0x43c   : > { %4968 = vmatmul.bf16.gmra.mxu2 %v4862_v0  ;;  %v4155_v0 = vadd.f32 %v4117_v33, %v3870_v60  ;;  %v4745_v33 = vadd.f32 %v8309_v53, %v4438_v52  ;;  %v3282_v60 = vadd.f32 %v8035_v1, %v2764_v40  ;;  %v8363_v53 = vpop.f32.mrf.mxu1  ;;  %v9123_v1 = vld [vmem:[#allocation50_spill] sm:$0xff] }
 0x43e   : > { %v4439_v58 = vadd.f32 %v4401_v16, %v4155_v0  ;;  %v9122_v0 = vld [vmem:[#allocation2_spill] sm:$0xff]  ;;  %v3566_v52 = vadd.f32 %v9123_v1, %v3282_v60 }
 0x43f   : > { %v4929_v59 = vpop.f32.mrf.mxu2  ;;  %v4157_v30 = vadd.f32 %v4118_v35, %v9122_v0 }
 0x440   : > { %v4992_v25 = vrot.slane %v4929_v59, 4  ;;  %v5028_v41 = vadd.f32 %v4929_v59, %v4743_v7  ;;  %v2822_v7 = vrot.slane %v2764_v40, 4  ;;  %v3527_v40 = vrot.slane %v9123_v1, 4 }
 0x442   : > { %v5029_v57 = vadd.f32 %v4992_v25, %v4744_v10  ;;  %v5070_v55 = vadd.f32 %v8337_v39, %v5028_v41  ;;  %v4156_v10 = vadd.f32 %v8311_v15, %v9121_v18  ;;  %v4746_v25 = vadd.f32 %v4708_v22, %v4439_v58 }
 0x443   : > { %v4402_v15 = vrot.slane %v8313_v56, 4  ;;  %v4119_v18 = vrot.slane %v8317_v38, 4 }
 0x444   : > { %v5071_v34 = vadd.f32 %v8345_v51, %v5029_v57  ;;  %v5106_v44 = vmax.f32 %v5070_v55, 0.0  ;;  %v3283_v55 = vadd.f32 %v3243_v19, %v2822_v7  ;;  %v4440_v22 = vadd.f32 %v8313_v56, %v4156_v10 }
 0x445   : > { %v4709_v19 = vrot.slane %v8315_v49, 4  ;;  %v4441_v7 = vadd.f32 %v4402_v15, %v4157_v30 }
 0x446   : > { %v5107_v45 = vmax.f32 %v5071_v34, 0.0  ;;  %5178 = vst [vmem:[#allocation1] ss:$2 sm:$0xff] %v5106_v44  ;;  %v9124_v34 = vld [vmem:[#allocation4_spill] sm:$0xff]  ;;  %v4747_v60 = vadd.f32 %v8315_v49, %v4440_v22  ;;  %v8387_v49 = vpop.f32.mrf.mxu0  ;;  %v4710_v22 = vrot.slane %v8324_v2, 4 }
 0x447   : > { %v4931_v59 = vpop.f32.mrf.mxu2  ;;  %v3834_v44 = vrot.slane %v9124_v34, 4 }
 0x448   : > { %5180 = vst [vmem:[#allocation1 + $0x1] ss:$2 sm:$0xff] %v5107_v45  ;;  %v4993_v41 = vrot.slane %v4931_v59, 4  ;;  %v5030_v57 = vadd.f32 %v4931_v59, %v4745_v33  ;;  %v3567_v33 = vadd.f32 %v3527_v40, %v3283_v55  ;;  %v3873_v45 = vadd.f32 %v9124_v34, %v3566_v52  ;;  %v8375_v59 = vpop.f32.mrf.mxu3  ;;  %v9125_v40 = vld [vmem:[#allocation10_spill] sm:$0xff]  ;;  %v9126_v52 = vld [vmem:[#allocation37_spill] sm:$0xff] }
 0x449   : > { %v4748_v55 = vadd.f32 %v4709_v19, %v4441_v7  ;;  %v2769_v34 = vadd.f32 %v9126_v52, %v9125_v40  ;;  %v4120_v7 = vrot.slane %v8328_v23, 4  ;;  %v9128_v40 = vld [vmem:[#allocation72_spill] sm:$0xff] }
 0x44a   : > { %v5031_v12 = vadd.f32 %v4993_v41, %v4746_v25  ;;  %v5072_v16 = vadd.f32 %v8337_v39, %v5030_v57  ;;  %v4158_v56 = vadd.f32 %v8317_v38, %v3873_v45  ;;  %v3874_v57 = vadd.f32 %v3834_v44, %v3567_v33  ;;  %v8394_v44 = vpop.f32.mrf.mxu1 }
 0x44b   : > { %v4403_v38 = vrot.slane %v8321_v61, 4  ;;  %v3529_v52 = vrot.slane %v9128_v40, 4 }
 0x44c   : > { %v5073_v35 = vadd.f32 %v8337_v39, %v5031_v12  ;;  %v5108_v58 = vmax.f32 %v5072_v16, 0.0  ;;  %v4159_v12 = vadd.f32 %v4119_v18, %v3874_v57  ;;  %v4442_v15 = vadd.f32 %v8321_v61, %v4158_v56 }
 0x44d   : > { %v2824_v61 = vrot.slane %v2769_v34, 4  ;;  %v4160_v57 = vadd.f32 %v8328_v23, %v8169_v13  ;;  %v4711_v23 = vrot.slane %v8342_v8, 4 }
 0x44e   : > { %v5109_v25 = vmax.f32 %v5073_v35, 0.0  ;;  %5182 = vst [vmem:[#allocation1 + $0x10] ss:$2 sm:$0xff] %v5108_v58  ;;  %v9127_v58 = vld [vmem:[#allocation74_spill] sm:$0xff]  ;;  %v4443_v18 = vadd.f32 %v4403_v38, %v4159_v12  ;;  %v3836_v38 = vrot.slane %v8186_v42, 4 }
 0x44f   : > { %v4934_v10 = vpop.f32.mrf.mxu2  ;;  %v5183_v41 = vld.sshfl [vmem:[#allocation1] sm:$0xff pattern:$0x75316420]  ;;  %v3245_v33 = vrot.slane %v9127_v58, 4  ;;  %v3286_v56 = vadd.f32 %v9127_v58, %v2769_v34  ;;  %v4444_v13 = vadd.f32 %v8340_v5, %v4160_v57 }
 0x450   : > { %5186 = vst [vmem:[#allocation1 + $0x20] ss:$2 sm:$0xff] %v5109_v25  ;;  %v4994_v0 = vrot.slane %v4934_v10, 4  ;;  %v5032_v30 = vadd.f32 %v4934_v10, %v4747_v60  ;;  %v4749_v60 = vadd.f32 %v8324_v2, %v4442_v15  ;;  %v8402_v10 = vpop.f32.mrf.mxu3  ;;  %v4161_v2 = vadd.f32 %v4120_v7, %v8176_v37 }
 0x451   : > { %5268 = vst.msk [vmem:[%s8382_s26] sm:$0xff] %vm5267_vm0, %v5183_v41  ;;  %v3287_v12 = vadd.f32 %v3245_v33, %v2824_v61  ;;  %v3570_v34 = vadd.f32 %v9128_v40, %v3286_v56  ;;  %v4404_v15 = vrot.slane %v8340_v5, 4  ;;  %v4121_v7 = vrot.slane %v8350_v43, 4 }
 0x452   : > { %v5033_v16 = vadd.f32 %v4994_v0, %v4748_v55  ;;  %v5074_v1 = vadd.f32 %v8345_v51, %v5032_v30  ;;  %v4750_v55 = vadd.f32 %v4710_v22, %v4443_v18  ;;  %v8420_v33 = vpop.f32.mrf.mxu1  ;;  %v4405_v40 = vrot.slane %v8358_v11, 4 }
 0x453   : > { %v3877_v58 = vadd.f32 %v8186_v42, %v3570_v34  ;;  %v4445_v18 = vadd.f32 %v4404_v15, %v4161_v2  ;;  %v9129_v2 = vld [vmem:[#allocation32_spill] sm:$0xff] }
 0x454   : > { %v5075_v19 = vadd.f32 %v8337_v39, %v5033_v16  ;;  %v5110_v35 = vmax.f32 %v5074_v1, 0.0  ;;  %v9131_v15 = vld [vmem:[#allocation76_spill] sm:$0xff] }
 0x455   : > { %v5184_v45 = vld.sshfl [vmem:[#allocation1 + $0x10] sm:$0xff pattern:$0x75316420]  ;;  %v4752_v57 = vadd.f32 %v4711_v23, %v4445_v18 }
 0x456   : > { %v5111_v25 = vmax.f32 %v5075_v19, 0.0  ;;  %5188 = vst [vmem:[#allocation1 + $0x21] ss:$2 sm:$0xff] %v5110_v35  ;;  %v8414_v19 = vpop.f32.mrf.mxu0  ;;  %v3571_v35 = vadd.f32 %v3529_v52, %v3287_v12 }
 0x457   : > { %v4936_v41 = vpop.f32.mrf.mxu2  ;;  %5270 = vst.msk [vmem:[%s8382_s26 + $0x8] sm:$0xf] %vm5269_vm2, %v5184_v45 }
 0x458   : > { %5190 = vst [vmem:[#allocation1 + $0x30] ss:$2 sm:$0xff] %v5111_v25  ;;  %v4995_v0 = vrot.slane %v4936_v41, 4  ;;  %v5034_v30 = vadd.f32 %v4936_v41, %v4749_v60  ;;  %v4751_v60 = vadd.f32 %v8342_v8, %v4444_v13  ;;  %v3878_v5 = vadd.f32 %v3836_v38, %v3571_v35 }
 0x459   : > { %v4162_v41 = vadd.f32 %v8350_v43, %v3877_v58  ;;  %v4712_v43 = vrot.slane %v8363_v53, 4  ;;  %v3247_v13 = vrot.slane %v9131_v15, 4 }
 0x45a   : > { %v5035_v16 = vadd.f32 %v4995_v0, %v4750_v55  ;;  %v5076_v1 = vadd.f32 %v8337_v39, %v5034_v30  ;;  %v8427_v0 = vpop.f32.mrf.mxu3  ;;  %v4163_v30 = vadd.f32 %v4121_v7, %v3878_v5  ;;  %v8444_v7 = vpop.f32.mrf.mxu1 }
 0x45b   : > { %v4446_v52 = vadd.f32 %v8358_v11, %v4162_v41 }
 0x45c   : > { %v5077_v37 = vadd.f32 %v8345_v51, %v5035_v16  ;;  %v5112_v22 = vmax.f32 %v5076_v1, 0.0  ;;  %v9130_v16 = vld [vmem:[#allocation60_spill] sm:$0xff] }
 0x45d   : > { %v5191_v45 = vld.sshfl [vmem:[#allocation1 + $0x20] sm:$0xff pattern:$0x75316420]  ;;  %v2774_v1 = vadd.f32 %v9130_v16, %v9129_v2  ;;  %v4753_v35 = vadd.f32 %v8363_v53, %v4446_v52  ;;  %v4713_v16 = vrot.slane %v8394_v44, 4 }
 0x45e   : > { %v5113_v25 = vmax.f32 %v5077_v37, 0.0  ;;  %5193 = vst [vmem:[#allocation1] ss:$2 sm:$0xff] %v5112_v22  ;;  %v8439_v23 = vpop.f32.mrf.mxu0  ;;  %v4122_v37 = vrot.slane %v8375_v59, 4  ;;  %v4447_v22 = vadd.f32 %v4405_v40, %v4163_v30 }
 0x45f   : > { %v4939_v61 = vpop.f32.mrf.mxu2  ;;  %5271 = vst.msk [vmem:[%s8382_s26 + $0x10] sm:$0xff] %vm5267_vm0, %v5191_v45  ;;  %v5192_v56 = vld.sshfl [vmem:[#allocation1 + $0x30] sm:$0xff pattern:$0x75316420]  ;;  %v2826_v45 = vrot.slane %v2774_v1, 4  ;;  %v3290_v11 = vadd.f32 %v9131_v15, %v2774_v1 }
 0x460   : > { %v4996_v42 = vrot.slane %v4939_v61, 4  ;;  %v5036_v55 = vadd.f32 %v4939_v61, %v4751_v60  ;;  %5194 = vst [vmem:[#allocation1 + $0x1] ss:$2 sm:$0xff] %v5113_v25  ;;  %v4164_v25 = vadd.f32 %v8375_v59, %v8204_v29  ;;  %v4754_v5 = vadd.f32 %v4712_v43, %v4447_v22 }
 0x461   : > { %5272 = vst.msk [vmem:[%s8382_s26 + $0x18] sm:$0xf] %vm5269_vm2, %v5192_v56  ;;  %v3291_v41 = vadd.f32 %v3247_v13, %v2826_v45  ;;  %v4165_v53 = vadd.f32 %v4122_v37, %v8209_v24  ;;  %v4406_v29 = vrot.slane %v8387_v49, 4 }
 0x462   : > { %v5037_v12 = vadd.f32 %v4996_v42, %v4752_v57  ;;  %v5078_v8 = vadd.f32 %v8337_v39, %v5036_v55  ;;  %v9132_v55 = vld [vmem:[#allocation78_spill] sm:$0xff]  ;;  %v8456_v59 = vpop.f32.mrf.mxu3  ;;  %v4448_v2 = vadd.f32 %v8387_v49, %v4164_v25  ;;  %v9133_v25 = vld [vmem:[#allocation41_spill] sm:$0xff] }
 0x463   : > { %v3531_v30 = vrot.slane %v9132_v55, 4 }
 0x464   : > { %v5079_v34 = vadd.f32 %v8337_v39, %v5037_v12  ;;  %v5114_v38 = vmax.f32 %v5078_v8, 0.0  ;;  %v3574_v12 = vadd.f32 %v9132_v55, %v3290_v11  ;;  %v3838_v8 = vrot.slane %v8218_v50, 4  ;;  %v8469_v11 = vpop.f32.mrf.mxu1 }
 0x465   : > { %v3575_v40 = vadd.f32 %v3531_v30, %v3291_v41  ;;  %v4755_v15 = vadd.f32 %v8394_v44, %v4448_v2 }
 0x466   : > { %v5115_v58 = vmax.f32 %v5079_v34, 0.0  ;;  %5195 = vst [vmem:[#allocation1 + $0x10] ss:$2 sm:$0xff] %v5114_v38  ;;  %v3881_v52 = vadd.f32 %v8218_v50, %v3574_v12  ;;  %v4123_v34 = vrot.slane %v8402_v10, 4  ;;  %v4449_v38 = vadd.f32 %v4406_v29, %v4165_v53  ;;  %v8466_v49 = vpop.f32.mrf.mxu0 }
 0x467   : > { %v5196_v18 = vld.sshfl [vmem:[#allocation1] sm:$0xff pattern:$0x75316420]  ;;  %v4941_v60 = vpop.f32.mrf.mxu2  ;;  %v3882_v37 = vadd.f32 %v3838_v8, %v3575_v40  ;;  %v4124_v12 = vrot.slane %v8427_v0, 4  ;;  %v4168_v40 = vadd.f32 %v8427_v0, %v8232_v17  ;;  %v3840_v17 = vrot.slane %v8241_v14, 4 }
 0x468   : > { %5198 = vst [vmem:[#allocation1 + $0x20] ss:$2 sm:$0xff] %v5115_v58  ;;  %v4997_v61 = vrot.slane %v4941_v60, 4  ;;  %v5038_v56 = vadd.f32 %v4941_v60, %v4753_v35  ;;  %v4166_v35 = vadd.f32 %v8402_v10, %v3881_v52  ;;  %v4756_v58 = vadd.f32 %v4713_v16, %v4449_v38 }
 0x469   : > { %5273 = vst.msk [vmem:[%s8382_s26 + $0x20] sm:$0xff] %vm5267_vm0, %v5196_v18  ;;  %v4167_v18 = vadd.f32 %v4123_v34, %v3882_v37  ;;  %v4714_v10 = vrot.slane %v8420_v33, 4  ;;  %v3533_v37 = vrot.slane %v8157_v31, 4  ;;  %v4408_v0 = vrot.slane %v8439_v23, 4 }
 0x46a   : > { %v5039_v57 = vadd.f32 %v4997_v61, %v4754_v5  ;;  %v5080_v42 = vadd.f32 %v8345_v51, %v5038_v56  ;;  %v9134_v5 = vld [vmem:[#allocation84_spill] sm:$0xff]  ;;  %v4407_v56 = vrot.slane %v8414_v19, 4  ;;  %v4450_v41 = vadd.f32 %v8414_v19, %v4166_v35  ;;  %v8479_v55 = vpop.f32.mrf.mxu3 }
 0x46b   : > { %v2779_v61 = vadd.f32 %v9134_v5, %v9133_v25 }
 0x46c   : > { %v5081_v24 = vadd.f32 %v8337_v39, %v5039_v57  ;;  %v5116_v1 = vmax.f32 %v5080_v42, 0.0  ;;  %v3249_v42 = vrot.slane %v8164_v32, 4  ;;  %v4451_v8 = vadd.f32 %v4407_v56, %v4167_v18  ;;  %v8498_v35 = vpop.f32.mrf.mxu1 }
 0x46d   : > { %v5197_v43 = vld.sshfl [vmem:[#allocation1 + $0x10] sm:$0xff pattern:$0x75316420]  ;;  %v4757_v29 = vadd.f32 %v8420_v33, %v4450_v41  ;;  %v2828_v19 = vrot.slane %v2779_v61, 4  ;;  %v3294_v16 = vadd.f32 %v8164_v32, %v2779_v61 }
 0x46e   : > { %v5117_v13 = vmax.f32 %v5081_v24, 0.0  ;;  %5199 = vst [vmem:[#allocation1 + $0x21] ss:$2 sm:$0xff] %v5116_v1  ;;  %v4758_v52 = vadd.f32 %v4714_v10, %v4451_v8  ;;  %v8490_v33 = vpop.f32.mrf.mxu0  ;;  %v9136_v8 = vld [vmem:[#allocation54_spill] sm:$0xff] }
 0x46f   : > { %v4944_v22 = vpop.f32.mrf.mxu2  ;;  %5274 = vst.msk [vmem:[%s8382_s26 + $0x28] sm:$0xf] %vm5269_vm2, %v5197_v43  ;;  %v3295_v38 = vadd.f32 %v3249_v42, %v2828_v19 }
 0x470   : > { %5200 = vst [vmem:[#allocation1 + $0x30] ss:$2 sm:$0xff] %v5117_v13  ;;  %v4998_v45 = vrot.slane %v4944_v22, 4  ;;  %v5040_v50 = vadd.f32 %v4944_v22, %v4755_v15  ;;  %v4169_v15 = vadd.f32 %v4124_v12, %v8235_v4  ;;  %v3578_v22 = vadd.f32 %v8157_v31, %v3294_v16 }
 0x471   : > { %v3579_v18 = vadd.f32 %v3533_v37, %v3295_v38  ;;  %v4716_v16 = vrot.slane %v8469_v11, 4 }
 0x472   : > { %v5041_v60 = vadd.f32 %v4998_v45, %v4756_v58  ;;  %v5082_v44 = vadd.f32 %v8337_v39, %v5040_v50  ;;  %v4452_v58 = vadd.f32 %v8439_v23, %v4168_v40  ;;  %v4715_v45 = vrot.slane %v8444_v7, 4  ;;  %v8506_v56 = vpop.f32.mrf.mxu3 }
 0x473   : > { %v4453_v31 = vadd.f32 %v4408_v0, %v4169_v15  ;;  %v3886_v61 = vadd.f32 %v3840_v17, %v3579_v18  ;;  %v3251_v40 = vrot.slane %v8200_v20, 4 }
 0x474   : > { %v5083_v53 = vadd.f32 %v8345_v51, %v5041_v60  ;;  %v5118_v57 = vmax.f32 %v5082_v44, 0.0  ;;  %v3885_v60 = vadd.f32 %v8241_v14, %v3578_v22  ;;  %v4125_v44 = vrot.slane %v8456_v59, 4 }
 0x475   : > { %v5201_v30 = vld.sshfl [vmem:[#allocation1 + $0x20] sm:$0xff pattern:$0x75316420]  ;;  %v4759_v25 = vadd.f32 %v8444_v7, %v4452_v58  ;;  %v9135_v7 = vld [vmem:[#allocation67_spill] sm:$0xff]  ;;  %v4172_v22 = vadd.f32 %v8479_v55, %v8252_v63  ;;  %v4410_v63 = vrot.slane %v8490_v33, 4 }
 0x476   : > { %5275 = vst.msk [vmem:[%s8382_s26 + $0x30] sm:$0xff] %vm5267_vm0, %v5201_v30  ;;  %v5119_v2 = vmax.f32 %v5083_v53, 0.0  ;;  %v4170_v10 = vadd.f32 %v8456_v59, %v3885_v60  ;;  %v4760_v53 = vadd.f32 %v4715_v45, %v4453_v31  ;;  %v4171_v14 = vadd.f32 %v4125_v44, %v3886_v61  ;;  %v8515_v19 = vpop.f32.mrf.mxu0  ;;  %v9137_v60 = vld [vmem:[#allocation17_spill] sm:$0xff] }
 0x477   : > { %5203 = vst [vmem:[#allocation1] ss:$2 sm:$0xff] %v5118_v57  ;;  %v4946_v24 = vpop.f32.mrf.mxu2  ;;  %v5202_v1 = vld.sshfl [vmem:[#allocation1 + $0x30] sm:$0xff pattern:$0x75316420]  ;;  %v3842_v31 = vrot.slane %v8259_v27, 4 }
 0x478   : > { %5204 = vst [vmem:[#allocation1 + $0x1] ss:$2 sm:$0xff] %v5119_v2  ;;  %v4999_v43 = vrot.slane %v4946_v24, 4  ;;  %v5042_v34 = vadd.f32 %v4946_v24, %v4757_v29  ;;  %v2784_v29 = vadd.f32 %v9136_v8, %v9135_v7  ;;  %v4409_v2 = vrot.slane %v8466_v49, 4 }
 0x479   : > { %5276 = vst.msk [vmem:[%s8382_s26 + $0x38] sm:$0xf] %vm5269_vm2, %v5202_v1  ;;  %v4454_v59 = vadd.f32 %v8466_v49, %v4170_v10 }
 0x47a   : > { %v5043_v13 = vadd.f32 %v4999_v43, %v4758_v52  ;;  %v5084_v32 = vadd.f32 %v8337_v39, %v5042_v34  ;;  %v8521_v52 = vpop.f32.mrf.mxu1  ;;  %v4126_v34 = vrot.slane %v8479_v55, 4  ;;  %v4455_v38 = vadd.f32 %v4409_v2, %v4171_v14 }
 0x47b   : > { %v4761_v15 = vadd.f32 %v8469_v11, %v4454_v59  ;;  %v3298_v49 = vadd.f32 %v8200_v20, %v2784_v29  ;;  %v3535_v20 = vrot.slane %v9137_v60, 4  ;;  %v4456_v55 = vadd.f32 %v8490_v33, %v4172_v22 }
 0x47c   : > { %v5085_v4 = vadd.f32 %v8337_v39, %v5043_v13  ;;  %v5120_v50 = vmax.f32 %v5084_v32, 0.0  ;;  %v2830_v32 = vrot.slane %v2784_v29, 4  ;;  %v4762_v17 = vadd.f32 %v4716_v16, %v4455_v38 }
 0x47d   : > { %v3582_v44 = vadd.f32 %v9137_v60, %v3298_v49 }
 0x47e   : > { %v5121_v5 = vmax.f32 %v5085_v4, 0.0  ;;  %5205 = vst [vmem:[#allocation1 + $0x10] ss:$2 sm:$0xff] %v5120_v50  ;;  %v3299_v45 = vadd.f32 %v3251_v40, %v2830_v32  ;;  %v4083_v4 = vpop.f32.mrf.mxu3  ;;  %v4173_v50 = vadd.f32 %v4126_v34, %v8254_v54  ;;  %v4367_v10 = vpop.f32.mrf.mxu0 }
 0x47f   : > { %v5206_v23 = vld.sshfl [vmem:[#allocation1] sm:$0xff pattern:$0x75316420]  ;;  %v4949_v41 = vpop.f32.mrf.mxu2  ;;  %v4128_v38 = vrot.slane %v4083_v4, 4 }
 0x480   : > { %5277 = vst.msk [vmem:[%s8382_s26 + $0x40] sm:$0xff] %vm5267_vm0, %v5206_v23  ;;  %v5000_v57 = vrot.slane %v4949_v41, 4  ;;  %v5044_v42 = vadd.f32 %v4949_v41, %v4759_v25  ;;  %v4717_v25 = vrot.slane %v8498_v35, 4  ;;  %v3583_v54 = vadd.f32 %v3535_v20, %v3299_v45 }
 0x481   : > { %5208 = vst [vmem:[#allocation1 + $0x20] ss:$2 sm:$0xff] %v5121_v5  ;;  %v3889_v23 = vadd.f32 %v8259_v27, %v3582_v44 }
 0x482   : > { %v5045_v30 = vadd.f32 %v5000_v57, %v4760_v53  ;;  %v5086_v12 = vadd.f32 %v8345_v51, %v5044_v42  ;;  %v4127_v53 = vrot.slane %v8506_v56, 4  ;;  %v4457_v57 = vadd.f32 %v4410_v63, %v4173_v50 }
 0x483   : > { %v4763_v42 = vadd.f32 %v8498_v35, %v4456_v55  ;;  %v3890_v33 = vadd.f32 %v3842_v31, %v3583_v54  ;;  %v4174_v8 = vadd.f32 %v8506_v56, %v3889_v23  ;;  %v4177_v50 = vadd.f32 %v4128_v38, %v8281_v21 }
 0x484   : > { %v5087_v24 = vadd.f32 %v8337_v39, %v5045_v30  ;;  %v5122_v1 = vmax.f32 %v5086_v12, 0.0  ;;  %v4674_v30 = vpop.f32.mrf.mxu1  ;;  %v4764_v29 = vadd.f32 %v4717_v25, %v4457_v57 }
 0x485   : > { %v5207_v43 = vld.sshfl [vmem:[#allocation1 + $0x10] sm:$0xff pattern:$0x75316420]  ;;  %v4175_v59 = vadd.f32 %v4127_v53, %v3890_v33  ;;  %v4458_v40 = vadd.f32 %v8515_v19, %v4174_v8  ;;  %v4719_v20 = vrot.slane %v4674_v30, 4 }
 0x486   : > { %v5123_v13 = vmax.f32 %v5087_v24, 0.0  ;;  %5209 = vst [vmem:[#allocation1 + $0x21] ss:$2 sm:$0xff] %v5122_v1  ;;  %v4411_v24 = vrot.slane %v8515_v19, 4  ;;  %v4085_v1 = vpop.f32.mrf.mxu3  ;;  %v4369_v22 = vpop.f32.mrf.mxu0 }
 0x487   : > { %v4951_v37 = vpop.f32.mrf.mxu2  ;;  %5278 = vst.msk [vmem:[%s8382_s26 + $0x48] sm:$0xf] %vm5269_vm2, %v5207_v43  ;;  %v4718_v43 = vrot.slane %v8521_v52, 4  ;;  %v4129_v63 = vrot.slane %v4085_v1, 4  ;;  %v4178_v21 = vadd.f32 %v4085_v1, %v8284_v26 }
 0x488   : > { %5210 = vst [vmem:[#allocation1 + $0x30] ss:$2 sm:$0xff] %v5123_v13  ;;  %v5001_v0 = vrot.slane %v4951_v37, 4  ;;  %v5046_v58 = vadd.f32 %v4951_v37, %v4761_v15  ;;  %v4459_v15 = vadd.f32 %v4411_v24, %v4175_v59  ;;  %v4765_v13 = vadd.f32 %v8521_v52, %v4458_v40 }
 0x489   : > { %v4179_v53 = vadd.f32 %v4129_v63, %v8287_v48 }
 0x48a   : > { %v5047_v11 = vadd.f32 %v5001_v0, %v4762_v17  ;;  %v5088_v18 = vadd.f32 %v8337_v39, %v5046_v58  ;;  %v4176_v17 = vadd.f32 %v4083_v4, %v8278_v62  ;;  %v4766_v0 = vadd.f32 %v4718_v43, %v4459_v15 }
 0x48c   : > { %v5089_v5 = vadd.f32 %v8345_v51, %v5047_v11  ;;  %v5124_v61 = vmax.f32 %v5088_v18, 0.0  ;;  %v4676_v45 = vpop.f32.mrf.mxu1  ;;  %v4412_v18 = vrot.slane %v4367_v10, 4  ;;  %v4460_v60 = vadd.f32 %v4367_v10, %v4176_v17 }
 0x48d   : > { %v5211_v41 = vld.sshfl [vmem:[#allocation1 + $0x20] sm:$0xff pattern:$0x75316420] }
 0x48e   : > { %5279 = vst.msk [vmem:[%s8382_s26 + $0x50] sm:$0xff] %vm5267_vm0, %v5211_v41  ;;  %v5125_v14 = vmax.f32 %v5089_v5, 0.0  ;;  %v4088_v62 = vpop.f32.mrf.mxu3  ;;  %v4461_v55 = vadd.f32 %v4412_v18, %v4177_v50  ;;  %v4767_v25 = vadd.f32 %v4674_v30, %v4460_v60  ;;  %v4372_v10 = vpop.f32.mrf.mxu0  ;;  %v4462_v30 = vadd.f32 %v4369_v22, %v4178_v21 }
 0x48f   : > { %5213 = vst [vmem:[#allocation1] ss:$2 sm:$0xff] %v5124_v61  ;;  %v4954_v12 = vpop.f32.mrf.mxu2  ;;  %v5212_v7 = vld.sshfl [vmem:[#allocation1 + $0x30] sm:$0xff pattern:$0x75316420]  ;;  %v4180_v24 = vadd.f32 %v4088_v62, %v8289_v28  ;;  %v4414_v15 = vrot.slane %v4372_v10, 4 }
 0x490   : > { %5214 = vst [vmem:[#allocation1 + $0x1] ss:$2 sm:$0xff] %v5125_v14  ;;  %v5002_v27 = vrot.slane %v4954_v12, 4  ;;  %v5048_v2 = vadd.f32 %v4954_v12, %v4763_v42  ;;  %v4768_v54 = vadd.f32 %v4719_v20, %v4461_v55  ;;  %v4413_v14 = vrot.slane %v4369_v22, 4 }
 0x491   : > { %5280 = vst.msk [vmem:[%s8382_s26 + $0x58] sm:$0xf] %vm5269_vm2, %v5212_v7  ;;  %v4720_v12 = vrot.slane %v4676_v45, 4 }
 0x492   : > { %v5049_v16 = vadd.f32 %v5002_v27, %v4764_v29  ;;  %v5090_v35 = vadd.f32 %v8337_v39, %v5048_v2  ;;  %v4130_v29 = vrot.slane %v4088_v62, 4  ;;  %v4463_v27 = vadd.f32 %v4413_v14, %v4179_v53 }
 0x493   : > { %v4769_v2 = vadd.f32 %v4676_v45, %v4462_v30 }
 0x494   : > { %v5091_v56 = vadd.f32 %v8337_v39, %v5049_v16  ;;  %v5126_v34 = vmax.f32 %v5090_v35, 0.0  ;;  %v4679_v33 = vpop.f32.mrf.mxu1  ;;  %v4770_v1 = vadd.f32 %v4720_v12, %v4463_v27 }
 0x496   : > { %v5127_v32 = vmax.f32 %v5091_v56, 0.0  ;;  %5215 = vst [vmem:[#allocation1 + $0x10] ss:$2 sm:$0xff] %v5126_v34  ;;  %v4090_v16 = vpop.f32.mrf.mxu3  ;;  %v4181_v56 = vadd.f32 %v4130_v29, %v8292_v46 }
 0x497   : > { %v5216_v49 = vld.sshfl [vmem:[#allocation1] sm:$0xff pattern:$0x75316420]  ;;  %v4956_v37 = vpop.f32.mrf.mxu2  ;;  %v4131_v17 = vrot.slane %v4090_v16, 4  ;;  %v4182_v46 = vadd.f32 %v4090_v16, %v8294_v6 }
 0x498   : > { %5281 = vst.msk [vmem:[%s8382_s26 + $0x60] sm:$0xff] %vm5267_vm0, %v5216_v49  ;;  %v5003_v19 = vrot.slane %v4956_v37, 4  ;;  %v5050_v58 = vadd.f32 %v4956_v37, %v4765_v13  ;;  %v4374_v13 = vpop.f32.mrf.mxu0  ;;  %v4721_v49 = vrot.slane %v4679_v33, 4 }
 0x499   : > { %5218 = vst [vmem:[#allocation1 + $0x20] ss:$2 sm:$0xff] %v5127_v32  ;;  %v4464_v32 = vadd.f32 %v4372_v10, %v4180_v24  ;;  %v4183_v20 = vadd.f32 %v4131_v17, %v8297_v3  ;;  %v4415_v62 = vrot.slane %v4374_v13, 4 }
 0x49a   : > { %v5051_v11 = vadd.f32 %v5003_v19, %v4766_v0  ;;  %v5092_v52 = vadd.f32 %v8345_v51, %v5050_v58  ;;  %v4465_v0 = vadd.f32 %v4414_v15, %v4181_v56 }
 0x49b   : > { %v4771_v19 = vadd.f32 %v4679_v33, %v4464_v32  ;;  %v4467_v21 = vadd.f32 %v4415_v62, %v4183_v20 }
 0x49c   : > { %v5093_v44 = vadd.f32 %v8337_v39, %v5051_v11  ;;  %v5128_v31 = vmax.f32 %v5092_v52, 0.0  ;;  %v4681_v28 = vpop.f32.mrf.mxu1  ;;  %v4772_v11 = vadd.f32 %v4721_v49, %v4465_v0 }
 0x49d   : > { %v5217_v4 = vld.sshfl [vmem:[#allocation1 + $0x10] sm:$0xff pattern:$0x75316420]  ;;  %v4722_v63 = vrot.slane %v4681_v28, 4 }
 0x49e   : > { %v5129_v5 = vmax.f32 %v5093_v44, 0.0  ;;  %5219 = vst [vmem:[#allocation1 + $0x21] ss:$2 sm:$0xff] %v5128_v31  ;;  %v4093_v60 = vpop.f32.mrf.mxu3 }
 0x49f   : > { %v4959_v61 = vpop.f32.mrf.mxu2  ;;  %5282 = vst.msk [vmem:[%s8382_s26 + $0x68] sm:$0xf] %vm5269_vm2, %v5217_v4  ;;  %v4466_v4 = vadd.f32 %v4374_v13, %v4182_v46  ;;  %v4184_v3 = vadd.f32 %v4093_v60, %v8299_v9  ;;  %v4774_v53 = vadd.f32 %v4722_v63, %v4467_v21 }
 0x4a0   : > { %5220 = vst [vmem:[#allocation1 + $0x30] ss:$2 sm:$0xff] %v5129_v5  ;;  %v5004_v23 = vrot.slane %v4959_v61, 4  ;;  %v5052_v41 = vadd.f32 %v4959_v61, %v4767_v25  ;;  %v4377_v5 = vpop.f32.mrf.mxu0  ;;  %v4132_v61 = vrot.slane %v4093_v60, 4 }
 0x4a1   : > { %v4416_v12 = vrot.slane %v4377_v5, 4 }
 0x4a2   : > { %v5053_v57 = vadd.f32 %v5004_v23, %v4768_v54  ;;  %v5094_v42 = vadd.f32 %v8337_v39, %v5052_v41  ;;  %v4773_v54 = vadd.f32 %v4681_v28, %v4466_v4  ;;  %v4185_v14 = vadd.f32 %v4132_v61, %v8302_v36 }
 0x4a4   : > { %v5095_v7 = vadd.f32 %v8345_v51, %v5053_v57  ;;  %v5130_v8 = vmax.f32 %v5094_v42, 0.0  ;;  %v4684_v41 = vpop.f32.mrf.mxu1 }
 0x4a5   : > { %v5221_v26 = vld.sshfl [vmem:[#allocation1 + $0x20] sm:$0xff pattern:$0x75316420] }
 0x4a6   : > { %5283 = vst.msk [vmem:[%s8382_s26 + $0x70] sm:$0xff] %vm5267_vm0, %v5221_v26  ;;  %v5131_v59 = vmax.f32 %v5095_v7, 0.0  ;;  %v4095_v7 = vpop.f32.mrf.mxu3  ;;  %v4723_v26 = vrot.slane %v4684_v41, 4 }
 0x4a7   : > { %5223 = vst [vmem:[#allocation1] ss:$2 sm:$0xff] %v5130_v8  ;;  %v4961_v48 = vpop.f32.mrf.mxu2  ;;  %v5222_v35 = vld.sshfl [vmem:[#allocation1 + $0x30] sm:$0xff pattern:$0x75316420]  ;;  %v4468_v8 = vadd.f32 %v4377_v5, %v4184_v3  ;;  %v4133_v9 = vrot.slane %v4095_v7, 4 }
 0x4a8   : > { %5224 = vst [vmem:[#allocation1 + $0x1] ss:$2 sm:$0xff] %v5131_v59  ;;  %v5005_v40 = vrot.slane %v4961_v48, 4  ;;  %v5054_v43 = vadd.f32 %v4961_v48, %v4769_v2  ;;  %v4469_v59 = vadd.f32 %v4416_v12, %v4185_v14  ;;  %v4379_v24 = vpop.f32.mrf.mxu0 }
 0x4a9   : > { %5284 = vst.msk [vmem:[%s8382_s26 + $0x78] sm:$0xf] %vm5269_vm2, %v5222_v35  ;;  %v4775_v16 = vadd.f32 %v4684_v41, %v4468_v8  ;;  %v4417_v49 = vrot.slane %v4379_v24, 4 }
 0x4aa   : > { %v5055_v34 = vadd.f32 %v5005_v40, %v4770_v1  ;;  %v5096_v38 = vadd.f32 %v8337_v39, %v5054_v43  ;;  %v4186_v1 = vadd.f32 %v4095_v7, %v8304_v47  ;;  %v4776_v40 = vadd.f32 %v4723_v26, %v4469_v59 }
 0x4ac   : > { %v5097_v37 = vadd.f32 %v8337_v39, %v5055_v34  ;;  %v5132_v22 = vmax.f32 %v5096_v38, 0.0  ;;  %v4686_v34 = vpop.f32.mrf.mxu1  ;;  %v9138_v38 = vld [vmem:[#allocation19_spill] sm:$0xff] }
 0x4ad   : > { %v4187_v15 = vadd.f32 %v4133_v9, %v9138_v38 }
 0x4ae   : > { %v5133_v58 = vmax.f32 %v5097_v37, 0.0  ;;  %5225 = vst [vmem:[#allocation1 + $0x10] ss:$2 sm:$0xff] %v5132_v22  ;;  %v4470_v37 = vadd.f32 %v4379_v24, %v4186_v1  ;;  %v4724_v22 = vrot.slane %v4686_v34, 4 }
 0x4af   : > { %v5226_v45 = vld.sshfl [vmem:[#allocation1] sm:$0xff pattern:$0x75316420]  ;;  %v4964_v50 = vpop.f32.mrf.mxu2  ;;  %v4471_v47 = vadd.f32 %v4417_v49, %v4187_v15 }
 0x4b0   : > { %5285 = vst.msk [vmem:[%s8382_s26 + $0x80] sm:$0xff] %vm5267_vm0, %v5226_v45  ;;  %v5006_v52 = vrot.slane %v4964_v50, 4  ;;  %v5056_v18 = vadd.f32 %v4964_v50, %v4771_v19  ;;  %v4777_v0 = vadd.f32 %v4686_v34, %v4470_v37 }
 0x4b1   : > { %5228 = vst [vmem:[#allocation1 + $0x20] ss:$2 sm:$0xff] %v5133_v58  ;;  %v4778_v50 = vadd.f32 %v4724_v22, %v4471_v47 }
 0x4b2   : > { %v5057_v44 = vadd.f32 %v5006_v52, %v4772_v11  ;;  %v5098_v31 = vadd.f32 %v8345_v51, %v5056_v18 }
 0x4b4   : > { %v5099_v55 = vadd.f32 %v8337_v39, %v5057_v44  ;;  %v5134_v25 = vmax.f32 %v5098_v31, 0.0 }
 0x4b5   : > { %v5227_v6 = vld.sshfl [vmem:[#allocation1 + $0x10] sm:$0xff pattern:$0x75316420] }
 0x4b6   : > { %v5135_v23 = vmax.f32 %v5099_v55, 0.0  ;;  %5229 = vst [vmem:[#allocation1 + $0x21] ss:$2 sm:$0xff] %v5134_v25 }
 0x4b7   : > { %v4966_v10 = vpop.f32.mrf.mxu2  ;;  %5286 = vst.msk [vmem:[%s8382_s26 + $0x88] sm:$0xf] %vm5269_vm2, %v5227_v6 }
 0x4b8   : > { %5230 = vst [vmem:[#allocation1 + $0x30] ss:$2 sm:$0xff] %v5135_v23  ;;  %v5007_v57 = vrot.slane %v4966_v10, 4  ;;  %v5058_v42 = vadd.f32 %v4966_v10, %v4773_v54 }
 0x4ba   : > { %v5059_v33 = vadd.f32 %v5007_v57, %v4774_v53  ;;  %v5100_v30 = vadd.f32 %v8337_v39, %v5058_v42 }
 0x4bc   : > { %v5101_v29 = vadd.f32 %v8345_v51, %v5059_v33  ;;  %v5136_v27 = vmax.f32 %v5100_v30, 0.0 }
 0x4bd   : > { %v5231_v2 = vld.sshfl [vmem:[#allocation1 + $0x20] sm:$0xff pattern:$0x75316420] }
 0x4be   : > { %5287 = vst.msk [vmem:[%s8382_s26 + $0x90] sm:$0xff] %vm5267_vm0, %v5231_v2  ;;  %v5137_v48 = vmax.f32 %v5101_v29, 0.0 }
 0x4bf   : > { %5233 = vst [vmem:[#allocation1] ss:$2 sm:$0xff] %v5136_v27  ;;  %v4969_v36 = vpop.f32.mrf.mxu2  ;;  %v5232_v35 = vld.sshfl [vmem:[#allocation1 + $0x30] sm:$0xff pattern:$0x75316420] }
 0x4c0   : > { %5234 = vst [vmem:[#allocation1 + $0x1] ss:$2 sm:$0xff] %v5137_v48  ;;  %v5008_v43 = vrot.slane %v4969_v36, 4  ;;  %v5060_v56 = vadd.f32 %v4969_v36, %v4775_v16 }
 0x4c1   : > { %5288 = vst.msk [vmem:[%s8382_s26 + $0x98] sm:$0xf] %vm5269_vm2, %v5232_v35 }
 0x4c2   : > { %v5061_v13 = vadd.f32 %v5008_v43, %v4776_v40  ;;  %v5102_v32 = vadd.f32 %v8337_v39, %v5060_v56 }
 0x4c4   : > { %v5103_v28 = vadd.f32 %v8337_v39, %v5061_v13  ;;  %v5138_v17 = vmax.f32 %v5102_v32, 0.0 }
 0x4c6   : > { %v5139_v19 = vmax.f32 %v5103_v28, 0.0  ;;  %5235 = vst [vmem:[#allocation1 + $0x10] ss:$2 sm:$0xff] %v5138_v17 }
 0x4c7   : > { %v5236_v58 = vld.sshfl [vmem:[#allocation1] sm:$0xff pattern:$0x75316420]  ;;  %v4971_v45 = vpop.f32.mrf.mxu2 }
 0x4c8   : > { %5289 = vst.msk [vmem:[%s8382_s26 + $0xa0] sm:$0xff] %vm5267_vm0, %v5236_v58  ;;  %v5009_v46 = vrot.slane %v4971_v45, 4  ;;  %v5062_v11 = vadd.f32 %v4971_v45, %v4777_v0 }
 0x4c9   : > { %5238 = vst [vmem:[#allocation1 + $0x20] ss:$2 sm:$0xff] %v5139_v19 }
 0x4ca   : > { %v5063_v52 = vadd.f32 %v5009_v46, %v4778_v50  ;;  %v5104_v18 = vadd.f32 %v8345_v51, %v5062_v11 }
 0x4cc   : > { %v5105_v60 = vadd.f32 %v8337_v39, %v5063_v52  ;;  %v5140_v20 = vmax.f32 %v5104_v18, 0.0 }
 0x4cd   : > { %v5237_v44 = vld.sshfl [vmem:[#allocation1 + $0x10] sm:$0xff pattern:$0x75316420] }
 0x4ce   : > { %5290 = vst.msk [vmem:[%s8382_s26 + $0xa8] sm:$0xf] %vm5269_vm2, %v5237_v44  ;;  %v5141_v31 = vmax.f32 %v5105_v60, 0.0 }
 0x4cf   : > { %5239 = vst [vmem:[#allocation1 + $0x21] ss:$2 sm:$0xff] %v5140_v20 }
 0x4d0   : > { %5240 = vst [vmem:[#allocation1 + $0x30] ss:$2 sm:$0xff] %v5141_v31 }
 0x4d6   : > { %v5241_v62 = vld.sshfl [vmem:[#allocation1 + $0x20] sm:$0xff pattern:$0x75316420] }
 0x4d7   : > { %v5242_v4 = vld.sshfl [vmem:[#allocation1 + $0x30] sm:$0xff pattern:$0x75316420]  ;;  %5291 = vst.msk [vmem:[%s8382_s26 + $0xb0] sm:$0xff] %vm5267_vm0, %v5241_v62 }
 0x4d8   : > { %5292 = vst.msk [vmem:[%s8382_s26 + $0xb8] sm:$0xf] %vm5269_vm2, %v5242_v4 }
 0x4d9 PF: > { %s18_s27 = sadd.s32 1, %s5945_s27  }
 0x4da   : > { %p15_p4 = scmp.ge.s32.totalorder %s18_s27, 4  }
 0x4dc   :  { %17 = sbr.rel (!%p15_p4) target bundleno = 1 (0x1), region = 174 }

</bundles_post_ra>
